<compile_context>
chip_gen: v6e
topology: v6e:2x2x1
jax: 0.10.0
libtpu: 0.0.40
codegen_flags: <defaults>
</compile_context>

<pallas_src>
import jax
import jax.numpy as jnp
from jax import lax
from jax.experimental import pallas as pl
from jax.experimental.pallas import tpu as pltpu


def _round_up(x, m):
    return ((x + m - 1) // m) * m


def _sigmoid(x):
    # Mathematically identical to logistic sigmoid; a single EUP (tanh) push
    # per element instead of exp + reciprocal.
    return 0.5 * jnp.tanh(0.5 * x) + 0.5


def _decoder_kernel(x_ref, h0_ref, c0_ref, wih_ref, whh_ref, b_ref,
                    wout_ref, bout_ref,
                    out_ref, att_ref,
                    xw_scr):
    """One batch tile of the full LSTM recurrence + output head.

    x_ref:    (S, TB, Din)   f32, time-major inputs for this batch tile
    h0_ref:   (TB, Hp)       f32, zero-padded initial hidden
    c0_ref:   (TB, Hp)       f32, zero-padded initial cell
    wih_ref:  (Din, 4*Hp)    bf16, W_ih^T, gate-blocked (i|f|g|o), lane-padded
    whh_ref:  (Hp, 4*Hp)     bf16, W_hh^T, gate-blocked, lane-padded
    b_ref:    (1, 4*Hp)      f32,  b_ih + b_hh, gate-blocked, lane-padded
    wout_ref: (Hp, Dout)     f32,  output_layer.weight^T, row-padded
    bout_ref: (1, Dout)      f32,  output_layer.bias
    out_ref:  (TB, Dout)     f32,  Linear head on the last hidden state
    att_ref:  (S, TB, Hp)    f32,  all hidden states (time-major, lane-padded)
    xw_scr:   (S, TB, 4*Hp)  f32 scratch, hoisted input projection
    """
    S, TB, Din = x_ref.shape
    Hp = whh_ref.shape[0]

    # ---- Hoisted input projection: one large bf16 MXU matmul (f32 acc) plus a
    # single bias add, instead of S tiny per-step matmuls.
    x2 = x_ref[...].reshape(S * TB, Din).astype(jnp.bfloat16)
    xw = jnp.dot(x2, wih_ref[...], preferred_element_type=jnp.float32)
    xw_scr[...] = (xw + b_ref[...]).reshape(S, TB, 4 * Hp)

    # Cap unroll: full unroll only for short sequences (vreg pressure).
    unroll = True if S <= 16 else 4

    # ---- Serial recurrence (h/c carried in f32; bf16 MXU operands only).
    def step(t, carry):
        h, c = carry
        gates = xw_scr[t] + jnp.dot(h.astype(jnp.bfloat16), whh_ref[...],
                                    preferred_element_type=jnp.float32)
        # Gate blocks are 128-lane aligned (Hp % 128 == 0): free vreg views.
        i_g = _sigmoid(gates[:, 0 * Hp:1 * Hp])
        f_g = _sigmoid(gates[:, 1 * Hp:2 * Hp])
        g_g = jnp.tanh(gates[:, 2 * Hp:3 * Hp])
        o_g = _sigmoid(gates[:, 3 * Hp:4 * Hp])
        c_new = f_g * c + i_g * g_g
        h_new = o_g * jnp.tanh(c_new)
        att_ref[t] = h_new                       # lane-dense (TB, Hp) store
        return (h_new, c_new)

    h_last, _ = lax.fori_loop(0, S, step, (h0_ref[...], c0_ref[...]),
                              unroll=unroll)

    # ---- Linear head on the last hidden state.
    out_ref[...] = (jnp.dot(h_last, wout_ref[...],
                            preferred_element_type=jnp.float32)
                    + bout_ref[...])


def _vmem_limit_bytes():
    """Per-generation VMEM budget (leave headroom under physical capacity)."""
    try:
        cap = int(pltpu.get_tpu_info().vmem_capacity_bytes)
        return max(32 << 20, min(100 << 20, (cap * 3) // 4))
    except Exception:
        return 48 << 20


def decoder_forward(inputs, hidden0, params, *, batch_tile=None):
    """Batch-first Decoder forward (matches the PyTorch module).

    inputs:  (B, S, Din) f32;  hidden0 = (h0, c0) each (1, B, H)
    returns: (output (B, Dout), hidden (1, B, H), att_output (B, S, H))
    """
    h0, c0 = hidden0
    B, S, Din = inputs.shape
    H = params["w_hh"].shape[1]
    Dout = params["w_out"].shape[0]
    Hp = _round_up(H, 128)
    f32 = jnp.float32
    bf16 = jnp.bfloat16

    # Batch tiling: >=2 grid steps when the batch is big enough (megacore on
    # v7x); one max-size tile otherwise (v5e/v6e have a single TensorCore).
    Bp = _round_up(B, 8)
    if batch_tile is None:
        TB = Bp if Bp < 16 else _round_up(Bp // 2, 8)
    else:
        TB = max(8, _round_up(min(batch_tile, Bp), 8))
    if Bp % TB != 0:
        TB = Bp
    grid = (Bp // TB,)

    # Fused, gate-blocked, lane-padded weights.  PyTorch gate order: i, f, g, o.
    w_ih_t = params["w_ih"].T.astype(f32)        # (Din, 4H)
    w_hh_t = params["w_hh"].T.astype(f32)        # (H, 4H)
    bias = (params["b_ih"] + params["b_hh"]).astype(f32)

    w_ih_p = jnp.zeros((Din, 4 * Hp), f32)
    w_hh_p = jnp.zeros((Hp, 4 * Hp), f32)
    b_p = jnp.zeros((1, 4 * Hp), f32)
    for g in range(4):
        w_ih_p = w_ih_p.at[:, g * Hp:g * Hp + H].set(w_ih_t[:, g * H:(g + 1) * H])
        w_hh_p = w_hh_p.at[:H, g * Hp:g * Hp + H].set(w_hh_t[:, g * H:(g + 1) * H])
        b_p = b_p.at[0, g * Hp:g * Hp + H].set(bias[g * H:(g + 1) * H])
    w_ih_bf = w_ih_p.astype(bf16)                # bf16 MXU input projection
    w_hh_bf = w_hh_p.astype(bf16)                # bf16 MXU recurrent matmul

    w_out_p = jnp.zeros((Hp, Dout), f32).at[:H, :].set(params["w_out"].T.astype(f32))
    b_out_p = params["b_out"].reshape(1, Dout).astype(f32)

    # Time-major inputs + zero-padded initial state (padded lanes/rows stay 0
    # through the recurrence because the padded bias lanes are exactly zero).
    x_tm = jnp.zeros((S, Bp, Din), f32).at[:, :B, :].set(
        jnp.transpose(inputs.astype(f32), (1, 0, 2)))
    h0_p = jnp.zeros((Bp, Hp), f32).at[:B, :H].set(h0[0].astype(f32))
    c0_p = jnp.zeros((Bp, Hp), f32).at[:B, :H].set(c0[0].astype(f32))

    def build(single_buffer_weights):
        def const_spec(shape):
            n = len(shape)

            def idx(b):
                return (0,) * n

            if single_buffer_weights:
                return pl.BlockSpec(shape, idx, pipeline_mode=pl.Buffered(1))
            return pl.BlockSpec(shape, idx)

        return pl.pallas_call(
            _decoder_kernel,
            out_shape=(
                jax.ShapeDtypeStruct((Bp, Dout), f32),
                jax.ShapeDtypeStruct((S, Bp, Hp), f32),   # lane-dense att
            ),
            grid_spec=pltpu.PrefetchScalarGridSpec(
                num_scalar_prefetch=0,
                grid=grid,
                in_specs=[
                    pl.BlockSpec((S, TB, Din), lambda b: (0, b, 0)),   # x
                    pl.BlockSpec((TB, Hp), lambda b: (b, 0)),          # h0
                    pl.BlockSpec((TB, Hp), lambda b: (b, 0)),          # c0
                    const_spec((Din, 4 * Hp)),                         # W_ih^T bf16
                    const_spec((Hp, 4 * Hp)),                          # W_hh^T bf16
                    const_spec((1, 4 * Hp)),                           # bias
                    const_spec((Hp, Dout)),                            # W_out^T
                    const_spec((1, Dout)),                             # b_out
                ],
                out_specs=(
                    pl.BlockSpec((TB, Dout), lambda b: (b, 0)),        # head
                    pl.BlockSpec((S, TB, Hp), lambda b: (0, b, 0)),    # att
                ),
                scratch_shapes=[
                    pltpu.VMEM((S, TB, 4 * Hp), f32),   # hoisted input proj
                ],
            ),
            compiler_params=pltpu.CompilerParams(
                dimension_semantics=("parallel",),
                vmem_limit_bytes=_vmem_limit_bytes(),
            ),
        )

    args = (x_tm, h0_p, c0_p, w_ih_bf, w_hh_bf, b_p, w_out_p, b_out_p)
    try:
        out, att_tm = build(True)(*args)
    except Exception:
        # Fallback if single-buffered weight specs are unsupported on the
        # installed JAX; semantics are identical (just 2x weight buffers).
        out, att_tm = build(False)(*args)

    out = out[:B]
    att_output = jnp.transpose(att_tm[:, :B, :H], (1, 0, 2))   # (B, S, H)
    hidden = att_tm[-1, :B, :H][None]                           # (1, B, H)
    return out, hidden, att_output


def decoder_reference(inputs, hidden0, params, matmul_dtype=jnp.float32):
    """Pure-JAX reference of the PyTorch module (LSTM + Linear on last step).

    matmul_dtype lets the reference mimic the kernel's bf16-rounded matmul
    operands (input projection AND recurrent matmul) for a tight cross-check;
    f32 gives the exact module.
    """
    h0, c0 = hidden0
    H = params["w_hh"].shape[1]
    f32 = jnp.float32

    def rnd(a):
        return a.astype(matmul_dtype).astype(f32)

    w_ih_t = rnd(params["w_ih"]).T
    w_hh_t = rnd(params["w_hh"]).T
    b = (params["b_ih"] + params["b_hh"]).astype(f32)

    def step(carry, x_t):
        h, c = carry
        gates = rnd(x_t) @ w_ih_t + rnd(h) @ w_hh_t + b
        i_g = jax.nn.sigmoid(gates[:, 0:H])
        f_g = jax.nn.sigmoid(gates[:, H:2 * H])
        g_g = jnp.tanh(gates[:, 2 * H:3 * H])
        o_g = jax.nn.sigmoid(gates[:, 3 * H:4 * H])
        c_new = f_g * c + i_g * g_g
        h_new = o_g * jnp.tanh(c_new)
        return (h_new, c_new), h_new

    x_tm = jnp.transpose(inputs.astype(f32), (1, 0, 2))
    (h_last, _), hs = lax.scan(step, (h0[0].astype(f32), c0[0].astype(f32)), x_tm)
    att = jnp.transpose(hs, (1, 0, 2))
    out = h_last @ params["w_out"].T.astype(f32) + params["b_out"].astype(f32)
    return out, h_last[None], att


if __name__ == "__main__":
    B, S = 8, 8
    INPUT_DIM, HIDDEN_DIM, OUTPUT_DIM = 16, 32, 16

    key = jax.random.PRNGKey(0)
    ks = jax.random.split(key, 9)
    bound = 1.0 / (HIDDEN_DIM ** 0.5)   # PyTorch default LSTM/Linear init range
    params = {
        "w_ih": jax.random.uniform(ks[0], (4 * HIDDEN_DIM, INPUT_DIM),
                                   jnp.float32, -bound, bound),
        "w_hh": jax.random.uniform(ks[1], (4 * HIDDEN_DIM, HIDDEN_DIM),
                                   jnp.float32, -bound, bound),
        "b_ih": jax.random.uniform(ks[2], (4 * HIDDEN_DIM,),
                                   jnp.float32, -bound, bound),
        "b_hh": jax.random.uniform(ks[3], (4 * HIDDEN_DIM,),
                                   jnp.float32, -bound, bound),
        "w_out": jax.random.uniform(ks[4], (OUTPUT_DIM, HIDDEN_DIM),
                                    jnp.float32, -bound, bound),
        "b_out": jax.random.uniform(ks[5], (OUTPUT_DIM,),
                                    jnp.float32, -bound, bound),
    }

    inputs = jax.random.normal(ks[6], (B, S, INPUT_DIM), jnp.float32)
    h0 = jax.random.normal(ks[7], (1, B, HIDDEN_DIM), jnp.float32)
    c0 = jax.random.normal(ks[8], (1, B, HIDDEN_DIM), jnp.float32)

    out, hidden, att_output = decoder_forward(inputs, (h0, c0), params)
    jax.block_until_ready((out, hidden, att_output))

    assert out.shape == (B, OUTPUT_DIM)
    assert hidden.shape == (1, B, HIDDEN_DIM)
    assert att_output.shape == (B, S, HIDDEN_DIM)

    # Tight check vs a reference that mimics the kernel's bf16 matmul operands
    # (carries, gate math and the output head are f32 in both).
    out_m, hid_m, att_m = decoder_reference(inputs, (h0, c0), params,
                                            matmul_dtype=jnp.bfloat16)
    assert jnp.allclose(out, out_m, atol=5e-3, rtol=5e-3)
    assert jnp.allclose(hidden, hid_m, atol=5e-3, rtol=5e-3)
    assert jnp.allclose(att_output, att_m, atol=5e-3, rtol=5e-3)

    # Looser check vs the exact f32 PyTorch-equivalent module (only deviation:
    # bf16 rounding of the MXU matmul operands).
    out_r, hid_r, att_r = decoder_reference(inputs, (h0, c0), params)
    assert jnp.allclose(out, out_r, atol=5e-2, rtol=5e-2)
    assert jnp.allclose(hidden, hid_r, atol=5e-2, rtol=5e-2)
    assert jnp.allclose(att_output, att_r, atol=5e-2, rtol=5e-2)

    print("KERNEL_OK")
</pallas_src>

<mosaic_0001>
module attributes {stable_mosaic.version = 11 : i64} {
  func.func @_decoder_kernel(%arg0: i32, %arg1: memref<8x8x16xf32, #tpu.memory_space<vmem>>, %arg2: memref<8x128xf32, #tpu.memory_space<vmem>>, %arg3: memref<8x128xf32, #tpu.memory_space<vmem>>, %arg4: memref<16x512xbf16, #tpu.memory_space<vmem>>, %arg5: memref<128x512xbf16, #tpu.memory_space<vmem>>, %arg6: memref<1x512xf32, #tpu.memory_space<vmem>>, %arg7: memref<128x16xf32, #tpu.memory_space<vmem>>, %arg8: memref<1x16xf32, #tpu.memory_space<vmem>>, %arg9: memref<8x16xf32, #tpu.memory_space<vmem>>, %arg10: memref<8x8x128xf32, #tpu.memory_space<vmem>>, %arg11: memref<8x8x512xf32, #tpu.memory_space<vmem>>) attributes {dimension_semantics = [#tpu.dimension_semantics<parallel>], iteration_bounds = array<i64: 1>, scalar_prefetch = 0 : i64, scratch_operands = 1 : i64, tpu.core_type = #tpu.core_type<tc>, window_params = [{transform_indices = @transform_0, window_bounds = array<i64: 8, 8, 16>}, {transform_indices = @transform_1, window_bounds = array<i64: 8, 128>}, {transform_indices = @transform_2, window_bounds = array<i64: 8, 128>}, {pipeline_mode = #tpu.pipeline_mode<synchronous>, transform_indices = @transform_3, window_bounds = array<i64: 16, 512>}, {pipeline_mode = #tpu.pipeline_mode<synchronous>, transform_indices = @transform_4, window_bounds = array<i64: 128, 512>}, {pipeline_mode = #tpu.pipeline_mode<synchronous>, transform_indices = @transform_5, window_bounds = array<i64: 1, 512>}, {pipeline_mode = #tpu.pipeline_mode<synchronous>, transform_indices = @transform_6, window_bounds = array<i64: 128, 16>}, {pipeline_mode = #tpu.pipeline_mode<synchronous>, transform_indices = @transform_7, window_bounds = array<i64: 1, 16>}, {transform_indices = @transform_8, window_bounds = array<i64: 8, 16>}, {transform_indices = @transform_9, window_bounds = array<i64: 8, 8, 128>}]} {
    %c0 = arith.constant 0 : index
    %c0_0 = arith.constant 0 : index
    %c0_1 = arith.constant 0 : index
    %0 = vector.load %arg1[%c0, %c0_0, %c0_1] : memref<8x8x16xf32, #tpu.memory_space<vmem>>, vector<8x8x16xf32>
    %1 = vector.shape_cast %0 : vector<8x8x16xf32> to vector<64x16xf32>
    %2 = arith.truncf %1 : vector<64x16xf32> to vector<64x16xbf16>
    %c0_2 = arith.constant 0 : index
    %c0_3 = arith.constant 0 : index
    %3 = vector.load %arg4[%c0_2, %c0_3] : memref<16x512xbf16, #tpu.memory_space<vmem>>, vector<16x512xbf16>
    %cst = arith.constant dense<0.000000e+00> : vector<64x512xf32>
    %4 = tpu.matmul %2, %3, %cst {dimension_numbers = #tpu.dot_dimension_numbers<[1], [0], [0], [1], [0, 0, 1, 1], [], []>} : vector<64x16xbf16>, vector<16x512xbf16>, vector<64x512xf32> -> vector<64x512xf32>
    %c0_4 = arith.constant 0 : index
    %c0_5 = arith.constant 0 : index
    %5 = vector.load %arg6[%c0_4, %c0_5] : memref<1x512xf32, #tpu.memory_space<vmem>>, vector<1x512xf32>
    %6 = vector.broadcast %5 : vector<1x512xf32> to vector<64x512xf32>
    %7 = arith.addf %4, %6 : vector<64x512xf32>
    %8 = vector.shape_cast %7 : vector<64x512xf32> to vector<8x8x512xf32>
    %c0_6 = arith.constant 0 : index
    %c0_7 = arith.constant 0 : index
    %c0_8 = arith.constant 0 : index
    %9 = vector.load %arg11[%c0_6, %c0_7, %c0_8] : memref<8x8x512xf32, #tpu.memory_space<vmem>>, vector<8x8x512xf32>
    tpu.vector_store %arg11[%c0_6, %c0_7, %c0_8], %8 {strides = array<i32>} : memref<8x8x512xf32, #tpu.memory_space<vmem>>, vector<8x8x512xf32>,
    %c0_9 = arith.constant 0 : index
    %c0_10 = arith.constant 0 : index
    %10 = vector.load %arg2[%c0_9, %c0_10] : memref<8x128xf32, #tpu.memory_space<vmem>>, vector<8x128xf32>
    %c0_11 = arith.constant 0 : index
    %c0_12 = arith.constant 0 : index
    %11 = vector.load %arg3[%c0_11, %c0_12] : memref<8x128xf32, #tpu.memory_space<vmem>>, vector<8x128xf32>
    %c0_i32 = arith.constant 0 : i32
    %12 = arith.index_cast %c0_i32 : i32 to index
    %c0_13 = arith.constant 0 : index
    %c0_14 = arith.constant 0 : index
    %13 = vector.load %arg11[%12, %c0_13, %c0_14] : memref<8x8x512xf32, #tpu.memory_space<vmem>>, vector<1x8x512xf32>
    %14 = vector.shape_cast %13 : vector<1x8x512xf32> to vector<8x512xf32>
    %15 = arith.truncf %10 : vector<8x128xf32> to vector<8x128xbf16>
    %c0_15 = arith.constant 0 : index
    %c0_16 = arith.constant 0 : index
    %16 = vector.load %arg5[%c0_15, %c0_16] : memref<128x512xbf16, #tpu.memory_space<vmem>>, vector<128x512xbf16>
    %cst_17 = arith.constant dense<0.000000e+00> : vector<8x512xf32>
    %17 = tpu.matmul %15, %16, %cst_17 {dimension_numbers = #tpu.dot_dimension_numbers<[1], [0], [0], [1], [0, 0, 1, 1], [], []>} : vector<8x128xbf16>, vector<128x512xbf16>, vector<8x512xf32> -> vector<8x512xf32>
    %18 = arith.addf %14, %17 : vector<8x512xf32>
    %19 = vector.extract_strided_slice %18 {offsets = [0, 0], sizes = [8, 128], strides = [1, 1]} : vector<8x512xf32> to vector<8x128xf32>
    %cst_18 = arith.constant 5.000000e-01 : f32
    %20 = vector.broadcast %cst_18 : f32 to vector<8x128xf32>
    %21 = arith.mulf %20, %19 : vector<8x128xf32>
    %22 = math.tanh %21 : vector<8x128xf32>
    %cst_19 = arith.constant 5.000000e-01 : f32
    %23 = vector.broadcast %cst_19 : f32 to vector<8x128xf32>
    %24 = arith.mulf %23, %22 : vector<8x128xf32>
    %cst_20 = arith.constant 5.000000e-01 : f32
    %25 = vector.broadcast %cst_20 : f32 to vector<8x128xf32>
    %26 = arith.addf %24, %25 : vector<8x128xf32>
    %27 = vector.extract_strided_slice %18 {offsets = [0, 128], sizes = [8, 128], strides = [1, 1]} : vector<8x512xf32> to vector<8x128xf32>
    %cst_21 = arith.constant 5.000000e-01 : f32
    %28 = vector.broadcast %cst_21 : f32 to vector<8x128xf32>
    %29 = arith.mulf %28, %27 : vector<8x128xf32>
    %30 = math.tanh %29 : vector<8x128xf32>
    %cst_22 = arith.constant 5.000000e-01 : f32
    %31 = vector.broadcast %cst_22 : f32 to vector<8x128xf32>
    %32 = arith.mulf %31, %30 : vector<8x128xf32>
    %cst_23 = arith.constant 5.000000e-01 : f32
    %33 = vector.broadcast %cst_23 : f32 to vector<8x128xf32>
    %34 = arith.addf %32, %33 : vector<8x128xf32>
    %35 = vector.extract_strided_slice %18 {offsets = [0, 256], sizes = [8, 128], strides = [1, 1]} : vector<8x512xf32> to vector<8x128xf32>
    %36 = math.tanh %35 : vector<8x128xf32>
    %37 = vector.extract_strided_slice %18 {offsets = [0, 384], sizes = [8, 128], strides = [1, 1]} : vector<8x512xf32> to vector<8x128xf32>
    %cst_24 = arith.constant 5.000000e-01 : f32
    %38 = vector.broadcast %cst_24 : f32 to vector<8x128xf32>
    %39 = arith.mulf %38, %37 : vector<8x128xf32>
    %40 = math.tanh %39 : vector<8x128xf32>
    %cst_25 = arith.constant 5.000000e-01 : f32
    %41 = vector.broadcast %cst_25 : f32 to vector<8x128xf32>
    %42 = arith.mulf %41, %40 : vector<8x128xf32>
    %cst_26 = arith.constant 5.000000e-01 : f32
    %43 = vector.broadcast %cst_26 : f32 to vector<8x128xf32>
    %44 = arith.addf %42, %43 : vector<8x128xf32>
    %45 = arith.mulf %34, %11 : vector<8x128xf32>
    %46 = arith.mulf %26, %36 : vector<8x128xf32>
    %47 = arith.addf %45, %46 : vector<8x128xf32>
    %48 = math.tanh %47 : vector<8x128xf32>
    %49 = arith.mulf %44, %48 : vector<8x128xf32>
    %50 = arith.index_cast %c0_i32 : i32 to index
    %c0_27 = arith.constant 0 : index
    %c0_28 = arith.constant 0 : index
    %51 = vector.load %arg10[%50, %c0_27, %c0_28] : memref<8x8x128xf32, #tpu.memory_space<vmem>>, vector<1x8x128xf32>
    %52 = vector.shape_cast %51 : vector<1x8x128xf32> to vector<8x128xf32>
    %53 = vector.shape_cast %49 : vector<8x128xf32> to vector<1x8x128xf32>
    tpu.vector_store %arg10[%50, %c0_27, %c0_28], %53 {strides = array<i32>} : memref<8x8x128xf32, #tpu.memory_space<vmem>>, vector<1x8x128xf32>,
    %c1_i32 = arith.constant 1 : i32
    %54 = arith.index_cast %c1_i32 : i32 to index
    %c0_29 = arith.constant 0 : index
    %c0_30 = arith.constant 0 : index
    %55 = vector.load %arg11[%54, %c0_29, %c0_30] : memref<8x8x512xf32, #tpu.memory_space<vmem>>, vector<1x8x512xf32>
    %56 = vector.shape_cast %55 : vector<1x8x512xf32> to vector<8x512xf32>
    %57 = arith.truncf %49 : vector<8x128xf32> to vector<8x128xbf16>
    %c0_31 = arith.constant 0 : index
    %c0_32 = arith.constant 0 : index
    %58 = vector.load %arg5[%c0_31, %c0_32] : memref<128x512xbf16, #tpu.memory_space<vmem>>, vector<128x512xbf16>
    %cst_33 = arith.constant dense<0.000000e+00> : vector<8x512xf32>
    %59 = tpu.matmul %57, %58, %cst_33 {dimension_numbers = #tpu.dot_dimension_numbers<[1], [0], [0], [1], [0, 0, 1, 1], [], []>} : vector<8x128xbf16>, vector<128x512xbf16>, vector<8x512xf32> -> vector<8x512xf32>
    %60 = arith.addf %56, %59 : vector<8x512xf32>
    %61 = vector.extract_strided_slice %60 {offsets = [0, 0], sizes = [8, 128], strides = [1, 1]} : vector<8x512xf32> to vector<8x128xf32>
    %cst_34 = arith.constant 5.000000e-01 : f32
    %62 = vector.broadcast %cst_34 : f32 to vector<8x128xf32>
    %63 = arith.mulf %62, %61 : vector<8x128xf32>
    %64 = math.tanh %63 : vector<8x128xf32>
    %cst_35 = arith.constant 5.000000e-01 : f32
    %65 = vector.broadcast %cst_35 : f32 to vector<8x128xf32>
    %66 = arith.mulf %65, %64 : vector<8x128xf32>
    %cst_36 = arith.constant 5.000000e-01 : f32
    %67 = vector.broadcast %cst_36 : f32 to vector<8x128xf32>
    %68 = arith.addf %66, %67 : vector<8x128xf32>
    %69 = vector.extract_strided_slice %60 {offsets = [0, 128], sizes = [8, 128], strides = [1, 1]} : vector<8x512xf32> to vector<8x128xf32>
    %cst_37 = arith.constant 5.000000e-01 : f32
    %70 = vector.broadcast %cst_37 : f32 to vector<8x128xf32>
    %71 = arith.mulf %70, %69 : vector<8x128xf32>
    %72 = math.tanh %71 : vector<8x128xf32>
    %cst_38 = arith.constant 5.000000e-01 : f32
    %73 = vector.broadcast %cst_38 : f32 to vector<8x128xf32>
    %74 = arith.mulf %73, %72 : vector<8x128xf32>
    %cst_39 = arith.constant 5.000000e-01 : f32
    %75 = vector.broadcast %cst_39 : f32 to vector<8x128xf32>
    %76 = arith.addf %74, %75 : vector<8x128xf32>
    %77 = vector.extract_strided_slice %60 {offsets = [0, 256], sizes = [8, 128], strides = [1, 1]} : vector<8x512xf32> to vector<8x128xf32>
    %78 = math.tanh %77 : vector<8x128xf32>
    %79 = vector.extract_strided_slice %60 {offsets = [0, 384], sizes = [8, 128], strides = [1, 1]} : vector<8x512xf32> to vector<8x128xf32>
    %cst_40 = arith.constant 5.000000e-01 : f32
    %80 = vector.broadcast %cst_40 : f32 to vector<8x128xf32>
    %81 = arith.mulf %80, %79 : vector<8x128xf32>
    %82 = math.tanh %81 : vector<8x128xf32>
    %cst_41 = arith.constant 5.000000e-01 : f32
    %83 = vector.broadcast %cst_41 : f32 to vector<8x128xf32>
    %84 = arith.mulf %83, %82 : vector<8x128xf32>
    %cst_42 = arith.constant 5.000000e-01 : f32
    %85 = vector.broadcast %cst_42 : f32 to vector<8x128xf32>
    %86 = arith.addf %84, %85 : vector<8x128xf32>
    %87 = arith.mulf %76, %47 : vector<8x128xf32>
    %88 = arith.mulf %68, %78 : vector<8x128xf32>
    %89 = arith.addf %87, %88 : vector<8x128xf32>
    %90 = math.tanh %89 : vector<8x128xf32>
    %91 = arith.mulf %86, %90 : vector<8x128xf32>
    %92 = arith.index_cast %c1_i32 : i32 to index
    %c0_43 = arith.constant 0 : index
    %c0_44 = arith.constant 0 : index
    %93 = vector.load %arg10[%92, %c0_43, %c0_44] : memref<8x8x128xf32, #tpu.memory_space<vmem>>, vector<1x8x128xf32>
    %94 = vector.shape_cast %93 : vector<1x8x128xf32> to vector<8x128xf32>
    %95 = vector.shape_cast %91 : vector<8x128xf32> to vector<1x8x128xf32>
    tpu.vector_store %arg10[%92, %c0_43, %c0_44], %95 {strides = array<i32>} : memref<8x8x128xf32, #tpu.memory_space<vmem>>, vector<1x8x128xf32>,
    %c2_i32 = arith.constant 2 : i32
    %96 = arith.index_cast %c2_i32 : i32 to index
    %c0_45 = arith.constant 0 : index
    %c0_46 = arith.constant 0 : index
    %97 = vector.load %arg11[%96, %c0_45, %c0_46] : memref<8x8x512xf32, #tpu.memory_space<vmem>>, vector<1x8x512xf32>
    %98 = vector.shape_cast %97 : vector<1x8x512xf32> to vector<8x512xf32>
    %99 = arith.truncf %91 : vector<8x128xf32> to vector<8x128xbf16>
    %c0_47 = arith.constant 0 : index
    %c0_48 = arith.constant 0 : index
    %100 = vector.load %arg5[%c0_47, %c0_48] : memref<128x512xbf16, #tpu.memory_space<vmem>>, vector<128x512xbf16>
    %cst_49 = arith.constant dense<0.000000e+00> : vector<8x512xf32>
    %101 = tpu.matmul %99, %100, %cst_49 {dimension_numbers = #tpu.dot_dimension_numbers<[1], [0], [0], [1], [0, 0, 1, 1], [], []>} : vector<8x128xbf16>, vector<128x512xbf16>, vector<8x512xf32> -> vector<8x512xf32>
    %102 = arith.addf %98, %101 : vector<8x512xf32>
    %103 = vector.extract_strided_slice %102 {offsets = [0, 0], sizes = [8, 128], strides = [1, 1]} : vector<8x512xf32> to vector<8x128xf32>
    %cst_50 = arith.constant 5.000000e-01 : f32
    %104 = vector.broadcast %cst_50 : f32 to vector<8x128xf32>
    %105 = arith.mulf %104, %103 : vector<8x128xf32>
    %106 = math.tanh %105 : vector<8x128xf32>
    %cst_51 = arith.constant 5.000000e-01 : f32
    %107 = vector.broadcast %cst_51 : f32 to vector<8x128xf32>
    %108 = arith.mulf %107, %106 : vector<8x128xf32>
    %cst_52 = arith.constant 5.000000e-01 : f32
    %109 = vector.broadcast %cst_52 : f32 to vector<8x128xf32>
    %110 = arith.addf %108, %109 : vector<8x128xf32>
    %111 = vector.extract_strided_slice %102 {offsets = [0, 128], sizes = [8, 128], strides = [1, 1]} : vector<8x512xf32> to vector<8x128xf32>
    %cst_53 = arith.constant 5.000000e-01 : f32
    %112 = vector.broadcast %cst_53 : f32 to vector<8x128xf32>
    %113 = arith.mulf %112, %111 : vector<8x128xf32>
    %114 = math.tanh %113 : vector<8x128xf32>
    %cst_54 = arith.constant 5.000000e-01 : f32
    %115 = vector.broadcast %cst_54 : f32 to vector<8x128xf32>
    %116 = arith.mulf %115, %114 : vector<8x128xf32>
    %cst_55 = arith.constant 5.000000e-01 : f32
    %117 = vector.broadcast %cst_55 : f32 to vector<8x128xf32>
    %118 = arith.addf %116, %117 : vector<8x128xf32>
    %119 = vector.extract_strided_slice %102 {offsets = [0, 256], sizes = [8, 128], strides = [1, 1]} : vector<8x512xf32> to vector<8x128xf32>
    %120 = math.tanh %119 : vector<8x128xf32>
    %121 = vector.extract_strided_slice %102 {offsets = [0, 384], sizes = [8, 128], strides = [1, 1]} : vector<8x512xf32> to vector<8x128xf32>
    %cst_56 = arith.constant 5.000000e-01 : f32
    %122 = vector.broadcast %cst_56 : f32 to vector<8x128xf32>
    %123 = arith.mulf %122, %121 : vector<8x128xf32>
    %124 = math.tanh %123 : vector<8x128xf32>
    %cst_57 = arith.constant 5.000000e-01 : f32
    %125 = vector.broadcast %cst_57 : f32 to vector<8x128xf32>
    %126 = arith.mulf %125, %124 : vector<8x128xf32>
    %cst_58 = arith.constant 5.000000e-01 : f32
    %127 = vector.broadcast %cst_58 : f32 to vector<8x128xf32>
    %128 = arith.addf %126, %127 : vector<8x128xf32>
    %129 = arith.mulf %118, %89 : vector<8x128xf32>
    %130 = arith.mulf %110, %120 : vector<8x128xf32>
    %131 = arith.addf %129, %130 : vector<8x128xf32>
    %132 = math.tanh %131 : vector<8x128xf32>
    %133 = arith.mulf %128, %132 : vector<8x128xf32>
    %134 = arith.index_cast %c2_i32 : i32 to index
    %c0_59 = arith.constant 0 : index
    %c0_60 = arith.constant 0 : index
    %135 = vector.load %arg10[%134, %c0_59, %c0_60] : memref<8x8x128xf32, #tpu.memory_space<vmem>>, vector<1x8x128xf32>
    %136 = vector.shape_cast %135 : vector<1x8x128xf32> to vector<8x128xf32>
    %137 = vector.shape_cast %133 : vector<8x128xf32> to vector<1x8x128xf32>
    tpu.vector_store %arg10[%134, %c0_59, %c0_60], %137 {strides = array<i32>} : memref<8x8x128xf32, #tpu.memory_space<vmem>>, vector<1x8x128xf32>,
    %c3_i32 = arith.constant 3 : i32
    %138 = arith.index_cast %c3_i32 : i32 to index
    %c0_61 = arith.constant 0 : index
    %c0_62 = arith.constant 0 : index
    %139 = vector.load %arg11[%138, %c0_61, %c0_62] : memref<8x8x512xf32, #tpu.memory_space<vmem>>, vector<1x8x512xf32>
    %140 = vector.shape_cast %139 : vector<1x8x512xf32> to vector<8x512xf32>
    %141 = arith.truncf %133 : vector<8x128xf32> to vector<8x128xbf16>
    %c0_63 = arith.constant 0 : index
    %c0_64 = arith.constant 0 : index
    %142 = vector.load %arg5[%c0_63, %c0_64] : memref<128x512xbf16, #tpu.memory_space<vmem>>, vector<128x512xbf16>
    %cst_65 = arith.constant dense<0.000000e+00> : vector<8x512xf32>
    %143 = tpu.matmul %141, %142, %cst_65 {dimension_numbers = #tpu.dot_dimension_numbers<[1], [0], [0], [1], [0, 0, 1, 1], [], []>} : vector<8x128xbf16>, vector<128x512xbf16>, vector<8x512xf32> -> vector<8x512xf32>
    %144 = arith.addf %140, %143 : vector<8x512xf32>
    %145 = vector.extract_strided_slice %144 {offsets = [0, 0], sizes = [8, 128], strides = [1, 1]} : vector<8x512xf32> to vector<8x128xf32>
    %cst_66 = arith.constant 5.000000e-01 : f32
    %146 = vector.broadcast %cst_66 : f32 to vector<8x128xf32>
    %147 = arith.mulf %146, %145 : vector<8x128xf32>
    %148 = math.tanh %147 : vector<8x128xf32>
    %cst_67 = arith.constant 5.000000e-01 : f32
    %149 = vector.broadcast %cst_67 : f32 to vector<8x128xf32>
    %150 = arith.mulf %149, %148 : vector<8x128xf32>
    %cst_68 = arith.constant 5.000000e-01 : f32
    %151 = vector.broadcast %cst_68 : f32 to vector<8x128xf32>
    %152 = arith.addf %150, %151 : vector<8x128xf32>
    %153 = vector.extract_strided_slice %144 {offsets = [0, 128], sizes = [8, 128], strides = [1, 1]} : vector<8x512xf32> to vector<8x128xf32>
    %cst_69 = arith.constant 5.000000e-01 : f32
    %154 = vector.broadcast %cst_69 : f32 to vector<8x128xf32>
    %155 = arith.mulf %154, %153 : vector<8x128xf32>
    %156 = math.tanh %155 : vector<8x128xf32>
    %cst_70 = arith.constant 5.000000e-01 : f32
    %157 = vector.broadcast %cst_70 : f32 to vector<8x128xf32>
    %158 = arith.mulf %157, %156 : vector<8x128xf32>
    %cst_71 = arith.constant 5.000000e-01 : f32
    %159 = vector.broadcast %cst_71 : f32 to vector<8x128xf32>
    %160 = arith.addf %158, %159 : vector<8x128xf32>
    %161 = vector.extract_strided_slice %144 {offsets = [0, 256], sizes = [8, 128], strides = [1, 1]} : vector<8x512xf32> to vector<8x128xf32>
    %162 = math.tanh %161 : vector<8x128xf32>
    %163 = vector.extract_strided_slice %144 {offsets = [0, 384], sizes = [8, 128], strides = [1, 1]} : vector<8x512xf32> to vector<8x128xf32>
    %cst_72 = arith.constant 5.000000e-01 : f32
    %164 = vector.broadcast %cst_72 : f32 to vector<8x128xf32>
    %165 = arith.mulf %164, %163 : vector<8x128xf32>
    %166 = math.tanh %165 : vector<8x128xf32>
    %cst_73 = arith.constant 5.000000e-01 : f32
    %167 = vector.broadcast %cst_73 : f32 to vector<8x128xf32>
    %168 = arith.mulf %167, %166 : vector<8x128xf32>
    %cst_74 = arith.constant 5.000000e-01 : f32
    %169 = vector.broadcast %cst_74 : f32 to vector<8x128xf32>
    %170 = arith.addf %168, %169 : vector<8x128xf32>
    %171 = arith.mulf %160, %131 : vector<8x128xf32>
    %172 = arith.mulf %152, %162 : vector<8x128xf32>
    %173 = arith.addf %171, %172 : vector<8x128xf32>
    %174 = math.tanh %173 : vector<8x128xf32>
    %175 = arith.mulf %170, %174 : vector<8x128xf32>
    %176 = arith.index_cast %c3_i32 : i32 to index
    %c0_75 = arith.constant 0 : index
    %c0_76 = arith.constant 0 : index
    %177 = vector.load %arg10[%176, %c0_75, %c0_76] : memref<8x8x128xf32, #tpu.memory_space<vmem>>, vector<1x8x128xf32>
    %178 = vector.shape_cast %177 : vector<1x8x128xf32> to vector<8x128xf32>
    %179 = vector.shape_cast %175 : vector<8x128xf32> to vector<1x8x128xf32>
    tpu.vector_store %arg10[%176, %c0_75, %c0_76], %179 {strides = array<i32>} : memref<8x8x128xf32, #tpu.memory_space<vmem>>, vector<1x8x128xf32>,
    %c4_i32 = arith.constant 4 : i32
    %180 = arith.index_cast %c4_i32 : i32 to index
    %c0_77 = arith.constant 0 : index
    %c0_78 = arith.constant 0 : index
    %181 = vector.load %arg11[%180, %c0_77, %c0_78] : memref<8x8x512xf32, #tpu.memory_space<vmem>>, vector<1x8x512xf32>
    %182 = vector.shape_cast %181 : vector<1x8x512xf32> to vector<8x512xf32>
    %183 = arith.truncf %175 : vector<8x128xf32> to vector<8x128xbf16>
    %c0_79 = arith.constant 0 : index
    %c0_80 = arith.constant 0 : index
    %184 = vector.load %arg5[%c0_79, %c0_80] : memref<128x512xbf16, #tpu.memory_space<vmem>>, vector<128x512xbf16>
    %cst_81 = arith.constant dense<0.000000e+00> : vector<8x512xf32>
    %185 = tpu.matmul %183, %184, %cst_81 {dimension_numbers = #tpu.dot_dimension_numbers<[1], [0], [0], [1], [0, 0, 1, 1], [], []>} : vector<8x128xbf16>, vector<128x512xbf16>, vector<8x512xf32> -> vector<8x512xf32>
    %186 = arith.addf %182, %185 : vector<8x512xf32>
    %187 = vector.extract_strided_slice %186 {offsets = [0, 0], sizes = [8, 128], strides = [1, 1]} : vector<8x512xf32> to vector<8x128xf32>
    %cst_82 = arith.constant 5.000000e-01 : f32
    %188 = vector.broadcast %cst_82 : f32 to vector<8x128xf32>
    %189 = arith.mulf %188, %187 : vector<8x128xf32>
    %190 = math.tanh %189 : vector<8x128xf32>
    %cst_83 = arith.constant 5.000000e-01 : f32
    %191 = vector.broadcast %cst_83 : f32 to vector<8x128xf32>
    %192 = arith.mulf %191, %190 : vector<8x128xf32>
    %cst_84 = arith.constant 5.000000e-01 : f32
    %193 = vector.broadcast %cst_84 : f32 to vector<8x128xf32>
    %194 = arith.addf %192, %193 : vector<8x128xf32>
    %195 = vector.extract_strided_slice %186 {offsets = [0, 128], sizes = [8, 128], strides = [1, 1]} : vector<8x512xf32> to vector<8x128xf32>
    %cst_85 = arith.constant 5.000000e-01 : f32
    %196 = vector.broadcast %cst_85 : f32 to vector<8x128xf32>
    %197 = arith.mulf %196, %195 : vector<8x128xf32>
    %198 = math.tanh %197 : vector<8x128xf32>
    %cst_86 = arith.constant 5.000000e-01 : f32
    %199 = vector.broadcast %cst_86 : f32 to vector<8x128xf32>
    %200 = arith.mulf %199, %198 : vector<8x128xf32>
    %cst_87 = arith.constant 5.000000e-01 : f32
    %201 = vector.broadcast %cst_87 : f32 to vector<8x128xf32>
    %202 = arith.addf %200, %201 : vector<8x128xf32>
    %203 = vector.extract_strided_slice %186 {offsets = [0, 256], sizes = [8, 128], strides = [1, 1]} : vector<8x512xf32> to vector<8x128xf32>
    %204 = math.tanh %203 : vector<8x128xf32>
    %205 = vector.extract_strided_slice %186 {offsets = [0, 384], sizes = [8, 128], strides = [1, 1]} : vector<8x512xf32> to vector<8x128xf32>
    %cst_88 = arith.constant 5.000000e-01 : f32
    %206 = vector.broadcast %cst_88 : f32 to vector<8x128xf32>
    %207 = arith.mulf %206, %205 : vector<8x128xf32>
    %208 = math.tanh %207 : vector<8x128xf32>
    %cst_89 = arith.constant 5.000000e-01 : f32
    %209 = vector.broadcast %cst_89 : f32 to vector<8x128xf32>
    %210 = arith.mulf %209, %208 : vector<8x128xf32>
    %cst_90 = arith.constant 5.000000e-01 : f32
    %211 = vector.broadcast %cst_90 : f32 to vector<8x128xf32>
    %212 = arith.addf %210, %211 : vector<8x128xf32>
    %213 = arith.mulf %202, %173 : vector<8x128xf32>
    %214 = arith.mulf %194, %204 : vector<8x128xf32>
    %215 = arith.addf %213, %214 : vector<8x128xf32>
    %216 = math.tanh %215 : vector<8x128xf32>
    %217 = arith.mulf %212, %216 : vector<8x128xf32>
    %218 = arith.index_cast %c4_i32 : i32 to index
    %c0_91 = arith.constant 0 : index
    %c0_92 = arith.constant 0 : index
    %219 = vector.load %arg10[%218, %c0_91, %c0_92] : memref<8x8x128xf32, #tpu.memory_space<vmem>>, vector<1x8x128xf32>
    %220 = vector.shape_cast %219 : vector<1x8x128xf32> to vector<8x128xf32>
    %221 = vector.shape_cast %217 : vector<8x128xf32> to vector<1x8x128xf32>
    tpu.vector_store %arg10[%218, %c0_91, %c0_92], %221 {strides = array<i32>} : memref<8x8x128xf32, #tpu.memory_space<vmem>>, vector<1x8x128xf32>,
    %c5_i32 = arith.constant 5 : i32
    %222 = arith.index_cast %c5_i32 : i32 to index
    %c0_93 = arith.constant 0 : index
    %c0_94 = arith.constant 0 : index
    %223 = vector.load %arg11[%222, %c0_93, %c0_94] : memref<8x8x512xf32, #tpu.memory_space<vmem>>, vector<1x8x512xf32>
    %224 = vector.shape_cast %223 : vector<1x8x512xf32> to vector<8x512xf32>
    %225 = arith.truncf %217 : vector<8x128xf32> to vector<8x128xbf16>
    %c0_95 = arith.constant 0 : index
    %c0_96 = arith.constant 0 : index
    %226 = vector.load %arg5[%c0_95, %c0_96] : memref<128x512xbf16, #tpu.memory_space<vmem>>, vector<128x512xbf16>
    %cst_97 = arith.constant dense<0.000000e+00> : vector<8x512xf32>
    %227 = tpu.matmul %225, %226, %cst_97 {dimension_numbers = #tpu.dot_dimension_numbers<[1], [0], [0], [1], [0, 0, 1, 1], [], []>} : vector<8x128xbf16>, vector<128x512xbf16>, vector<8x512xf32> -> vector<8x512xf32>
    %228 = arith.addf %224, %227 : vector<8x512xf32>
    %229 = vector.extract_strided_slice %228 {offsets = [0, 0], sizes = [8, 128], strides = [1, 1]} : vector<8x512xf32> to vector<8x128xf32>
    %cst_98 = arith.constant 5.000000e-01 : f32
    %230 = vector.broadcast %cst_98 : f32 to vector<8x128xf32>
    %231 = arith.mulf %230, %229 : vector<8x128xf32>
    %232 = math.tanh %231 : vector<8x128xf32>
    %cst_99 = arith.constant 5.000000e-01 : f32
    %233 = vector.broadcast %cst_99 : f32 to vector<8x128xf32>
    %234 = arith.mulf %233, %232 : vector<8x128xf32>
    %cst_100 = arith.constant 5.000000e-01 : f32
    %235 = vector.broadcast %cst_100 : f32 to vector<8x128xf32>
    %236 = arith.addf %234, %235 : vector<8x128xf32>
    %237 = vector.extract_strided_slice %228 {offsets = [0, 128], sizes = [8, 128], strides = [1, 1]} : vector<8x512xf32> to vector<8x128xf32>
    %cst_101 = arith.constant 5.000000e-01 : f32
    %238 = vector.broadcast %cst_101 : f32 to vector<8x128xf32>
    %239 = arith.mulf %238, %237 : vector<8x128xf32>
    %240 = math.tanh %239 : vector<8x128xf32>
    %cst_102 = arith.constant 5.000000e-01 : f32
    %241 = vector.broadcast %cst_102 : f32 to vector<8x128xf32>
    %242 = arith.mulf %241, %240 : vector<8x128xf32>
    %cst_103 = arith.constant 5.000000e-01 : f32
    %243 = vector.broadcast %cst_103 : f32 to vector<8x128xf32>
    %244 = arith.addf %242, %243 : vector<8x128xf32>
    %245 = vector.extract_strided_slice %228 {offsets = [0, 256], sizes = [8, 128], strides = [1, 1]} : vector<8x512xf32> to vector<8x128xf32>
    %246 = math.tanh %245 : vector<8x128xf32>
    %247 = vector.extract_strided_slice %228 {offsets = [0, 384], sizes = [8, 128], strides = [1, 1]} : vector<8x512xf32> to vector<8x128xf32>
    %cst_104 = arith.constant 5.000000e-01 : f32
    %248 = vector.broadcast %cst_104 : f32 to vector<8x128xf32>
    %249 = arith.mulf %248, %247 : vector<8x128xf32>
    %250 = math.tanh %249 : vector<8x128xf32>
    %cst_105 = arith.constant 5.000000e-01 : f32
    %251 = vector.broadcast %cst_105 : f32 to vector<8x128xf32>
    %252 = arith.mulf %251, %250 : vector<8x128xf32>
    %cst_106 = arith.constant 5.000000e-01 : f32
    %253 = vector.broadcast %cst_106 : f32 to vector<8x128xf32>
    %254 = arith.addf %252, %253 : vector<8x128xf32>
    %255 = arith.mulf %244, %215 : vector<8x128xf32>
    %256 = arith.mulf %236, %246 : vector<8x128xf32>
    %257 = arith.addf %255, %256 : vector<8x128xf32>
    %258 = math.tanh %257 : vector<8x128xf32>
    %259 = arith.mulf %254, %258 : vector<8x128xf32>
    %260 = arith.index_cast %c5_i32 : i32 to index
    %c0_107 = arith.constant 0 : index
    %c0_108 = arith.constant 0 : index
    %261 = vector.load %arg10[%260, %c0_107, %c0_108] : memref<8x8x128xf32, #tpu.memory_space<vmem>>, vector<1x8x128xf32>
    %262 = vector.shape_cast %261 : vector<1x8x128xf32> to vector<8x128xf32>
    %263 = vector.shape_cast %259 : vector<8x128xf32> to vector<1x8x128xf32>
    tpu.vector_store %arg10[%260, %c0_107, %c0_108], %263 {strides = array<i32>} : memref<8x8x128xf32, #tpu.memory_space<vmem>>, vector<1x8x128xf32>,
    %c6_i32 = arith.constant 6 : i32
    %264 = arith.index_cast %c6_i32 : i32 to index
    %c0_109 = arith.constant 0 : index
    %c0_110 = arith.constant 0 : index
    %265 = vector.load %arg11[%264, %c0_109, %c0_110] : memref<8x8x512xf32, #tpu.memory_space<vmem>>, vector<1x8x512xf32>
    %266 = vector.shape_cast %265 : vector<1x8x512xf32> to vector<8x512xf32>
    %267 = arith.truncf %259 : vector<8x128xf32> to vector<8x128xbf16>
    %c0_111 = arith.constant 0 : index
    %c0_112 = arith.constant 0 : index
    %268 = vector.load %arg5[%c0_111, %c0_112] : memref<128x512xbf16, #tpu.memory_space<vmem>>, vector<128x512xbf16>
    %cst_113 = arith.constant dense<0.000000e+00> : vector<8x512xf32>
    %269 = tpu.matmul %267, %268, %cst_113 {dimension_numbers = #tpu.dot_dimension_numbers<[1], [0], [0], [1], [0, 0, 1, 1], [], []>} : vector<8x128xbf16>, vector<128x512xbf16>, vector<8x512xf32> -> vector<8x512xf32>
    %270 = arith.addf %266, %269 : vector<8x512xf32>
    %271 = vector.extract_strided_slice %270 {offsets = [0, 0], sizes = [8, 128], strides = [1, 1]} : vector<8x512xf32> to vector<8x128xf32>
    %cst_114 = arith.constant 5.000000e-01 : f32
    %272 = vector.broadcast %cst_114 : f32 to vector<8x128xf32>
    %273 = arith.mulf %272, %271 : vector<8x128xf32>
    %274 = math.tanh %273 : vector<8x128xf32>
    %cst_115 = arith.constant 5.000000e-01 : f32
    %275 = vector.broadcast %cst_115 : f32 to vector<8x128xf32>
    %276 = arith.mulf %275, %274 : vector<8x128xf32>
    %cst_116 = arith.constant 5.000000e-01 : f32
    %277 = vector.broadcast %cst_116 : f32 to vector<8x128xf32>
    %278 = arith.addf %276, %277 : vector<8x128xf32>
    %279 = vector.extract_strided_slice %270 {offsets = [0, 128], sizes = [8, 128], strides = [1, 1]} : vector<8x512xf32> to vector<8x128xf32>
    %cst_117 = arith.constant 5.000000e-01 : f32
    %280 = vector.broadcast %cst_117 : f32 to vector<8x128xf32>
    %281 = arith.mulf %280, %279 : vector<8x128xf32>
    %282 = math.tanh %281 : vector<8x128xf32>
    %cst_118 = arith.constant 5.000000e-01 : f32
    %283 = vector.broadcast %cst_118 : f32 to vector<8x128xf32>
    %284 = arith.mulf %283, %282 : vector<8x128xf32>
    %cst_119 = arith.constant 5.000000e-01 : f32
    %285 = vector.broadcast %cst_119 : f32 to vector<8x128xf32>
    %286 = arith.addf %284, %285 : vector<8x128xf32>
    %287 = vector.extract_strided_slice %270 {offsets = [0, 256], sizes = [8, 128], strides = [1, 1]} : vector<8x512xf32> to vector<8x128xf32>
    %288 = math.tanh %287 : vector<8x128xf32>
    %289 = vector.extract_strided_slice %270 {offsets = [0, 384], sizes = [8, 128], strides = [1, 1]} : vector<8x512xf32> to vector<8x128xf32>
    %cst_120 = arith.constant 5.000000e-01 : f32
    %290 = vector.broadcast %cst_120 : f32 to vector<8x128xf32>
    %291 = arith.mulf %290, %289 : vector<8x128xf32>
    %292 = math.tanh %291 : vector<8x128xf32>
    %cst_121 = arith.constant 5.000000e-01 : f32
    %293 = vector.broadcast %cst_121 : f32 to vector<8x128xf32>
    %294 = arith.mulf %293, %292 : vector<8x128xf32>
    %cst_122 = arith.constant 5.000000e-01 : f32
    %295 = vector.broadcast %cst_122 : f32 to vector<8x128xf32>
    %296 = arith.addf %294, %295 : vector<8x128xf32>
    %297 = arith.mulf %286, %257 : vector<8x128xf32>
    %298 = arith.mulf %278, %288 : vector<8x128xf32>
    %299 = arith.addf %297, %298 : vector<8x128xf32>
    %300 = math.tanh %299 : vector<8x128xf32>
    %301 = arith.mulf %296, %300 : vector<8x128xf32>
    %302 = arith.index_cast %c6_i32 : i32 to index
    %c0_123 = arith.constant 0 : index
    %c0_124 = arith.constant 0 : index
    %303 = vector.load %arg10[%302, %c0_123, %c0_124] : memref<8x8x128xf32, #tpu.memory_space<vmem>>, vector<1x8x128xf32>
    %304 = vector.shape_cast %303 : vector<1x8x128xf32> to vector<8x128xf32>
    %305 = vector.shape_cast %301 : vector<8x128xf32> to vector<1x8x128xf32>
    tpu.vector_store %arg10[%302, %c0_123, %c0_124], %305 {strides = array<i32>} : memref<8x8x128xf32, #tpu.memory_space<vmem>>, vector<1x8x128xf32>,
    %c7_i32 = arith.constant 7 : i32
    %306 = arith.index_cast %c7_i32 : i32 to index
    %c0_125 = arith.constant 0 : index
    %c0_126 = arith.constant 0 : index
    %307 = vector.load %arg11[%306, %c0_125, %c0_126] : memref<8x8x512xf32, #tpu.memory_space<vmem>>, vector<1x8x512xf32>
    %308 = vector.shape_cast %307 : vector<1x8x512xf32> to vector<8x512xf32>
    %309 = arith.truncf %301 : vector<8x128xf32> to vector<8x128xbf16>
    %c0_127 = arith.constant 0 : index
    %c0_128 = arith.constant 0 : index
    %310 = vector.load %arg5[%c0_127, %c0_128] : memref<128x512xbf16, #tpu.memory_space<vmem>>, vector<128x512xbf16>
    %cst_129 = arith.constant dense<0.000000e+00> : vector<8x512xf32>
    %311 = tpu.matmul %309, %310, %cst_129 {dimension_numbers = #tpu.dot_dimension_numbers<[1], [0], [0], [1], [0, 0, 1, 1], [], []>} : vector<8x128xbf16>, vector<128x512xbf16>, vector<8x512xf32> -> vector<8x512xf32>
    %312 = arith.addf %308, %311 : vector<8x512xf32>
    %313 = vector.extract_strided_slice %312 {offsets = [0, 0], sizes = [8, 128], strides = [1, 1]} : vector<8x512xf32> to vector<8x128xf32>
    %cst_130 = arith.constant 5.000000e-01 : f32
    %314 = vector.broadcast %cst_130 : f32 to vector<8x128xf32>
    %315 = arith.mulf %314, %313 : vector<8x128xf32>
    %316 = math.tanh %315 : vector<8x128xf32>
    %cst_131 = arith.constant 5.000000e-01 : f32
    %317 = vector.broadcast %cst_131 : f32 to vector<8x128xf32>
    %318 = arith.mulf %317, %316 : vector<8x128xf32>
    %cst_132 = arith.constant 5.000000e-01 : f32
    %319 = vector.broadcast %cst_132 : f32 to vector<8x128xf32>
    %320 = arith.addf %318, %319 : vector<8x128xf32>
    %321 = vector.extract_strided_slice %312 {offsets = [0, 128], sizes = [8, 128], strides = [1, 1]} : vector<8x512xf32> to vector<8x128xf32>
    %cst_133 = arith.constant 5.000000e-01 : f32
    %322 = vector.broadcast %cst_133 : f32 to vector<8x128xf32>
    %323 = arith.mulf %322, %321 : vector<8x128xf32>
    %324 = math.tanh %323 : vector<8x128xf32>
    %cst_134 = arith.constant 5.000000e-01 : f32
    %325 = vector.broadcast %cst_134 : f32 to vector<8x128xf32>
    %326 = arith.mulf %325, %324 : vector<8x128xf32>
    %cst_135 = arith.constant 5.000000e-01 : f32
    %327 = vector.broadcast %cst_135 : f32 to vector<8x128xf32>
    %328 = arith.addf %326, %327 : vector<8x128xf32>
    %329 = vector.extract_strided_slice %312 {offsets = [0, 256], sizes = [8, 128], strides = [1, 1]} : vector<8x512xf32> to vector<8x128xf32>
    %330 = math.tanh %329 : vector<8x128xf32>
    %331 = vector.extract_strided_slice %312 {offsets = [0, 384], sizes = [8, 128], strides = [1, 1]} : vector<8x512xf32> to vector<8x128xf32>
    %cst_136 = arith.constant 5.000000e-01 : f32
    %332 = vector.broadcast %cst_136 : f32 to vector<8x128xf32>
    %333 = arith.mulf %332, %331 : vector<8x128xf32>
    %334 = math.tanh %333 : vector<8x128xf32>
    %cst_137 = arith.constant 5.000000e-01 : f32
    %335 = vector.broadcast %cst_137 : f32 to vector<8x128xf32>
    %336 = arith.mulf %335, %334 : vector<8x128xf32>
    %cst_138 = arith.constant 5.000000e-01 : f32
    %337 = vector.broadcast %cst_138 : f32 to vector<8x128xf32>
    %338 = arith.addf %336, %337 : vector<8x128xf32>
    %339 = arith.mulf %328, %299 : vector<8x128xf32>
    %340 = arith.mulf %320, %330 : vector<8x128xf32>
    %341 = arith.addf %339, %340 : vector<8x128xf32>
    %342 = math.tanh %341 : vector<8x128xf32>
    %343 = arith.mulf %338, %342 : vector<8x128xf32>
    %344 = arith.index_cast %c7_i32 : i32 to index
    %c0_139 = arith.constant 0 : index
    %c0_140 = arith.constant 0 : index
    %345 = vector.load %arg10[%344, %c0_139, %c0_140] : memref<8x8x128xf32, #tpu.memory_space<vmem>>, vector<1x8x128xf32>
    %346 = vector.shape_cast %345 : vector<1x8x128xf32> to vector<8x128xf32>
    %347 = vector.shape_cast %343 : vector<8x128xf32> to vector<1x8x128xf32>
    tpu.vector_store %arg10[%344, %c0_139, %c0_140], %347 {strides = array<i32>} : memref<8x8x128xf32, #tpu.memory_space<vmem>>, vector<1x8x128xf32>,
    %c8_i32 = arith.constant 8 : i32
    %c0_141 = arith.constant 0 : index
    %c0_142 = arith.constant 0 : index
    %348 = vector.load %arg7[%c0_141, %c0_142] : memref<128x16xf32, #tpu.memory_space<vmem>>, vector<128x16xf32>
    %cst_143 = arith.constant dense<0.000000e+00> : vector<8x16xf32>
    %349 = tpu.matmul %343, %348, %cst_143 {dimension_numbers = #tpu.dot_dimension_numbers<[1], [0], [0], [1], [0, 0, 1, 1], [], []>} : vector<8x128xf32>, vector<128x16xf32>, vector<8x16xf32> -> vector<8x16xf32>
    %c0_144 = arith.constant 0 : index
    %c0_145 = arith.constant 0 : index
    %350 = vector.load %arg8[%c0_144, %c0_145] : memref<1x16xf32, #tpu.memory_space<vmem>>, vector<1x16xf32>
    %351 = vector.broadcast %350 : vector<1x16xf32> to vector<8x16xf32>
    %352 = arith.addf %349, %351 : vector<8x16xf32>
    %c0_146 = arith.constant 0 : index
    %c0_147 = arith.constant 0 : index
    %353 = vector.load %arg9[%c0_146, %c0_147] : memref<8x16xf32, #tpu.memory_space<vmem>>, vector<8x16xf32>
    tpu.vector_store %arg9[%c0_146, %c0_147], %352 {strides = array<i32>} : memref<8x16xf32, #tpu.memory_space<vmem>>, vector<8x16xf32>,
    return
  }
  func.func @transform_0(%arg0: i32) -> (i32, i32, i32) {
    %c0_i32 = arith.constant 0 : i32
    %c0_i32_0 = arith.constant 0 : i32
    %c0_i32_1 = arith.constant 0 : i32
    return %c0_i32, %arg0, %c0_i32_0 : i32, i32, i32
  }
  func.func @transform_1(%arg0: i32) -> (i32, i32) {
    %c0_i32 = arith.constant 0 : i32
    %c0_i32_0 = arith.constant 0 : i32
    return %arg0, %c0_i32 : i32, i32
  }
  func.func @transform_2(%arg0: i32) -> (i32, i32) {
    %c0_i32 = arith.constant 0 : i32
    %c0_i32_0 = arith.constant 0 : i32
    return %arg0, %c0_i32 : i32, i32
  }
  func.func @transform_3(%arg0: i32) -> (i32, i32) {
    %c0_i32 = arith.constant 0 : i32
    %c0_i32_0 = arith.constant 0 : i32
    %c0_i32_1 = arith.constant 0 : i32
    return %c0_i32, %c0_i32_0 : i32, i32
  }
  func.func @transform_4(%arg0: i32) -> (i32, i32) {
    %c0_i32 = arith.constant 0 : i32
    %c0_i32_0 = arith.constant 0 : i32
    %c0_i32_1 = arith.constant 0 : i32
    return %c0_i32, %c0_i32_0 : i32, i32
  }
  func.func @transform_5(%arg0: i32) -> (i32, i32) {
    %c0_i32 = arith.constant 0 : i32
    %c0_i32_0 = arith.constant 0 : i32
    %c0_i32_1 = arith.constant 0 : i32
    return %c0_i32, %c0_i32_0 : i32, i32
  }
  func.func @transform_6(%arg0: i32) -> (i32, i32) {
    %c0_i32 = arith.constant 0 : i32
    %c0_i32_0 = arith.constant 0 : i32
    %c0_i32_1 = arith.constant 0 : i32
    return %c0_i32, %c0_i32_0 : i32, i32
  }
  func.func @transform_7(%arg0: i32) -> (i32, i32) {
    %c0_i32 = arith.constant 0 : i32
    %c0_i32_0 = arith.constant 0 : i32
    %c0_i32_1 = arith.constant 0 : i32
    return %c0_i32, %c0_i32_0 : i32, i32
  }
  func.func @transform_8(%arg0: i32) -> (i32, i32) {
    %c0_i32 = arith.constant 0 : i32
    %c0_i32_0 = arith.constant 0 : i32
    return %arg0, %c0_i32 : i32, i32
  }
  func.func @transform_9(%arg0: i32) -> (i32, i32, i32) {
    %c0_i32 = arith.constant 0 : i32
    %c0_i32_0 = arith.constant 0 : i32
    %c0_i32_1 = arith.constant 0 : i32
    return %c0_i32, %arg0, %c0_i32_0 : i32, i32, i32
  }
}

module attributes {stable_mosaic.version = 11 : i64} {
  func.func @_decoder_kernel(%arg0: i32, %arg1: memref<8x8x16xf32, #tpu.memory_space<vmem>>, %arg2: memref<8x128xf32, #tpu.memory_space<vmem>>, %arg3: memref<8x128xf32, #tpu.memory_space<vmem>>, %arg4: memref<16x512xbf16, #tpu.memory_space<vmem>>, %arg5: memref<128x512xbf16, #tpu.memory_space<vmem>>, %arg6: memref<1x512xf32, #tpu.memory_space<vmem>>, %arg7: memref<128x16xf32, #tpu.memory_space<vmem>>, %arg8: memref<1x16xf32, #tpu.memory_space<vmem>>, %arg9: memref<8x16xf32, #tpu.memory_space<vmem>>, %arg10: memref<8x8x128xf32, #tpu.memory_space<vmem>>, %arg11: memref<8x8x512xf32, #tpu.memory_space<vmem>>) attributes {dimension_semantics = [#tpu.dimension_semantics<parallel>], iteration_bounds = array<i64: 1>, scalar_prefetch = 0 : i64, scratch_operands = 1 : i64, tpu.core_type = #tpu.core_type<tc>, window_params = [{transform_indices = @transform_0, window_bounds = array<i64: 8, 8, 16>}, {transform_indices = @transform_1, window_bounds = array<i64: 8, 128>}, {transform_indices = @transform_2, window_bounds = array<i64: 8, 128>}, {pipeline_mode = #tpu.pipeline_mode<synchronous>, transform_indices = @transform_3, window_bounds = array<i64: 16, 512>}, {pipeline_mode = #tpu.pipeline_mode<synchronous>, transform_indices = @transform_4, window_bounds = array<i64: 128, 512>}, {pipeline_mode = #tpu.pipeline_mode<synchronous>, transform_indices = @transform_5, window_bounds = array<i64: 1, 512>}, {pipeline_mode = #tpu.pipeline_mode<synchronous>, transform_indices = @transform_6, window_bounds = array<i64: 128, 16>}, {pipeline_mode = #tpu.pipeline_mode<synchronous>, transform_indices = @transform_7, window_bounds = array<i64: 1, 16>}, {transform_indices = @transform_8, window_bounds = array<i64: 8, 16>}, {transform_indices = @transform_9, window_bounds = array<i64: 8, 8, 128>}]} {
    %c0 = arith.constant 0 : index
    %c0_0 = arith.constant 0 : index
    %c0_1 = arith.constant 0 : index
    %0 = vector.load %arg1[%c0, %c0_0, %c0_1] : memref<8x8x16xf32, #tpu.memory_space<vmem>>, vector<8x8x16xf32>
    %1 = vector.shape_cast %0 : vector<8x8x16xf32> to vector<64x16xf32>
    %2 = arith.truncf %1 : vector<64x16xf32> to vector<64x16xbf16>
    %c0_2 = arith.constant 0 : index
    %c0_3 = arith.constant 0 : index
    %3 = vector.load %arg4[%c0_2, %c0_3] : memref<16x512xbf16, #tpu.memory_space<vmem>>, vector<16x512xbf16>
    %cst = arith.constant dense<0.000000e+00> : vector<64x512xf32>
    %4 = tpu.matmul %2, %3, %cst {dimension_numbers = #tpu.dot_dimension_numbers<[1], [0], [0], [1], [0, 0, 1, 1], [], []>} : vector<64x16xbf16>, vector<16x512xbf16>, vector<64x512xf32> -> vector<64x512xf32>
    %c0_4 = arith.constant 0 : index
    %c0_5 = arith.constant 0 : index
    %5 = vector.load %arg6[%c0_4, %c0_5] : memref<1x512xf32, #tpu.memory_space<vmem>>, vector<1x512xf32>
    %6 = vector.broadcast %5 : vector<1x512xf32> to vector<64x512xf32>
    %7 = arith.addf %4, %6 : vector<64x512xf32>
    %8 = vector.shape_cast %7 : vector<64x512xf32> to vector<8x8x512xf32>
    %c0_6 = arith.constant 0 : index
    %c0_7 = arith.constant 0 : index
    %c0_8 = arith.constant 0 : index
    %9 = vector.load %arg11[%c0_6, %c0_7, %c0_8] : memref<8x8x512xf32, #tpu.memory_space<vmem>>, vector<8x8x512xf32>
    tpu.vector_store %arg11[%c0_6, %c0_7, %c0_8], %8 {strides = array<i32>} : memref<8x8x512xf32, #tpu.memory_space<vmem>>, vector<8x8x512xf32>,
    %c0_9 = arith.constant 0 : index
    %c0_10 = arith.constant 0 : index
    %10 = vector.load %arg2[%c0_9, %c0_10] : memref<8x128xf32, #tpu.memory_space<vmem>>, vector<8x128xf32>
    %c0_11 = arith.constant 0 : index
    %c0_12 = arith.constant 0 : index
    %11 = vector.load %arg3[%c0_11, %c0_12] : memref<8x128xf32, #tpu.memory_space<vmem>>, vector<8x128xf32>
    %c0_i32 = arith.constant 0 : i32
    %12 = arith.index_cast %c0_i32 : i32 to index
    %c0_13 = arith.constant 0 : index
    %c0_14 = arith.constant 0 : index
    %13 = vector.load %arg11[%12, %c0_13, %c0_14] : memref<8x8x512xf32, #tpu.memory_space<vmem>>, vector<1x8x512xf32>
    %14 = vector.shape_cast %13 : vector<1x8x512xf32> to vector<8x512xf32>
    %15 = arith.truncf %10 : vector<8x128xf32> to vector<8x128xbf16>
    %c0_15 = arith.constant 0 : index
    %c0_16 = arith.constant 0 : index
    %16 = vector.load %arg5[%c0_15, %c0_16] : memref<128x512xbf16, #tpu.memory_space<vmem>>, vector<128x512xbf16>
    %cst_17 = arith.constant dense<0.000000e+00> : vector<8x512xf32>
    %17 = tpu.matmul %15, %16, %cst_17 {dimension_numbers = #tpu.dot_dimension_numbers<[1], [0], [0], [1], [0, 0, 1, 1], [], []>} : vector<8x128xbf16>, vector<128x512xbf16>, vector<8x512xf32> -> vector<8x512xf32>
    %18 = arith.addf %14, %17 : vector<8x512xf32>
    %19 = vector.extract_strided_slice %18 {offsets = [0, 0], sizes = [8, 128], strides = [1, 1]} : vector<8x512xf32> to vector<8x128xf32>
    %cst_18 = arith.constant 5.000000e-01 : f32
    %20 = vector.broadcast %cst_18 : f32 to vector<8x128xf32>
    %21 = arith.mulf %20, %19 : vector<8x128xf32>
    %22 = math.tanh %21 : vector<8x128xf32>
    %cst_19 = arith.constant 5.000000e-01 : f32
    %23 = vector.broadcast %cst_19 : f32 to vector<8x128xf32>
    %24 = arith.mulf %23, %22 : vector<8x128xf32>
    %cst_20 = arith.constant 5.000000e-01 : f32
    %25 = vector.broadcast %cst_20 : f32 to vector<8x128xf32>
    %26 = arith.addf %24, %25 : vector<8x128xf32>
    %27 = vector.extract_strided_slice %18 {offsets = [0, 128], sizes = [8, 128], strides = [1, 1]} : vector<8x512xf32> to vector<8x128xf32>
    %cst_21 = arith.constant 5.000000e-01 : f32
    %28 = vector.broadcast %cst_21 : f32 to vector<8x128xf32>
    %29 = arith.mulf %28, %27 : vector<8x128xf32>
    %30 = math.tanh %29 : vector<8x128xf32>
    %cst_22 = arith.constant 5.000000e-01 : f32
    %31 = vector.broadcast %cst_22 : f32 to vector<8x128xf32>
    %32 = arith.mulf %31, %30 : vector<8x128xf32>
    %cst_23 = arith.constant 5.000000e-01 : f32
    %33 = vector.broadcast %cst_23 : f32 to vector<8x128xf32>
    %34 = arith.addf %32, %33 : vector<8x128xf32>
    %35 = vector.extract_strided_slice %18 {offsets = [0, 256], sizes = [8, 128], strides = [1, 1]} : vector<8x512xf32> to vector<8x128xf32>
    %36 = math.tanh %35 : vector<8x128xf32>
    %37 = vector.extract_strided_slice %18 {offsets = [0, 384], sizes = [8, 128], strides = [1, 1]} : vector<8x512xf32> to vector<8x128xf32>
    %cst_24 = arith.constant 5.000000e-01 : f32
    %38 = vector.broadcast %cst_24 : f32 to vector<8x128xf32>
    %39 = arith.mulf %38, %37 : vector<8x128xf32>
    %40 = math.tanh %39 : vector<8x128xf32>
    %cst_25 = arith.constant 5.000000e-01 : f32
    %41 = vector.broadcast %cst_25 : f32 to vector<8x128xf32>
    %42 = arith.mulf %41, %40 : vector<8x128xf32>
    %cst_26 = arith.constant 5.000000e-01 : f32
    %43 = vector.broadcast %cst_26 : f32 to vector<8x128xf32>
    %44 = arith.addf %42, %43 : vector<8x128xf32>
    %45 = arith.mulf %34, %11 : vector<8x128xf32>
    %46 = arith.mulf %26, %36 : vector<8x128xf32>
    %47 = arith.addf %45, %46 : vector<8x128xf32>
    %48 = math.tanh %47 : vector<8x128xf32>
    %49 = arith.mulf %44, %48 : vector<8x128xf32>
    %50 = arith.index_cast %c0_i32 : i32 to index
    %c0_27 = arith.constant 0 : index
    %c0_28 = arith.constant 0 : index
    %51 = vector.load %arg10[%50, %c0_27, %c0_28] : memref<8x8x128xf32, #tpu.memory_space<vmem>>, vector<1x8x128xf32>
    %52 = vector.shape_cast %51 : vector<1x8x128xf32> to vector<8x128xf32>
    %53 = vector.shape_cast %49 : vector<8x128xf32> to vector<1x8x128xf32>
    tpu.vector_store %arg10[%50, %c0_27, %c0_28], %53 {strides = array<i32>} : memref<8x8x128xf32, #tpu.memory_space<vmem>>, vector<1x8x128xf32>,
    %c1_i32 = arith.constant 1 : i32
    %54 = arith.index_cast %c1_i32 : i32 to index
    %c0_29 = arith.constant 0 : index
    %c0_30 = arith.constant 0 : index
    %55 = vector.load %arg11[%54, %c0_29, %c0_30] : memref<8x8x512xf32, #tpu.memory_space<vmem>>, vector<1x8x512xf32>
    %56 = vector.shape_cast %55 : vector<1x8x512xf32> to vector<8x512xf32>
    %57 = arith.truncf %49 : vector<8x128xf32> to vector<8x128xbf16>
    %c0_31 = arith.constant 0 : index
    %c0_32 = arith.constant 0 : index
    %58 = vector.load %arg5[%c0_31, %c0_32] : memref<128x512xbf16, #tpu.memory_space<vmem>>, vector<128x512xbf16>
    %cst_33 = arith.constant dense<0.000000e+00> : vector<8x512xf32>
    %59 = tpu.matmul %57, %58, %cst_33 {dimension_numbers = #tpu.dot_dimension_numbers<[1], [0], [0], [1], [0, 0, 1, 1], [], []>} : vector<8x128xbf16>, vector<128x512xbf16>, vector<8x512xf32> -> vector<8x512xf32>
    %60 = arith.addf %56, %59 : vector<8x512xf32>
    %61 = vector.extract_strided_slice %60 {offsets = [0, 0], sizes = [8, 128], strides = [1, 1]} : vector<8x512xf32> to vector<8x128xf32>
    %cst_34 = arith.constant 5.000000e-01 : f32
    %62 = vector.broadcast %cst_34 : f32 to vector<8x128xf32>
    %63 = arith.mulf %62, %61 : vector<8x128xf32>
    %64 = math.tanh %63 : vector<8x128xf32>
    %cst_35 = arith.constant 5.000000e-01 : f32
    %65 = vector.broadcast %cst_35 : f32 to vector<8x128xf32>
    %66 = arith.mulf %65, %64 : vector<8x128xf32>
    %cst_36 = arith.constant 5.000000e-01 : f32
    %67 = vector.broadcast %cst_36 : f32 to vector<8x128xf32>
    %68 = arith.addf %66, %67 : vector<8x128xf32>
    %69 = vector.extract_strided_slice %60 {offsets = [0, 128], sizes = [8, 128], strides = [1, 1]} : vector<8x512xf32> to vector<8x128xf32>
    %cst_37 = arith.constant 5.000000e-01 : f32
    %70 = vector.broadcast %cst_37 : f32 to vector<8x128xf32>
    %71 = arith.mulf %70, %69 : vector<8x128xf32>
    %72 = math.tanh %71 : vector<8x128xf32>
    %cst_38 = arith.constant 5.000000e-01 : f32
    %73 = vector.broadcast %cst_38 : f32 to vector<8x128xf32>
    %74 = arith.mulf %73, %72 : vector<8x128xf32>
    %cst_39 = arith.constant 5.000000e-01 : f32
    %75 = vector.broadcast %cst_39 : f32 to vector<8x128xf32>
    %76 = arith.addf %74, %75 : vector<8x128xf32>
    %77 = vector.extract_strided_slice %60 {offsets = [0, 256], sizes = [8, 128], strides = [1, 1]} : vector<8x512xf32> to vector<8x128xf32>
    %78 = math.tanh %77 : vector<8x128xf32>
    %79 = vector.extract_strided_slice %60 {offsets = [0, 384], sizes = [8, 128], strides = [1, 1]} : vector<8x512xf32> to vector<8x128xf32>
    %cst_40 = arith.constant 5.000000e-01 : f32
    %80 = vector.broadcast %cst_40 : f32 to vector<8x128xf32>
    %81 = arith.mulf %80, %79 : vector<8x128xf32>
    %82 = math.tanh %81 : vector<8x128xf32>
    %cst_41 = arith.constant 5.000000e-01 : f32
    %83 = vector.broadcast %cst_41 : f32 to vector<8x128xf32>
    %84 = arith.mulf %83, %82 : vector<8x128xf32>
    %cst_42 = arith.constant 5.000000e-01 : f32
    %85 = vector.broadcast %cst_42 : f32 to vector<8x128xf32>
    %86 = arith.addf %84, %85 : vector<8x128xf32>
    %87 = arith.mulf %76, %47 : vector<8x128xf32>
    %88 = arith.mulf %68, %78 : vector<8x128xf32>
    %89 = arith.addf %87, %88 : vector<8x128xf32>
    %90 = math.tanh %89 : vector<8x128xf32>
    %91 = arith.mulf %86, %90 : vector<8x128xf32>
    %92 = arith.index_cast %c1_i32 : i32 to index
    %c0_43 = arith.constant 0 : index
    %c0_44 = arith.constant 0 : index
    %93 = vector.load %arg10[%92, %c0_43, %c0_44] : memref<8x8x128xf32, #tpu.memory_space<vmem>>, vector<1x8x128xf32>
    %94 = vector.shape_cast %93 : vector<1x8x128xf32> to vector<8x128xf32>
    %95 = vector.shape_cast %91 : vector<8x128xf32> to vector<1x8x128xf32>
    tpu.vector_store %arg10[%92, %c0_43, %c0_44], %95 {strides = array<i32>} : memref<8x8x128xf32, #tpu.memory_space<vmem>>, vector<1x8x128xf32>,
    %c2_i32 = arith.constant 2 : i32
    %96 = arith.index_cast %c2_i32 : i32 to index
    %c0_45 = arith.constant 0 : index
    %c0_46 = arith.constant 0 : index
    %97 = vector.load %arg11[%96, %c0_45, %c0_46] : memref<8x8x512xf32, #tpu.memory_space<vmem>>, vector<1x8x512xf32>
    %98 = vector.shape_cast %97 : vector<1x8x512xf32> to vector<8x512xf32>
    %99 = arith.truncf %91 : vector<8x128xf32> to vector<8x128xbf16>
    %c0_47 = arith.constant 0 : index
    %c0_48 = arith.constant 0 : index
    %100 = vector.load %arg5[%c0_47, %c0_48] : memref<128x512xbf16, #tpu.memory_space<vmem>>, vector<128x512xbf16>
    %cst_49 = arith.constant dense<0.000000e+00> : vector<8x512xf32>
    %101 = tpu.matmul %99, %100, %cst_49 {dimension_numbers = #tpu.dot_dimension_numbers<[1], [0], [0], [1], [0, 0, 1, 1], [], []>} : vector<8x128xbf16>, vector<128x512xbf16>, vector<8x512xf32> -> vector<8x512xf32>
    %102 = arith.addf %98, %101 : vector<8x512xf32>
    %103 = vector.extract_strided_slice %102 {offsets = [0, 0], sizes = [8, 128], strides = [1, 1]} : vector<8x512xf32> to vector<8x128xf32>
    %cst_50 = arith.constant 5.000000e-01 : f32
    %104 = vector.broadcast %cst_50 : f32 to vector<8x128xf32>
    %105 = arith.mulf %104, %103 : vector<8x128xf32>
    %106 = math.tanh %105 : vector<8x128xf32>
    %cst_51 = arith.constant 5.000000e-01 : f32
    %107 = vector.broadcast %cst_51 : f32 to vector<8x128xf32>
    %108 = arith.mulf %107, %106 : vector<8x128xf32>
    %cst_52 = arith.constant 5.000000e-01 : f32
    %109 = vector.broadcast %cst_52 : f32 to vector<8x128xf32>
    %110 = arith.addf %108, %109 : vector<8x128xf32>
    %111 = vector.extract_strided_slice %102 {offsets = [0, 128], sizes = [8, 128], strides = [1, 1]} : vector<8x512xf32> to vector<8x128xf32>
    %cst_53 = arith.constant 5.000000e-01 : f32
    %112 = vector.broadcast %cst_53 : f32 to vector<8x128xf32>
    %113 = arith.mulf %112, %111 : vector<8x128xf32>
    %114 = math.tanh %113 : vector<8x128xf32>
    %cst_54 = arith.constant 5.000000e-01 : f32
    %115 = vector.broadcast %cst_54 : f32 to vector<8x128xf32>
    %116 = arith.mulf %115, %114 : vector<8x128xf32>
    %cst_55 = arith.constant 5.000000e-01 : f32
    %117 = vector.broadcast %cst_55 : f32 to vector<8x128xf32>
    %118 = arith.addf %116, %117 : vector<8x128xf32>
    %119 = vector.extract_strided_slice %102 {offsets = [0, 256], sizes = [8, 128], strides = [1, 1]} : vector<8x512xf32> to vector<8x128xf32>
    %120 = math.tanh %119 : vector<8x128xf32>
    %121 = vector.extract_strided_slice %102 {offsets = [0, 384], sizes = [8, 128], strides = [1, 1]} : vector<8x512xf32> to vector<8x128xf32>
    %cst_56 = arith.constant 5.000000e-01 : f32
    %122 = vector.broadcast %cst_56 : f32 to vector<8x128xf32>
    %123 = arith.mulf %122, %121 : vector<8x128xf32>
    %124 = math.tanh %123 : vector<8x128xf32>
    %cst_57 = arith.constant 5.000000e-01 : f32
    %125 = vector.broadcast %cst_57 : f32 to vector<8x128xf32>
    %126 = arith.mulf %125, %124 : vector<8x128xf32>
    %cst_58 = arith.constant 5.000000e-01 : f32
    %127 = vector.broadcast %cst_58 : f32 to vector<8x128xf32>
    %128 = arith.addf %126, %127 : vector<8x128xf32>
    %129 = arith.mulf %118, %89 : vector<8x128xf32>
    %130 = arith.mulf %110, %120 : vector<8x128xf32>
    %131 = arith.addf %129, %130 : vector<8x128xf32>
    %132 = math.tanh %131 : vector<8x128xf32>
    %133 = arith.mulf %128, %132 : vector<8x128xf32>
    %134 = arith.index_cast %c2_i32 : i32 to index
    %c0_59 = arith.constant 0 : index
    %c0_60 = arith.constant 0 : index
    %135 = vector.load %arg10[%134, %c0_59, %c0_60] : memref<8x8x128xf32, #tpu.memory_space<vmem>>, vector<1x8x128xf32>
    %136 = vector.shape_cast %135 : vector<1x8x128xf32> to vector<8x128xf32>
    %137 = vector.shape_cast %133 : vector<8x128xf32> to vector<1x8x128xf32>
    tpu.vector_store %arg10[%134, %c0_59, %c0_60], %137 {strides = array<i32>} : memref<8x8x128xf32, #tpu.memory_space<vmem>>, vector<1x8x128xf32>,
    %c3_i32 = arith.constant 3 : i32
    %138 = arith.index_cast %c3_i32 : i32 to index
    %c0_61 = arith.constant 0 : index
    %c0_62 = arith.constant 0 : index
    %139 = vector.load %arg11[%138, %c0_61, %c0_62] : memref<8x8x512xf32, #tpu.memory_space<vmem>>, vector<1x8x512xf32>
    %140 = vector.shape_cast %139 : vector<1x8x512xf32> to vector<8x512xf32>
    %141 = arith.truncf %133 : vector<8x128xf32> to vector<8x128xbf16>
    %c0_63 = arith.constant 0 : index
    %c0_64 = arith.constant 0 : index
    %142 = vector.load %arg5[%c0_63, %c0_64] : memref<128x512xbf16, #tpu.memory_space<vmem>>, vector<128x512xbf16>
    %cst_65 = arith.constant dense<0.000000e+00> : vector<8x512xf32>
    %143 = tpu.matmul %141, %142, %cst_65 {dimension_numbers = #tpu.dot_dimension_numbers<[1], [0], [0], [1], [0, 0, 1, 1], [], []>} : vector<8x128xbf16>, vector<128x512xbf16>, vector<8x512xf32> -> vector<8x512xf32>
    %144 = arith.addf %140, %143 : vector<8x512xf32>
    %145 = vector.extract_strided_slice %144 {offsets = [0, 0], sizes = [8, 128], strides = [1, 1]} : vector<8x512xf32> to vector<8x128xf32>
    %cst_66 = arith.constant 5.000000e-01 : f32
    %146 = vector.broadcast %cst_66 : f32 to vector<8x128xf32>
    %147 = arith.mulf %146, %145 : vector<8x128xf32>
    %148 = math.tanh %147 : vector<8x128xf32>
    %cst_67 = arith.constant 5.000000e-01 : f32
    %149 = vector.broadcast %cst_67 : f32 to vector<8x128xf32>
    %150 = arith.mulf %149, %148 : vector<8x128xf32>
    %cst_68 = arith.constant 5.000000e-01 : f32
    %151 = vector.broadcast %cst_68 : f32 to vector<8x128xf32>
    %152 = arith.addf %150, %151 : vector<8x128xf32>
    %153 = vector.extract_strided_slice %144 {offsets = [0, 128], sizes = [8, 128], strides = [1, 1]} : vector<8x512xf32> to vector<8x128xf32>
    %cst_69 = arith.constant 5.000000e-01 : f32
    %154 = vector.broadcast %cst_69 : f32 to vector<8x128xf32>
    %155 = arith.mulf %154, %153 : vector<8x128xf32>
    %156 = math.tanh %155 : vector<8x128xf32>
    %cst_70 = arith.constant 5.000000e-01 : f32
    %157 = vector.broadcast %cst_70 : f32 to vector<8x128xf32>
    %158 = arith.mulf %157, %156 : vector<8x128xf32>
    %cst_71 = arith.constant 5.000000e-01 : f32
    %159 = vector.broadcast %cst_71 : f32 to vector<8x128xf32>
    %160 = arith.addf %158, %159 : vector<8x128xf32>
    %161 = vector.extract_strided_slice %144 {offsets = [0, 256], sizes = [8, 128], strides = [1, 1]} : vector<8x512xf32> to vector<8x128xf32>
    %162 = math.tanh %161 : vector<8x128xf32>
    %163 = vector.extract_strided_slice %144 {offsets = [0, 384], sizes = [8, 128], strides = [1, 1]} : vector<8x512xf32> to vector<8x128xf32>
    %cst_72 = arith.constant 5.000000e-01 : f32
    %164 = vector.broadcast %cst_72 : f32 to vector<8x128xf32>
    %165 = arith.mulf %164, %163 : vector<8x128xf32>
    %166 = math.tanh %165 : vector<8x128xf32>
    %cst_73 = arith.constant 5.000000e-01 : f32
    %167 = vector.broadcast %cst_73 : f32 to vector<8x128xf32>
    %168 = arith.mulf %167, %166 : vector<8x128xf32>
    %cst_74 = arith.constant 5.000000e-01 : f32
    %169 = vector.broadcast %cst_74 : f32 to vector<8x128xf32>
    %170 = arith.addf %168, %169 : vector<8x128xf32>
    %171 = arith.mulf %160, %131 : vector<8x128xf32>
    %172 = arith.mulf %152, %162 : vector<8x128xf32>
    %173 = arith.addf %171, %172 : vector<8x128xf32>
    %174 = math.tanh %173 : vector<8x128xf32>
    %175 = arith.mulf %170, %174 : vector<8x128xf32>
    %176 = arith.index_cast %c3_i32 : i32 to index
    %c0_75 = arith.constant 0 : index
    %c0_76 = arith.constant 0 : index
    %177 = vector.load %arg10[%176, %c0_75, %c0_76] : memref<8x8x128xf32, #tpu.memory_space<vmem>>, vector<1x8x128xf32>
    %178 = vector.shape_cast %177 : vector<1x8x128xf32> to vector<8x128xf32>
    %179 = vector.shape_cast %175 : vector<8x128xf32> to vector<1x8x128xf32>
    tpu.vector_store %arg10[%176, %c0_75, %c0_76], %179 {strides = array<i32>} : memref<8x8x128xf32, #tpu.memory_space<vmem>>, vector<1x8x128xf32>,
    %c4_i32 = arith.constant 4 : i32
    %180 = arith.index_cast %c4_i32 : i32 to index
    %c0_77 = arith.constant 0 : index
    %c0_78 = arith.constant 0 : index
    %181 = vector.load %arg11[%180, %c0_77, %c0_78] : memref<8x8x512xf32, #tpu.memory_space<vmem>>, vector<1x8x512xf32>
    %182 = vector.shape_cast %181 : vector<1x8x512xf32> to vector<8x512xf32>
    %183 = arith.truncf %175 : vector<8x128xf32> to vector<8x128xbf16>
    %c0_79 = arith.constant 0 : index
    %c0_80 = arith.constant 0 : index
    %184 = vector.load %arg5[%c0_79, %c0_80] : memref<128x512xbf16, #tpu.memory_space<vmem>>, vector<128x512xbf16>
    %cst_81 = arith.constant dense<0.000000e+00> : vector<8x512xf32>
    %185 = tpu.matmul %183, %184, %cst_81 {dimension_numbers = #tpu.dot_dimension_numbers<[1], [0], [0], [1], [0, 0, 1, 1], [], []>} : vector<8x128xbf16>, vector<128x512xbf16>, vector<8x512xf32> -> vector<8x512xf32>
    %186 = arith.addf %182, %185 : vector<8x512xf32>
    %187 = vector.extract_strided_slice %186 {offsets = [0, 0], sizes = [8, 128], strides = [1, 1]} : vector<8x512xf32> to vector<8x128xf32>
    %cst_82 = arith.constant 5.000000e-01 : f32
    %188 = vector.broadcast %cst_82 : f32 to vector<8x128xf32>
    %189 = arith.mulf %188, %187 : vector<8x128xf32>
    %190 = math.tanh %189 : vector<8x128xf32>
    %cst_83 = arith.constant 5.000000e-01 : f32
    %191 = vector.broadcast %cst_83 : f32 to vector<8x128xf32>
    %192 = arith.mulf %191, %190 : vector<8x128xf32>
    %cst_84 = arith.constant 5.000000e-01 : f32
    %193 = vector.broadcast %cst_84 : f32 to vector<8x128xf32>
    %194 = arith.addf %192, %193 : vector<8x128xf32>
    %195 = vector.extract_strided_slice %186 {offsets = [0, 128], sizes = [8, 128], strides = [1, 1]} : vector<8x512xf32> to vector<8x128xf32>
    %cst_85 = arith.constant 5.000000e-01 : f32
    %196 = vector.broadcast %cst_85 : f32 to vector<8x128xf32>
    %197 = arith.mulf %196, %195 : vector<8x128xf32>
    %198 = math.tanh %197 : vector<8x128xf32>
    %cst_86 = arith.constant 5.000000e-01 : f32
    %199 = vector.broadcast %cst_86 : f32 to vector<8x128xf32>
    %200 = arith.mulf %199, %198 : vector<8x128xf32>
    %cst_87 = arith.constant 5.000000e-01 : f32
    %201 = vector.broadcast %cst_87 : f32 to vector<8x128xf32>
    %202 = arith.addf %200, %201 : vector<8x128xf32>
    %203 = vector.extract_strided_slice %186 {offsets = [0, 256], sizes = [8, 128], strides = [1, 1]} : vector<8x512xf32> to vector<8x128xf32>
    %204 = math.tanh %203 : vector<8x128xf32>
    %205 = vector.extract_strided_slice %186 {offsets = [0, 384], sizes = [8, 128], strides = [1, 1]} : vector<8x512xf32> to vector<8x128xf32>
    %cst_88 = arith.constant 5.000000e-01 : f32
    %206 = vector.broadcast %cst_88 : f32 to vector<8x128xf32>
    %207 = arith.mulf %206, %205 : vector<8x128xf32>
    %208 = math.tanh %207 : vector<8x128xf32>
    %cst_89 = arith.constant 5.000000e-01 : f32
    %209 = vector.broadcast %cst_89 : f32 to vector<8x128xf32>
    %210 = arith.mulf %209, %208 : vector<8x128xf32>
    %cst_90 = arith.constant 5.000000e-01 : f32
    %211 = vector.broadcast %cst_90 : f32 to vector<8x128xf32>
    %212 = arith.addf %210, %211 : vector<8x128xf32>
    %213 = arith.mulf %202, %173 : vector<8x128xf32>
    %214 = arith.mulf %194, %204 : vector<8x128xf32>
    %215 = arith.addf %213, %214 : vector<8x128xf32>
    %216 = math.tanh %215 : vector<8x128xf32>
    %217 = arith.mulf %212, %216 : vector<8x128xf32>
    %218 = arith.index_cast %c4_i32 : i32 to index
    %c0_91 = arith.constant 0 : index
    %c0_92 = arith.constant 0 : index
    %219 = vector.load %arg10[%218, %c0_91, %c0_92] : memref<8x8x128xf32, #tpu.memory_space<vmem>>, vector<1x8x128xf32>
    %220 = vector.shape_cast %219 : vector<1x8x128xf32> to vector<8x128xf32>
    %221 = vector.shape_cast %217 : vector<8x128xf32> to vector<1x8x128xf32>
    tpu.vector_store %arg10[%218, %c0_91, %c0_92], %221 {strides = array<i32>} : memref<8x8x128xf32, #tpu.memory_space<vmem>>, vector<1x8x128xf32>,
    %c5_i32 = arith.constant 5 : i32
    %222 = arith.index_cast %c5_i32 : i32 to index
    %c0_93 = arith.constant 0 : index
    %c0_94 = arith.constant 0 : index
    %223 = vector.load %arg11[%222, %c0_93, %c0_94] : memref<8x8x512xf32, #tpu.memory_space<vmem>>, vector<1x8x512xf32>
    %224 = vector.shape_cast %223 : vector<1x8x512xf32> to vector<8x512xf32>
    %225 = arith.truncf %217 : vector<8x128xf32> to vector<8x128xbf16>
    %c0_95 = arith.constant 0 : index
    %c0_96 = arith.constant 0 : index
    %226 = vector.load %arg5[%c0_95, %c0_96] : memref<128x512xbf16, #tpu.memory_space<vmem>>, vector<128x512xbf16>
    %cst_97 = arith.constant dense<0.000000e+00> : vector<8x512xf32>
    %227 = tpu.matmul %225, %226, %cst_97 {dimension_numbers = #tpu.dot_dimension_numbers<[1], [0], [0], [1], [0, 0, 1, 1], [], []>} : vector<8x128xbf16>, vector<128x512xbf16>, vector<8x512xf32> -> vector<8x512xf32>
    %228 = arith.addf %224, %227 : vector<8x512xf32>
    %229 = vector.extract_strided_slice %228 {offsets = [0, 0], sizes = [8, 128], strides = [1, 1]} : vector<8x512xf32> to vector<8x128xf32>
    %cst_98 = arith.constant 5.000000e-01 : f32
    %230 = vector.broadcast %cst_98 : f32 to vector<8x128xf32>
    %231 = arith.mulf %230, %229 : vector<8x128xf32>
    %232 = math.tanh %231 : vector<8x128xf32>
    %cst_99 = arith.constant 5.000000e-01 : f32
    %233 = vector.broadcast %cst_99 : f32 to vector<8x128xf32>
    %234 = arith.mulf %233, %232 : vector<8x128xf32>
    %cst_100 = arith.constant 5.000000e-01 : f32
    %235 = vector.broadcast %cst_100 : f32 to vector<8x128xf32>
    %236 = arith.addf %234, %235 : vector<8x128xf32>
    %237 = vector.extract_strided_slice %228 {offsets = [0, 128], sizes = [8, 128], strides = [1, 1]} : vector<8x512xf32> to vector<8x128xf32>
    %cst_101 = arith.constant 5.000000e-01 : f32
    %238 = vector.broadcast %cst_101 : f32 to vector<8x128xf32>
    %239 = arith.mulf %238, %237 : vector<8x128xf32>
    %240 = math.tanh %239 : vector<8x128xf32>
    %cst_102 = arith.constant 5.000000e-01 : f32
    %241 = vector.broadcast %cst_102 : f32 to vector<8x128xf32>
    %242 = arith.mulf %241, %240 : vector<8x128xf32>
    %cst_103 = arith.constant 5.000000e-01 : f32
    %243 = vector.broadcast %cst_103 : f32 to vector<8x128xf32>
    %244 = arith.addf %242, %243 : vector<8x128xf32>
    %245 = vector.extract_strided_slice %228 {offsets = [0, 256], sizes = [8, 128], strides = [1, 1]} : vector<8x512xf32> to vector<8x128xf32>
    %246 = math.tanh %245 : vector<8x128xf32>
    %247 = vector.extract_strided_slice %228 {offsets = [0, 384], sizes = [8, 128], strides = [1, 1]} : vector<8x512xf32> to vector<8x128xf32>
    %cst_104 = arith.constant 5.000000e-01 : f32
    %248 = vector.broadcast %cst_104 : f32 to vector<8x128xf32>
    %249 = arith.mulf %248, %247 : vector<8x128xf32>
    %250 = math.tanh %249 : vector<8x128xf32>
    %cst_105 = arith.constant 5.000000e-01 : f32
    %251 = vector.broadcast %cst_105 : f32 to vector<8x128xf32>
    %252 = arith.mulf %251, %250 : vector<8x128xf32>
    %cst_106 = arith.constant 5.000000e-01 : f32
    %253 = vector.broadcast %cst_106 : f32 to vector<8x128xf32>
    %254 = arith.addf %252, %253 : vector<8x128xf32>
    %255 = arith.mulf %244, %215 : vector<8x128xf32>
    %256 = arith.mulf %236, %246 : vector<8x128xf32>
    %257 = arith.addf %255, %256 : vector<8x128xf32>
    %258 = math.tanh %257 : vector<8x128xf32>
    %259 = arith.mulf %254, %258 : vector<8x128xf32>
    %260 = arith.index_cast %c5_i32 : i32 to index
    %c0_107 = arith.constant 0 : index
    %c0_108 = arith.constant 0 : index
    %261 = vector.load %arg10[%260, %c0_107, %c0_108] : memref<8x8x128xf32, #tpu.memory_space<vmem>>, vector<1x8x128xf32>
    %262 = vector.shape_cast %261 : vector<1x8x128xf32> to vector<8x128xf32>
    %263 = vector.shape_cast %259 : vector<8x128xf32> to vector<1x8x128xf32>
    tpu.vector_store %arg10[%260, %c0_107, %c0_108], %263 {strides = array<i32>} : memref<8x8x128xf32, #tpu.memory_space<vmem>>, vector<1x8x128xf32>,
    %c6_i32 = arith.constant 6 : i32
    %264 = arith.index_cast %c6_i32 : i32 to index
    %c0_109 = arith.constant 0 : index
    %c0_110 = arith.constant 0 : index
    %265 = vector.load %arg11[%264, %c0_109, %c0_110] : memref<8x8x512xf32, #tpu.memory_space<vmem>>, vector<1x8x512xf32>
    %266 = vector.shape_cast %265 : vector<1x8x512xf32> to vector<8x512xf32>
    %267 = arith.truncf %259 : vector<8x128xf32> to vector<8x128xbf16>
    %c0_111 = arith.constant 0 : index
    %c0_112 = arith.constant 0 : index
    %268 = vector.load %arg5[%c0_111, %c0_112] : memref<128x512xbf16, #tpu.memory_space<vmem>>, vector<128x512xbf16>
    %cst_113 = arith.constant dense<0.000000e+00> : vector<8x512xf32>
    %269 = tpu.matmul %267, %268, %cst_113 {dimension_numbers = #tpu.dot_dimension_numbers<[1], [0], [0], [1], [0, 0, 1, 1], [], []>} : vector<8x128xbf16>, vector<128x512xbf16>, vector<8x512xf32> -> vector<8x512xf32>
    %270 = arith.addf %266, %269 : vector<8x512xf32>
    %271 = vector.extract_strided_slice %270 {offsets = [0, 0], sizes = [8, 128], strides = [1, 1]} : vector<8x512xf32> to vector<8x128xf32>
    %cst_114 = arith.constant 5.000000e-01 : f32
    %272 = vector.broadcast %cst_114 : f32 to vector<8x128xf32>
    %273 = arith.mulf %272, %271 : vector<8x128xf32>
    %274 = math.tanh %273 : vector<8x128xf32>
    %cst_115 = arith.constant 5.000000e-01 : f32
    %275 = vector.broadcast %cst_115 : f32 to vector<8x128xf32>
    %276 = arith.mulf %275, %274 : vector<8x128xf32>
    %cst_116 = arith.constant 5.000000e-01 : f32
    %277 = vector.broadcast %cst_116 : f32 to vector<8x128xf32>
    %278 = arith.addf %276, %277 : vector<8x128xf32>
    %279 = vector.extract_strided_slice %270 {offsets = [0, 128], sizes = [8, 128], strides = [1, 1]} : vector<8x512xf32> to vector<8x128xf32>
    %cst_117 = arith.constant 5.000000e-01 : f32
    %280 = vector.broadcast %cst_117 : f32 to vector<8x128xf32>
    %281 = arith.mulf %280, %279 : vector<8x128xf32>
    %282 = math.tanh %281 : vector<8x128xf32>
    %cst_118 = arith.constant 5.000000e-01 : f32
    %283 = vector.broadcast %cst_118 : f32 to vector<8x128xf32>
    %284 = arith.mulf %283, %282 : vector<8x128xf32>
    %cst_119 = arith.constant 5.000000e-01 : f32
    %285 = vector.broadcast %cst_119 : f32 to vector<8x128xf32>
    %286 = arith.addf %284, %285 : vector<8x128xf32>
    %287 = vector.extract_strided_slice %270 {offsets = [0, 256], sizes = [8, 128], strides = [1, 1]} : vector<8x512xf32> to vector<8x128xf32>
    %288 = math.tanh %287 : vector<8x128xf32>
    %289 = vector.extract_strided_slice %270 {offsets = [0, 384], sizes = [8, 128], strides = [1, 1]} : vector<8x512xf32> to vector<8x128xf32>
    %cst_120 = arith.constant 5.000000e-01 : f32
    %290 = vector.broadcast %cst_120 : f32 to vector<8x128xf32>
    %291 = arith.mulf %290, %289 : vector<8x128xf32>
    %292 = math.tanh %291 : vector<8x128xf32>
    %cst_121 = arith.constant 5.000000e-01 : f32
    %293 = vector.broadcast %cst_121 : f32 to vector<8x128xf32>
    %294 = arith.mulf %293, %292 : vector<8x128xf32>
    %cst_122 = arith.constant 5.000000e-01 : f32
    %295 = vector.broadcast %cst_122 : f32 to vector<8x128xf32>
    %296 = arith.addf %294, %295 : vector<8x128xf32>
    %297 = arith.mulf %286, %257 : vector<8x128xf32>
    %298 = arith.mulf %278, %288 : vector<8x128xf32>
    %299 = arith.addf %297, %298 : vector<8x128xf32>
    %300 = math.tanh %299 : vector<8x128xf32>
    %301 = arith.mulf %296, %300 : vector<8x128xf32>
    %302 = arith.index_cast %c6_i32 : i32 to index
    %c0_123 = arith.constant 0 : index
    %c0_124 = arith.constant 0 : index
    %303 = vector.load %arg10[%302, %c0_123, %c0_124] : memref<8x8x128xf32, #tpu.memory_space<vmem>>, vector<1x8x128xf32>
    %304 = vector.shape_cast %303 : vector<1x8x128xf32> to vector<8x128xf32>
    %305 = vector.shape_cast %301 : vector<8x128xf32> to vector<1x8x128xf32>
    tpu.vector_store %arg10[%302, %c0_123, %c0_124], %305 {strides = array<i32>} : memref<8x8x128xf32, #tpu.memory_space<vmem>>, vector<1x8x128xf32>,
    %c7_i32 = arith.constant 7 : i32
    %306 = arith.index_cast %c7_i32 : i32 to index
    %c0_125 = arith.constant 0 : index
    %c0_126 = arith.constant 0 : index
    %307 = vector.load %arg11[%306, %c0_125, %c0_126] : memref<8x8x512xf32, #tpu.memory_space<vmem>>, vector<1x8x512xf32>
    %308 = vector.shape_cast %307 : vector<1x8x512xf32> to vector<8x512xf32>
    %309 = arith.truncf %301 : vector<8x128xf32> to vector<8x128xbf16>
    %c0_127 = arith.constant 0 : index
    %c0_128 = arith.constant 0 : index
    %310 = vector.load %arg5[%c0_127, %c0_128] : memref<128x512xbf16, #tpu.memory_space<vmem>>, vector<128x512xbf16>
    %cst_129 = arith.constant dense<0.000000e+00> : vector<8x512xf32>
    %311 = tpu.matmul %309, %310, %cst_129 {dimension_numbers = #tpu.dot_dimension_numbers<[1], [0], [0], [1], [0, 0, 1, 1], [], []>} : vector<8x128xbf16>, vector<128x512xbf16>, vector<8x512xf32> -> vector<8x512xf32>
    %312 = arith.addf %308, %311 : vector<8x512xf32>
    %313 = vector.extract_strided_slice %312 {offsets = [0, 0], sizes = [8, 128], strides = [1, 1]} : vector<8x512xf32> to vector<8x128xf32>
    %cst_130 = arith.constant 5.000000e-01 : f32
    %314 = vector.broadcast %cst_130 : f32 to vector<8x128xf32>
    %315 = arith.mulf %314, %313 : vector<8x128xf32>
    %316 = math.tanh %315 : vector<8x128xf32>
    %cst_131 = arith.constant 5.000000e-01 : f32
    %317 = vector.broadcast %cst_131 : f32 to vector<8x128xf32>
    %318 = arith.mulf %317, %316 : vector<8x128xf32>
    %cst_132 = arith.constant 5.000000e-01 : f32
    %319 = vector.broadcast %cst_132 : f32 to vector<8x128xf32>
    %320 = arith.addf %318, %319 : vector<8x128xf32>
    %321 = vector.extract_strided_slice %312 {offsets = [0, 128], sizes = [8, 128], strides = [1, 1]} : vector<8x512xf32> to vector<8x128xf32>
    %cst_133 = arith.constant 5.000000e-01 : f32
    %322 = vector.broadcast %cst_133 : f32 to vector<8x128xf32>
    %323 = arith.mulf %322, %321 : vector<8x128xf32>
    %324 = math.tanh %323 : vector<8x128xf32>
    %cst_134 = arith.constant 5.000000e-01 : f32
    %325 = vector.broadcast %cst_134 : f32 to vector<8x128xf32>
    %326 = arith.mulf %325, %324 : vector<8x128xf32>
    %cst_135 = arith.constant 5.000000e-01 : f32
    %327 = vector.broadcast %cst_135 : f32 to vector<8x128xf32>
    %328 = arith.addf %326, %327 : vector<8x128xf32>
    %329 = vector.extract_strided_slice %312 {offsets = [0, 256], sizes = [8, 128], strides = [1, 1]} : vector<8x512xf32> to vector<8x128xf32>
    %330 = math.tanh %329 : vector<8x128xf32>
    %331 = vector.extract_strided_slice %312 {offsets = [0, 384], sizes = [8, 128], strides = [1, 1]} : vector<8x512xf32> to vector<8x128xf32>
    %cst_136 = arith.constant 5.000000e-01 : f32
    %332 = vector.broadcast %cst_136 : f32 to vector<8x128xf32>
    %333 = arith.mulf %332, %331 : vector<8x128xf32>
    %334 = math.tanh %333 : vector<8x128xf32>
    %cst_137 = arith.constant 5.000000e-01 : f32
    %335 = vector.broadcast %cst_137 : f32 to vector<8x128xf32>
    %336 = arith.mulf %335, %334 : vector<8x128xf32>
    %cst_138 = arith.constant 5.000000e-01 : f32
    %337 = vector.broadcast %cst_138 : f32 to vector<8x128xf32>
    %338 = arith.addf %336, %337 : vector<8x128xf32>
    %339 = arith.mulf %328, %299 : vector<8x128xf32>
    %340 = arith.mulf %320, %330 : vector<8x128xf32>
    %341 = arith.addf %339, %340 : vector<8x128xf32>
    %342 = math.tanh %341 : vector<8x128xf32>
    %343 = arith.mulf %338, %342 : vector<8x128xf32>
    %344 = arith.index_cast %c7_i32 : i32 to index
    %c0_139 = arith.constant 0 : index
    %c0_140 = arith.constant 0 : index
    %345 = vector.load %arg10[%344, %c0_139, %c0_140] : memref<8x8x128xf32, #tpu.memory_space<vmem>>, vector<1x8x128xf32>
    %346 = vector.shape_cast %345 : vector<1x8x128xf32> to vector<8x128xf32>
    %347 = vector.shape_cast %343 : vector<8x128xf32> to vector<1x8x128xf32>
    tpu.vector_store %arg10[%344, %c0_139, %c0_140], %347 {strides = array<i32>} : memref<8x8x128xf32, #tpu.memory_space<vmem>>, vector<1x8x128xf32>,
    %c8_i32 = arith.constant 8 : i32
    %c0_141 = arith.constant 0 : index
    %c0_142 = arith.constant 0 : index
    %348 = vector.load %arg7[%c0_141, %c0_142] : memref<128x16xf32, #tpu.memory_space<vmem>>, vector<128x16xf32>
    %cst_143 = arith.constant dense<0.000000e+00> : vector<8x16xf32>
    %349 = tpu.matmul %343, %348, %cst_143 {dimension_numbers = #tpu.dot_dimension_numbers<[1], [0], [0], [1], [0, 0, 1, 1], [], []>} : vector<8x128xf32>, vector<128x16xf32>, vector<8x16xf32> -> vector<8x16xf32>
    %c0_144 = arith.constant 0 : index
    %c0_145 = arith.constant 0 : index
    %350 = vector.load %arg8[%c0_144, %c0_145] : memref<1x16xf32, #tpu.memory_space<vmem>>, vector<1x16xf32>
    %351 = vector.broadcast %350 : vector<1x16xf32> to vector<8x16xf32>
    %352 = arith.addf %349, %351 : vector<8x16xf32>
    %c0_146 = arith.constant 0 : index
    %c0_147 = arith.constant 0 : index
    %353 = vector.load %arg9[%c0_146, %c0_147] : memref<8x16xf32, #tpu.memory_space<vmem>>, vector<8x16xf32>
    tpu.vector_store %arg9[%c0_146, %c0_147], %352 {strides = array<i32>} : memref<8x16xf32, #tpu.memory_space<vmem>>, vector<8x16xf32>,
    return
  }
  func.func @transform_0(%arg0: i32) -> (i32, i32, i32) {
    %c0_i32 = arith.constant 0 : i32
    %c0_i32_0 = arith.constant 0 : i32
    %c0_i32_1 = arith.constant 0 : i32
    return %c0_i32, %arg0, %c0_i32_0 : i32, i32, i32
  }
  func.func @transform_1(%arg0: i32) -> (i32, i32) {
    %c0_i32 = arith.constant 0 : i32
    %c0_i32_0 = arith.constant 0 : i32
    return %arg0, %c0_i32 : i32, i32
  }
  func.func @transform_2(%arg0: i32) -> (i32, i32) {
    %c0_i32 = arith.constant 0 : i32
    %c0_i32_0 = arith.constant 0 : i32
    return %arg0, %c0_i32 : i32, i32
  }
  func.func @transform_3(%arg0: i32) -> (i32, i32) {
    %c0_i32 = arith.constant 0 : i32
    %c0_i32_0 = arith.constant 0 : i32
    %c0_i32_1 = arith.constant 0 : i32
    return %c0_i32, %c0_i32_0 : i32, i32
  }
  func.func @transform_4(%arg0: i32) -> (i32, i32) {
    %c0_i32 = arith.constant 0 : i32
    %c0_i32_0 = arith.constant 0 : i32
    %c0_i32_1 = arith.constant 0 : i32
    return %c0_i32, %c0_i32_0 : i32, i32
  }
  func.func @transform_5(%arg0: i32) -> (i32, i32) {
    %c0_i32 = arith.constant 0 : i32
    %c0_i32_0 = arith.constant 0 : i32
    %c0_i32_1 = arith.constant 0 : i32
    return %c0_i32, %c0_i32_0 : i32, i32
  }
  func.func @transform_6(%arg0: i32) -> (i32, i32) {
    %c0_i32 = arith.constant 0 : i32
    %c0_i32_0 = arith.constant 0 : i32
    %c0_i32_1 = arith.constant 0 : i32
    return %c0_i32, %c0_i32_0 : i32, i32
  }
  func.func @transform_7(%arg0: i32) -> (i32, i32) {
    %c0_i32 = arith.constant 0 : i32
    %c0_i32_0 = arith.constant 0 : i32
    %c0_i32_1 = arith.constant 0 : i32
    return %c0_i32, %c0_i32_0 : i32, i32
  }
  func.func @transform_8(%arg0: i32) -> (i32, i32) {
    %c0_i32 = arith.constant 0 : i32
    %c0_i32_0 = arith.constant 0 : i32
    return %arg0, %c0_i32 : i32, i32
  }
  func.func @transform_9(%arg0: i32) -> (i32, i32, i32) {
    %c0_i32 = arith.constant 0 : i32
    %c0_i32_0 = arith.constant 0 : i32
    %c0_i32_1 = arith.constant 0 : i32
    return %c0_i32, %arg0, %c0_i32_0 : i32, i32, i32
  }
}

</mosaic_0001>

<bundles_post_ra>
// kernel: tpu_custom_call.1
= control target key start
LH: loop header
LB: loop body
LE: loop exit
PB: predicated region body
PF: predicated region fallthrough
CT: control target
= control target key end

     0   :  { %15 = vsyncpa [#allocation4], 0  ;;  %s4159_s0 = inlined_call_operand.vmem [shape: f32[8,8,16], index: 0, kind: input, shape index: {}]   ;;  %s4160_s1 = inlined_call_operand.vmem [shape: f32[8,128], index: 1, kind: input, shape index: {}]   ;;  %s4161_s2 = inlined_call_operand.vmem [shape: f32[8,128], index: 2, kind: input, shape index: {}]   ;;  %s4162_s3 = inlined_call_operand.vmem [shape: bf16[16,512], index: 3, kind: input, shape index: {}]   ;;  %s4163_s4 = inlined_call_operand.hbm [shape: bf16[128,512], index: 4, kind: input, shape index: {}]   ;;  %s4164_s5 = inlined_call_operand.vmem [shape: f32[1,512], index: 5, kind: input, shape index: {}]   ;;  %s4165_s6 = inlined_call_operand.vmem [shape: f32[128,16], index: 6, kind: input, shape index: {}]   ;;  %s4166_s7 = inlined_call_operand.vmem [shape: f32[1,16], index: 7, kind: input, shape index: {}]   ;;  %s4167_s8 = inlined_call_operand.hbm [shape: f32[8,16], index: 8, kind: output, shape index: {0}]   ;;  %s4168_s9 = inlined_call_operand.hbm [shape: f32[8,8,128], index: 9, kind: output, shape index: {1}]  }
   0x1   :  { %16 = vsyncpa [#allocation5], 0 }
   0x2   :  { %17 = vsyncpa [#allocation8], 0  ;;  %s3433_s30 = smov [#allocation3]  }
   0x3   :  { %s31_s10 = sshll.u32 %s3433_s30, 4  ;;  %s32_s10 = int_to_ptr.vmem [resolvable:$true] %s31_s10 }
   0x4   :  { %s3375_s11 = scalar_lea.vmem %s32_s10, 4096  ;;  %p3380_p1 = scmp.lt.s32.totalorder %s32_s10, %s32_s10 }
   0x5   :  { %p3376_p0 = scmp.ne.s32.totalorder %s32_s10, %s3375_s11  ;;  %p3381_p2 = scmp.lt.s32.totalorder %s3375_s11, %s3375_s11 }
   0x7   :  { %p3382_p3 = por %p3381_p2, %p3380_p1 }
   0x9   :  { %p3383_p4 = pnand %p3382_p3, %p3376_p0 }
   0xb   :  { %3386 = shalt.err (!%p3383_p4)
}
   0xc   :  { %s3434_s12 = smov 256   ;;  %s3435_s13 = smov 16  }
   0xd   :  { %37 = dma.hbm_to_vmem [thread:$0]  %s4163_s4, 4096, %s32_s10, [#allocation4], %s3434_s12, %s3434_s12, %s3435_s13  }
   0xe   :  { %3427 = dma.done.wait [#allocation4], 4096  }
   0xf   :  { %3428 = vsyncadd [#allocation4], 4294963200  ;;  %v4169_v0 = vmov 0   ;;  %v3185_v1 = vld [vmem:[%s4162_s3 + $0x4] ss:$16 sps:$4 sm:$0xff]   ;;  %v49_v6 = vld [vmem:[%s4159_s0 + $0x8] sm:$0xff]  ;;  %v66_v51 = vlaneseq }
  0x10   :  { %151 = vmatprep.mubr.bf16.mxu0 %v4169_v0  ;;  %224 = vmatprep.mubr.bf16.mxu1 %v4169_v0  ;;  %v3187_v2 = vld [vmem:[%s4162_s3 + $0xc] ss:$16 sps:$4 sm:$0xff]   ;;  %v3189_v3 = vld [vmem:[%s4162_s3] ss:$16 sps:$4 sm:$0xff]   ;;  %v3190_v4 = vld [vmem:[%s4162_s3 + $0x8] ss:$16 sps:$4 sm:$0xff]  }
  0x11   :  { %133 = vmatprep.subr.bf16.mxu0 %v3185_v1  ;;  %v48_v5 = vld [vmem:[%s4159_s0] sm:$0xff]  ;;  %206 = vmatprep.subr.bf16.mxu1 %v3187_v2  ;;  %vm106_vm0 = vcmask 130048   ;;  %v3520_v10 = vld [vmem:[#allocation3 + $0xe8] ss:$16 sps:$4 sm:$0xff]   ;;  %v3522_v11 = vld [vmem:[#allocation3 + $0xec] ss:$16 sps:$4 sm:$0xff]  }
  0x12   :  { %134 = vmatpush1.bf16.msra.mxu0 %v3189_v3  ;;  %207 = vmatpush1.bf16.msra.mxu1 %v3190_v4  ;;  %v56_v7 = vpack.c.bf16 %v49_v6, %v48_v5  ;;  %v3516_v8 = vld [vmem:[#allocation3 + $0xe0] ss:$16 sps:$4 sm:$0xff]   ;;  %v3518_v9 = vld [vmem:[#allocation3 + $0xe4] ss:$16 sps:$4 sm:$0xff]   ;;  %v3533_v14 = vld [vmem:[#allocation3 + $0xc8] ss:$16 sps:$4 sm:$0xff]  }
  0x13   :  { %496 = vmatprep.subr.bf16.mxu0 %v3518_v9  ;;  %v3525_v12 = vld [vmem:[#allocation3 + $0xc0] ss:$16 sps:$4 sm:$0xff]   ;;  %v3529_v13 = vld [vmem:[#allocation3 + $0xc4] ss:$16 sps:$4 sm:$0xff]   ;;  %537 = vmatprep.subr.bf16.mxu1 %v3522_v11  ;;  %v3535_v15 = vld [vmem:[#allocation3 + $0xcc] ss:$16 sps:$4 sm:$0xff]  }
  0x14   :  { %v50_v16 = vld [vmem:[%s4159_s0 + $0x10] sm:$0xff]  ;;  %v51_v17 = vld [vmem:[%s4159_s0 + $0x18] sm:$0xff]  ;;  %v52_v26 = vld [vmem:[%s4159_s0 + $0x20] sm:$0xff]  ;;  %v67_v52 = vshrl.u32 %v66_v51, 7  ;;  %vm3438_vm1 = vmmov 0  }
  0x15   :  { %2858 = vmatmul.mubr.msk.bf16.vlgmr.msra.gmra.mxu0 %vm106_vm0, %v56_v7  ;;  %2862 = vmatmul.mubr.msk.bf16.vlgmr.msra.gmra.mxu1 %vm106_vm0, %v56_v7  ;;  %v3547_v18 = vld [vmem:[#allocation3 + $0xa4] ss:$16 sps:$4 sm:$0xff]   ;;  %v57_v19 = vpack.c.bf16 %v51_v17, %v50_v16  ;;  %v3550_v20 = vld [vmem:[#allocation3 + $0xa0] ss:$16 sps:$4 sm:$0xff]   ;;  %v3552_v21 = vld [vmem:[#allocation3 + $0xac] ss:$16 sps:$4 sm:$0xff]  }
  0x16   :  { %497 = vmatpush1.bf16.msra.mxu0 %v3516_v8  ;;  %538 = vmatpush1.bf16.msra.mxu1 %v3520_v10  ;;  %v3555_v22 = vld [vmem:[#allocation3 + $0xa8] ss:$16 sps:$4 sm:$0xff]   ;;  %v3559_v23 = vld [vmem:[#allocation3 + $0x84] ss:$16 sps:$4 sm:$0xff]   ;;  %v3562_v24 = vld [vmem:[#allocation3 + $0x8c] ss:$16 sps:$4 sm:$0xff]  }
  0x17   :  { %498 = vmatprep.subr.bf16.mxu0 %v3529_v13  ;;  %539 = vmatprep.subr.bf16.mxu1 %v3535_v15  ;;  %v3566_v25 = vld [vmem:[#allocation3 + $0x80] ss:$16 sps:$4 sm:$0xff]   ;;  %v53_v27 = vld [vmem:[%s4159_s0 + $0x28] sm:$0xff]  ;;  %v3580_v29 = vld [vmem:[#allocation3 + $0x64] ss:$16 sps:$4 sm:$0xff]   ;;  %v76_v53 = vsub.s32 2, %v67_v52 }
  0x18   :  { %161 = vmatprep.mubr.bf16.mxu0 %v4169_v0  ;;  %234 = vmatprep.mubr.bf16.mxu1 %v4169_v0  ;;  %v3578_v28 = vld [vmem:[#allocation3 + $0x88] ss:$16 sps:$4 sm:$0xff]   ;;  %v3584_v30 = vld [vmem:[#allocation3 + $0x6c] ss:$16 sps:$4 sm:$0xff]   ;;  %v58_v31 = vpack.c.bf16 %v53_v27, %v52_v26  ;;  %v3587_v32 = vld [vmem:[#allocation3 + $0x60] ss:$16 sps:$4 sm:$0xff]  }
  0x19   :  { %v3589_v33 = vld [vmem:[#allocation3 + $0x68] ss:$16 sps:$4 sm:$0xff]   ;;  %v3593_v34 = vld [vmem:[#allocation3 + $0x44] ss:$16 sps:$4 sm:$0xff]   ;;  %v3596_v35 = vld [vmem:[#allocation3 + $0x40] ss:$16 sps:$4 sm:$0xff]  }
  0x1a   :  { %499 = vmatpush1.bf16.msra.mxu0 %v3525_v12  ;;  %540 = vmatpush1.bf16.msra.mxu1 %v3533_v14  ;;  %v3598_v36 = vld [vmem:[#allocation3 + $0x4c] ss:$16 sps:$4 sm:$0xff]   ;;  %v3602_v37 = vld [vmem:[#allocation3 + $0x48] ss:$16 sps:$4 sm:$0xff]   ;;  %v54_v38 = vld [vmem:[%s4159_s0 + $0x30] sm:$0xff]  ;;  %v68_v54 = vsub.s32 0, %v67_v52 }
  0x1b   :  { %500 = vmatprep.subr.bf16.mxu0 %v3547_v18  ;;  %541 = vmatprep.subr.bf16.mxu1 %v3552_v21  ;;  %v55_v39 = vld [vmem:[%s4159_s0 + $0x38] sm:$0xff]  ;;  %v3614_v40 = vld [vmem:[#allocation3 + $0x24] ss:$16 sps:$4 sm:$0xff]   ;;  %v3618_v41 = vld [vmem:[#allocation3 + $0x20] ss:$16 sps:$4 sm:$0xff]   ;;  %v80_v55 = vsub.s32 3, %v67_v52 }
  0x1c   :  { %v3620_v42 = vld [vmem:[#allocation3 + $0x2c] ss:$16 sps:$4 sm:$0xff]   ;;  %v59_v43 = vpack.c.bf16 %v55_v39, %v54_v38  ;;  %v3622_v44 = vld [vmem:[#allocation3 + $0x28] ss:$16 sps:$4 sm:$0xff]   ;;  %v3624_v45 = vld [vmem:[#allocation3 + $0x4] ss:$16 sps:$4 sm:$0xff]  }
  0x1d   :  { %2859 = vmatmul.mubr.msk.bf16.gmra.mxu0 %vm106_vm0, %v57_v19  ;;  %2863 = vmatmul.mubr.msk.bf16.gmra.mxu1 %vm106_vm0, %v57_v19  ;;  %v3627_v46 = vld [vmem:[#allocation3 + $0xc] ss:$16 sps:$4 sm:$0xff]   ;;  %v3632_v47 = vld [vmem:[#allocation3] ss:$16 sps:$4 sm:$0xff]   ;;  %v3639_v49 = vld [vmem:[#allocation3 + $0x8] ss:$16 sps:$4 sm:$0xff]  }
  0x1e   :  { %501 = vmatpush1.bf16.msra.mxu0 %v3550_v20  ;;  %171 = vmatprep.mubr.bf16.mxu0 %v4169_v0  ;;  %v297_v48 = vld [vmem:[%s4160_s1] sm:$0xff]  ;;  %v72_v60 = vsub.s32 1, %v67_v52 }
  0x1f   :  { %542 = vmatpush1.bf16.msra.mxu1 %v3555_v22  ;;  %502 = vmatprep.subr.bf16.mxu0 %v3559_v23  ;;  %v303_v50 = vpack.c.bf16 %v297_v48, %v297_v48  ;;  %v64_v56 = vld [vmem:[%s4164_s5] sm:$0xf] }
  0x20   :  { %543 = vmatprep.subr.bf16.mxu1 %v3562_v24  ;;  %244 = vmatprep.mubr.bf16.mxu1 %v4169_v0  ;;  %v3692_v59 = vrot.slane %v64_v56, %v76_v53  ;;  %v69_v63 = vrot.slane %v64_v56, %v68_v54  ;;  %v3698_v1 = vrot.slane %v64_v56, %v80_v55 }
  0x21   :  { %v73_v4 = vrot.slane %v64_v56, %v72_v60 }
  0x22   :  { %503 = vmatpush1.bf16.msra.mxu0 %v3566_v25 }
  0x23   :  { %544 = vmatpush1.bf16.msra.mxu1 %v3578_v28  ;;  %504 = vmatprep.subr.bf16.mxu0 %v3580_v29 }
  0x24   :  { %545 = vmatprep.subr.bf16.mxu1 %v3584_v30 }
  0x25   :  { %2860 = vmatmul.mubr.msk.bf16.gmra.mxu0 %vm106_vm0, %v58_v31  ;;  %2864 = vmatmul.mubr.msk.bf16.gmra.mxu1 %vm106_vm0, %v58_v31 }
  0x26   :  { %505 = vmatpush1.bf16.msra.mxu0 %v3587_v32  ;;  %181 = vmatprep.mubr.bf16.mxu0 %v4169_v0 }
  0x27   :  { %546 = vmatpush1.bf16.msra.mxu1 %v3589_v33  ;;  %506 = vmatprep.subr.bf16.mxu0 %v3593_v34 }
  0x28   :  { %547 = vmatprep.subr.bf16.mxu1 %v3598_v36  ;;  %254 = vmatprep.mubr.bf16.mxu1 %v4169_v0 }
  0x2a   :  { %507 = vmatpush1.bf16.msra.mxu0 %v3596_v35 }
  0x2b   :  { %548 = vmatpush1.bf16.msra.mxu1 %v3602_v37  ;;  %508 = vmatprep.subr.bf16.mxu0 %v3614_v40 }
  0x2c   :  { %549 = vmatprep.subr.bf16.mxu1 %v3620_v42 }
  0x2d   :  { %2861 = vmatmul.mubr.msk.bf16.gmra.mxu0 %vm106_vm0, %v59_v43  ;;  %2865 = vmatmul.mubr.msk.bf16.gmra.mxu1 %vm106_vm0, %v59_v43 }
  0x2e   :  { %509 = vmatpush1.bf16.msra.mxu0 %v3618_v41  ;;  %528 = vmatprep.mubr.bf16.mxu0 %v4169_v0 }
  0x2f   :  { %550 = vmatpush1.bf16.msra.mxu1 %v3622_v44  ;;  %510 = vmatprep.subr.bf16.mxu0 %v3624_v45 }
  0x30   :  { %551 = vmatprep.subr.bf16.mxu1 %v3627_v46  ;;  %569 = vmatprep.mubr.bf16.mxu1 %v4169_v0 }
  0x32   :  { %511 = vmatpush1.bf16.msra.mxu0 %v3632_v47 }
  0x33   :  { %552 = vmatpush1.bf16.msra.mxu1 %v3639_v49  ;;  %799 = vmatprep.subr.bf16.mxu0 %v3518_v9 }
  0x34   :  { %840 = vmatprep.subr.bf16.mxu1 %v3522_v11 }
  0x35   :  { %529 = vmatmul.mubr.bf16.vlgmr.msra.gmra.mxu0 %v303_v50 }
  0x36   :  { %570 = vmatmul.mubr.bf16.vlgmr.msra.gmra.mxu1 %v303_v50  ;;  %800 = vmatpush1.bf16.msra.mxu0 %v3516_v8 }
  0x37   :  { %841 = vmatpush1.bf16.msra.mxu1 %v3520_v10  ;;  %801 = vmatprep.subr.bf16.mxu0 %v3529_v13 }
  0x38   :  { %842 = vmatprep.subr.bf16.mxu1 %v3535_v15  ;;  %831 = vmatprep.mubr.bf16.mxu0 %v4169_v0 }
  0x39   :  { %872 = vmatprep.mubr.bf16.mxu1 %v4169_v0 }
  0x3a   :  { %802 = vmatpush1.bf16.msra.mxu0 %v3525_v12 }
  0x3b   :  { %843 = vmatpush1.bf16.msra.mxu1 %v3533_v14  ;;  %803 = vmatprep.subr.bf16.mxu0 %v3547_v18 }
  0x3c   :  { %844 = vmatprep.subr.bf16.mxu1 %v3552_v21 }
  0x3e   :  { %804 = vmatpush1.bf16.msra.mxu0 %v3550_v20 }
  0x3f   :  { %845 = vmatpush1.bf16.msra.mxu1 %v3555_v22  ;;  %805 = vmatprep.subr.bf16.mxu0 %v3559_v23 }
  0x40   :  { %846 = vmatprep.subr.bf16.mxu1 %v3562_v24 }
  0x42   :  { %806 = vmatpush1.bf16.msra.mxu0 %v3566_v25 }
  0x43   :  { %847 = vmatpush1.bf16.msra.mxu1 %v3578_v28  ;;  %807 = vmatprep.subr.bf16.mxu0 %v3580_v29 }
  0x44   :  { %848 = vmatprep.subr.bf16.mxu1 %v3584_v30 }
  0x46   :  { %808 = vmatpush1.bf16.msra.mxu0 %v3587_v32 }
  0x47   :  { %849 = vmatpush1.bf16.msra.mxu1 %v3589_v33  ;;  %809 = vmatprep.subr.bf16.mxu0 %v3593_v34 }
  0x48   :  { %850 = vmatprep.subr.bf16.mxu1 %v3598_v36 }
  0x4a   :  { %810 = vmatpush1.bf16.msra.mxu0 %v3596_v35 }
  0x4b   :  { %851 = vmatpush1.bf16.msra.mxu1 %v3602_v37  ;;  %811 = vmatprep.subr.bf16.mxu0 %v3614_v40 }
  0x4c   :  { %852 = vmatprep.subr.bf16.mxu1 %v3620_v42 }
  0x4e   :  { %812 = vmatpush1.bf16.msra.mxu0 %v3618_v41 }
  0x4f   :  { %853 = vmatpush1.bf16.msra.mxu1 %v3622_v44  ;;  %813 = vmatprep.subr.bf16.mxu0 %v3624_v45 }
  0x50   :  { %854 = vmatprep.subr.bf16.mxu1 %v3627_v46 }
  0x52   :  { %814 = vmatpush1.bf16.msra.mxu0 %v3632_v47 }
  0x53   :  { %855 = vmatpush1.bf16.msra.mxu1 %v3639_v49  ;;  %1103 = vmatprep.subr.bf16.mxu0 %v3518_v9 }
  0x54   :  { %1144 = vmatprep.subr.bf16.mxu1 %v3522_v11 }
  0xd5   :  { %v3688_v57 = vpop.f32.mrf.mxu0  ;;  %v3690_v58 = vpop.f32.mrf.mxu1 }
  0xd7   :  { %v3694_v61 = vpop.f32.mrf.mxu0  ;;  %v3696_v62 = vpop.f32.mrf.mxu1 }
  0xd9   :  { %v157_v2 = vpop.f32.mrf.mxu0  ;;  %v230_v3 = vpop.f32.mrf.mxu1 }
  0xda   :  { %v3700_v5 = vadd.f32 %v157_v2, %v69_v63  ;;  %v3703_v6 = vadd.f32 %v230_v3, %v3692_v59 }
  0xdb   :  { %v159_v7 = vpop.f32.mrf.mxu0  ;;  %v232_v16 = vpop.f32.mrf.mxu1 }
  0xdc   :  { %v3705_v17 = vadd.f32 %v159_v7, %v73_v4  ;;  %v3708_v19 = vadd.f32 %v232_v16, %v3698_v1 }
  0xdd   :  { %v163_v26 = vpop.f32.mrf.mxu0  ;;  %v236_v27 = vpop.f32.mrf.mxu1 }
  0xde   :  { %v3710_v31 = vadd.f32 %v163_v26, %v69_v63  ;;  %v3713_v38 = vadd.f32 %v236_v27, %v3692_v59 }
  0xdf   :  { %v165_v39 = vpop.f32.mrf.mxu0  ;;  %v238_v43 = vpop.f32.mrf.mxu1 }
  0xe0   :  { %v3715_v48 = vadd.f32 %v165_v39, %v73_v4  ;;  %v3718_v50 = vadd.f32 %v238_v43, %v3698_v1 }
  0xe1   :  { %v167_v51 = vpop.f32.mrf.mxu0  ;;  %v240_v52 = vpop.f32.mrf.mxu1 }
  0xe2   :  { %v3720_v53 = vadd.f32 %v167_v51, %v69_v63  ;;  %v3723_v54 = vadd.f32 %v240_v52, %v3692_v59 }
  0xe3   :  { %v169_v55 = vpop.f32.mrf.mxu0  ;;  %v242_v56 = vpop.f32.mrf.mxu1 }
  0xe4   :  { %4171 = vst [vmem:[#allocation12_spill] sm:$0xff] %v3723_v54  ;;  %v3725_v60 = vadd.f32 %v169_v55, %v73_v4  ;;  %v3728_v2 = vadd.f32 %v242_v56, %v3698_v1 }
  0xe5   :  { %v173_v3 = vpop.f32.mrf.mxu0  ;;  %v246_v7 = vpop.f32.mrf.mxu1 }
  0xe6   :  { %4172 = vst [vmem:[#allocation13_spill] sm:$0xff] %v3725_v60  ;;  %4173 = vst [vmem:[#allocation14_spill] sm:$0xff] %v3728_v2  ;;  %v3730_v16 = vadd.f32 %v173_v3, %v69_v63  ;;  %v3733_v26 = vadd.f32 %v246_v7, %v3692_v59 }
  0xe7   :  { %v175_v27 = vpop.f32.mrf.mxu0  ;;  %v248_v39 = vpop.f32.mrf.mxu1 }
  0xe8   :  { %4174 = vst [vmem:[#allocation15_spill] sm:$0xff] %v3730_v16  ;;  %4175 = vst [vmem:[#allocation16_spill] sm:$0xff] %v3733_v26  ;;  %v3735_v43 = vadd.f32 %v175_v27, %v73_v4  ;;  %v3738_v51 = vadd.f32 %v248_v39, %v3698_v1 }
  0xe9   :  { %v177_v52 = vpop.f32.mrf.mxu0  ;;  %v250_v55 = vpop.f32.mrf.mxu1 }
  0xea   :  { %4176 = vst [vmem:[#allocation17_spill] sm:$0xff] %v3735_v43  ;;  %4177 = vst [vmem:[#allocation18_spill] sm:$0xff] %v3738_v51  ;;  %v3740_v0 = vadd.f32 %v177_v52, %v69_v63  ;;  %v3743_v56 = vadd.f32 %v250_v55, %v3692_v59 }
  0xeb   :  { %v179_v2 = vpop.f32.mrf.mxu0  ;;  %v252_v3 = vpop.f32.mrf.mxu1 }
  0xec   :  { %4178 = vst [vmem:[#allocation19_spill] sm:$0xff] %v3740_v0  ;;  %4179 = vst [vmem:[#allocation20_spill] sm:$0xff] %v3743_v56  ;;  %v3745_v16 = vadd.f32 %v179_v2, %v73_v4  ;;  %v3748_v7 = vadd.f32 %v252_v3, %v3698_v1 }
  0xed   :  { %v183_v26 = vpop.f32.mrf.mxu0  ;;  %v256_v27 = vpop.f32.mrf.mxu1 }
  0xee   :  { %4180 = vst [vmem:[#allocation21_spill] sm:$0xff] %v3745_v16  ;;  %4181 = vst [vmem:[#allocation22_spill] sm:$0xff] %v3748_v7  ;;  %v3750_v43 = vadd.f32 %v183_v26, %v69_v63  ;;  %v3753_v39 = vadd.f32 %v256_v27, %v3692_v59 }
  0xef   :  { %v185_v51 = vpop.f32.mrf.mxu0  ;;  %v258_v52 = vpop.f32.mrf.mxu1 }
  0xf0   :  { %4182 = vst [vmem:[#allocation23_spill] sm:$0xff] %v3750_v43  ;;  %4183 = vst [vmem:[#allocation24_spill] sm:$0xff] %v3753_v39  ;;  %v3755_v0 = vadd.f32 %v185_v51, %v73_v4  ;;  %v3758_v55 = vadd.f32 %v258_v52, %v3698_v1  ;;  %v154_v43 = vadd.f32 %v3688_v57, %v69_v63 }
  0xf1   :  { %v187_v56 = vpop.f32.mrf.mxu0  ;;  %v260_v2 = vpop.f32.mrf.mxu1  ;;  %v156_v52 = vadd.f32 %v3694_v61, %v73_v4  ;;  %v229_v61 = vadd.f32 %v3696_v62, %v3698_v1 }
  0xf2   :  { %4184 = vst [vmem:[#allocation25_spill] sm:$0xff] %v3755_v0  ;;  %4185 = vst [vmem:[#allocation26_spill] sm:$0xff] %v3758_v55  ;;  %v3760_v16 = vadd.f32 %v187_v56, %v69_v63  ;;  %v3763_v3 = vadd.f32 %v260_v2, %v3692_v59 }
  0xf3   :  { %v189_v7 = vpop.f32.mrf.mxu0  ;;  %v262_v26 = vpop.f32.mrf.mxu1 }
  0xf4   :  { %4186 = vst [vmem:[#allocation27_spill] sm:$0xff] %v3760_v16  ;;  %4187 = vst [vmem:[#allocation28_spill] sm:$0xff] %v3763_v3  ;;  %v3766_v27 = vadd.f32 %v189_v7, %v73_v4  ;;  %v3769_v39 = vadd.f32 %v262_v26, %v3698_v1  ;;  %v227_v3 = vadd.f32 %v3690_v58, %v3692_v59  ;;  %v298_v58 = vld [vmem:[%s4161_s2] sm:$0xff] }
  0xf5   :  { %v530_v51 = vpop.f32.mrf.mxu0 }
  0xf6   :  { %4188 = vst [vmem:[#allocation29_spill] sm:$0xff] %v3766_v27  ;;  %v578_v55 = vadd.f32 %v530_v51, %v154_v43  ;;  %v571_v0 = vpop.f32.mrf.mxu1 }
  0xf7   :  { %v532_v54 = vpop.f32.mrf.mxu0  ;;  %v580_v27 = vadd.f32 %v571_v0, %v227_v3 }
  0xf8   :  { %v582_v56 = vmul.f32 0.5, %v578_v55  ;;  %v579_v16 = vadd.f32 %v532_v54, %v156_v52  ;;  %v573_v60 = vpop.f32.mrf.mxu1 }
  0xf9   :  { %v534_v2 = vpop.f32.mrf.mxu0  ;;  %v581_v4 = vadd.f32 %v573_v60, %v229_v61 }
  0xfa   :  { %3287 = vtanh.f32 %v582_v56  ;;  %v586_v57 = vmul.f32 0.5, %v579_v16  ;;  %v575_v63 = vpop.f32.mrf.mxu1 }
  0xfb   :  { %v535_v7 = vpop.f32.mrf.mxu0  ;;  %v591_v43 = vmul.f32 0.5, %v581_v4 }
  0xfc   :  { %3289 = vtanh.f32 %v586_v57  ;;  %v576_v26 = vpop.f32.mrf.mxu1  ;;  %v4189_v7 = vmov 0  }
  0xfd   :  { %3291 = vtanh.f32 %v580_v27 }
  0xfe   :  { %3293 = vtanh.f32 %v591_v43 }
 0x107   :  { %v3288_v55 = vpop.eup %3287 }
 0x108   :  { %v584_v54 = vmul.f32 0.5, %v3288_v55 }
 0x109   :  { %v3290_v51 = vpop.eup %3289 }
 0x10a   :  { %v585_v52 = vadd.f32 0.5, %v584_v54  ;;  %v588_v2 = vmul.f32 0.5, %v3290_v51  ;;  %v3292_v0 = vpop.eup %3291 }
 0x10b   :  { %v3294_v62 = vpop.eup %3293 }
 0x10c   :  { %v589_v59 = vadd.f32 0.5, %v588_v2  ;;  %v596_v3 = vmul.f32 %v3292_v0, %v585_v52  ;;  %v593_v1 = vmul.f32 0.5, %v3294_v62 }
 0x10e   :  { %v595_v16 = vmul.f32 %v589_v59, %v298_v58  ;;  %v594_v60 = vadd.f32 0.5, %v593_v1 }
 0x110   :  { %v3779_v56 = vadd.f32 %v596_v3, %v595_v16 }
 0x112   :  { %3295 = vtanh.f32 %v3779_v56 }
 0x11f   :  { %v3296_v27 = vpop.eup %3295 }
 0x120   :  { %v599_v57 = vmul.f32 %v3296_v27, %v594_v60 }
 0x122   :  { %600 = vst [vmem:[#allocation7] sm:$0xff] %v599_v57  ;;  %v606_v63 = vpack.c.bf16 %v599_v57, %v599_v57 }
 0x124   :  { %832 = vmatmul.mubr.bf16.vlgmr.msra.gmra.mxu0 %v606_v63  ;;  %873 = vmatmul.mubr.bf16.vlgmr.msra.gmra.mxu1 %v606_v63 }
 0x125   :  { %1104 = vmatpush1.bf16.msra.mxu0 %v3516_v8  ;;  %1145 = vmatpush1.bf16.msra.mxu1 %v3520_v10 }
 0x126   :  { %1105 = vmatprep.subr.bf16.mxu0 %v3529_v13  ;;  %1146 = vmatprep.subr.bf16.mxu1 %v3535_v15 }
 0x127   :  { %1135 = vmatprep.mubr.bf16.mxu0 %v4189_v7  ;;  %1176 = vmatprep.mubr.bf16.mxu1 %v4189_v7 }
 0x129   :  { %1106 = vmatpush1.bf16.msra.mxu0 %v3525_v12  ;;  %1147 = vmatpush1.bf16.msra.mxu1 %v3533_v14 }
 0x12a   :  { %1107 = vmatprep.subr.bf16.mxu0 %v3547_v18  ;;  %1148 = vmatprep.subr.bf16.mxu1 %v3552_v21 }
 0x12d   :  { %1108 = vmatpush1.bf16.msra.mxu0 %v3550_v20  ;;  %1149 = vmatpush1.bf16.msra.mxu1 %v3555_v22 }
 0x12e   :  { %1109 = vmatprep.subr.bf16.mxu0 %v3559_v23  ;;  %1150 = vmatprep.subr.bf16.mxu1 %v3562_v24 }
 0x131   :  { %1110 = vmatpush1.bf16.msra.mxu0 %v3566_v25  ;;  %1151 = vmatpush1.bf16.msra.mxu1 %v3578_v28 }
 0x132   :  { %1111 = vmatprep.subr.bf16.mxu0 %v3580_v29  ;;  %1152 = vmatprep.subr.bf16.mxu1 %v3584_v30 }
 0x135   :  { %1112 = vmatpush1.bf16.msra.mxu0 %v3587_v32  ;;  %1153 = vmatpush1.bf16.msra.mxu1 %v3589_v33 }
 0x136   :  { %1113 = vmatprep.subr.bf16.mxu0 %v3593_v34  ;;  %1154 = vmatprep.subr.bf16.mxu1 %v3598_v36 }
 0x139   :  { %1114 = vmatpush1.bf16.msra.mxu0 %v3596_v35  ;;  %1155 = vmatpush1.bf16.msra.mxu1 %v3602_v37 }
 0x13a   :  { %1115 = vmatprep.subr.bf16.mxu0 %v3614_v40  ;;  %1156 = vmatprep.subr.bf16.mxu1 %v3620_v42 }
 0x13d   :  { %1116 = vmatpush1.bf16.msra.mxu0 %v3618_v41  ;;  %1157 = vmatpush1.bf16.msra.mxu1 %v3622_v44 }
 0x13e   :  { %1117 = vmatprep.subr.bf16.mxu0 %v3624_v45  ;;  %1158 = vmatprep.subr.bf16.mxu1 %v3627_v46 }
 0x141   :  { %1118 = vmatpush1.bf16.msra.mxu0 %v3632_v47  ;;  %1159 = vmatpush1.bf16.msra.mxu1 %v3639_v49 }
 0x142   :  { %1407 = vmatprep.subr.bf16.mxu0 %v3518_v9  ;;  %1448 = vmatprep.subr.bf16.mxu1 %v3522_v11 }
 0x1e4   :  { %v833_v26 = vpop.f32.mrf.mxu0  ;;  %v874_v61 = vpop.f32.mrf.mxu1 }
 0x1e5   :  { %v881_v4 = vadd.f32 %v833_v26, %v3700_v5  ;;  %v883_v58 = vadd.f32 %v874_v61, %v3703_v6 }
 0x1e6   :  { %v835_v43 = vpop.f32.mrf.mxu0  ;;  %v876_v55 = vpop.f32.mrf.mxu1 }
 0x1e7   :  { %v885_v54 = vmul.f32 0.5, %v881_v4  ;;  %v882_v51 = vadd.f32 %v835_v43, %v3705_v17  ;;  %v884_v9 = vadd.f32 %v876_v55, %v3708_v19 }
 0x1e8   :  { %v837_v52 = vpop.f32.mrf.mxu0  ;;  %v878_v2 = vpop.f32.mrf.mxu1 }
 0x1e9   :  { %3297 = vtanh.f32 %v885_v54  ;;  %v889_v59 = vmul.f32 0.5, %v882_v51  ;;  %v894_v11 = vmul.f32 0.5, %v884_v9  ;;  %v3878_v54 = vld [vmem:[#allocation3 + $0xc4] ss:$16 sps:$4 sm:$0xff]   ;;  %v3880_v51 = vld [vmem:[#allocation3 + $0xcc] ss:$16 sps:$4 sm:$0xff]  }
 0x1ea   :  { %v838_v0 = vpop.f32.mrf.mxu0  ;;  %v879_v16 = vpop.f32.mrf.mxu1  ;;  %v3882_v52 = vld [vmem:[#allocation3 + $0xc0] ss:$16 sps:$4 sm:$0xff]   ;;  %v3884_v2 = vld [vmem:[#allocation3 + $0xc8] ss:$16 sps:$4 sm:$0xff]   ;;  %v3902_v9 = vld [vmem:[#allocation3 + $0x84] ss:$16 sps:$4 sm:$0xff]  }
 0x1eb   :  { %3299 = vtanh.f32 %v889_v59  ;;  %v3892_v59 = vld [vmem:[#allocation3 + $0xac] ss:$16 sps:$4 sm:$0xff]   ;;  %v3894_v0 = vld [vmem:[#allocation3 + $0xa0] ss:$16 sps:$4 sm:$0xff]   ;;  %v3896_v16 = vld [vmem:[#allocation3 + $0xa8] ss:$16 sps:$4 sm:$0xff]  }
 0x1ec   :  { %3301 = vtanh.f32 %v883_v58  ;;  %v3890_v58 = vld [vmem:[#allocation3 + $0xa4] ss:$16 sps:$4 sm:$0xff]  }
 0x1ed   :  { %3303 = vtanh.f32 %v894_v11  ;;  %v3904_v11 = vld [vmem:[#allocation3 + $0x8c] ss:$16 sps:$4 sm:$0xff]  }
 0x1f6   :  { %v3298_v3 = vpop.eup %3297 }
 0x1f7   :  { %v887_v5 = vmul.f32 0.5, %v3298_v3  ;;  %v3906_v3 = vld [vmem:[#allocation3 + $0x80] ss:$16 sps:$4 sm:$0xff]  }
 0x1f8   :  { %v3300_v62 = vpop.eup %3299 }
 0x1f9   :  { %v888_v1 = vadd.f32 0.5, %v887_v5  ;;  %v891_v60 = vmul.f32 0.5, %v3300_v62  ;;  %v3302_v17 = vpop.eup %3301  ;;  %v3908_v5 = vld [vmem:[#allocation3 + $0x88] ss:$16 sps:$4 sm:$0xff]   ;;  %v3914_v62 = vld [vmem:[#allocation3 + $0x64] ss:$16 sps:$4 sm:$0xff]  }
 0x1fa   :  { %v3304_v26 = vpop.eup %3303 }
 0x1fb   :  { %v892_v27 = vadd.f32 0.5, %v891_v60  ;;  %v899_v57 = vmul.f32 %v3302_v17, %v888_v1  ;;  %v896_v61 = vmul.f32 0.5, %v3304_v26  ;;  %v3916_v1 = vld [vmem:[#allocation3 + $0x6c] ss:$16 sps:$4 sm:$0xff]   ;;  %v3918_v60 = vld [vmem:[#allocation3 + $0x60] ss:$16 sps:$4 sm:$0xff]  }
 0x1fc   :  { %v3920_v17 = vld [vmem:[#allocation3 + $0x68] ss:$16 sps:$4 sm:$0xff]   ;;  %v3938_v26 = vld [vmem:[#allocation3 + $0x24] ss:$16 sps:$4 sm:$0xff]  }
 0x1fd   :  { %v898_v63 = vmul.f32 %v892_v27, %v3779_v56  ;;  %v897_v4 = vadd.f32 0.5, %v896_v61  ;;  %v3872_v56 = vld [vmem:[#allocation3 + $0xe8] ss:$16 sps:$4 sm:$0xff]   ;;  %v3926_v27 = vld [vmem:[#allocation3 + $0x44] ss:$16 sps:$4 sm:$0xff]  }
 0x1fe   :  { %v3940_v61 = vld [vmem:[#allocation3 + $0x2c] ss:$16 sps:$4 sm:$0xff]  }
 0x1ff   :  { %v3821_v6 = vadd.f32 %v899_v57, %v898_v63  ;;  %v3928_v57 = vld [vmem:[#allocation3 + $0x4c] ss:$16 sps:$4 sm:$0xff]   ;;  %v3930_v63 = vld [vmem:[#allocation3 + $0x40] ss:$16 sps:$4 sm:$0xff]  }
 0x201   :  { %3305 = vtanh.f32 %v3821_v6 }
 0x20e   :  { %v3306_v19 = vpop.eup %3305 }
 0x20f   :  { %v902_v43 = vmul.f32 %v3306_v19, %v897_v4  ;;  %v3942_v4 = vld [vmem:[#allocation3 + $0x20] ss:$16 sps:$4 sm:$0xff]   ;;  %v3944_v19 = vld [vmem:[#allocation3 + $0x28] ss:$16 sps:$4 sm:$0xff]  }
 0x211   :  { %904 = vst [vmem:[#allocation7 + $0x8] sm:$0xff] %v902_v43  ;;  %v910_v55 = vpack.c.bf16 %v902_v43, %v902_v43  ;;  %v3950_v43 = vld [vmem:[#allocation3 + $0x4] ss:$16 sps:$4 sm:$0xff]  }
 0x213   :  { %1136 = vmatmul.mubr.bf16.vlgmr.msra.gmra.mxu0 %v910_v55  ;;  %1177 = vmatmul.mubr.bf16.vlgmr.msra.gmra.mxu1 %v910_v55  ;;  %v3952_v55 = vld [vmem:[#allocation3 + $0xc] ss:$16 sps:$4 sm:$0xff]  }
 0x214   :  { %1408 = vmatpush1.bf16.msra.mxu0 %v3516_v8  ;;  %1449 = vmatpush1.bf16.msra.mxu1 %v3520_v10 }
 0x215   :  { %1409 = vmatprep.subr.bf16.mxu0 %v3529_v13  ;;  %1450 = vmatprep.subr.bf16.mxu1 %v3535_v15 }
 0x216   :  { %1439 = vmatprep.mubr.bf16.mxu0 %v4189_v7  ;;  %1480 = vmatprep.mubr.bf16.mxu1 %v4189_v7 }
 0x218   :  { %1410 = vmatpush1.bf16.msra.mxu0 %v3525_v12  ;;  %1451 = vmatpush1.bf16.msra.mxu1 %v3533_v14 }
 0x219   :  { %1411 = vmatprep.subr.bf16.mxu0 %v3547_v18  ;;  %1452 = vmatprep.subr.bf16.mxu1 %v3552_v21 }
 0x21c   :  { %1412 = vmatpush1.bf16.msra.mxu0 %v3550_v20  ;;  %1453 = vmatpush1.bf16.msra.mxu1 %v3555_v22 }
 0x21d   :  { %1413 = vmatprep.subr.bf16.mxu0 %v3559_v23  ;;  %1454 = vmatprep.subr.bf16.mxu1 %v3562_v24 }
 0x220   :  { %1414 = vmatpush1.bf16.msra.mxu0 %v3566_v25  ;;  %1455 = vmatpush1.bf16.msra.mxu1 %v3578_v28 }
 0x221   :  { %1415 = vmatprep.subr.bf16.mxu0 %v3580_v29  ;;  %1456 = vmatprep.subr.bf16.mxu1 %v3584_v30 }
 0x224   :  { %1416 = vmatpush1.bf16.msra.mxu0 %v3587_v32  ;;  %1457 = vmatpush1.bf16.msra.mxu1 %v3589_v33 }
 0x225   :  { %1417 = vmatprep.subr.bf16.mxu0 %v3593_v34  ;;  %1458 = vmatprep.subr.bf16.mxu1 %v3598_v36 }
 0x228   :  { %1418 = vmatpush1.bf16.msra.mxu0 %v3596_v35  ;;  %1459 = vmatpush1.bf16.msra.mxu1 %v3602_v37 }
 0x229   :  { %1419 = vmatprep.subr.bf16.mxu0 %v3614_v40  ;;  %1460 = vmatprep.subr.bf16.mxu1 %v3620_v42 }
 0x22c   :  { %1420 = vmatpush1.bf16.msra.mxu0 %v3618_v41  ;;  %1461 = vmatpush1.bf16.msra.mxu1 %v3622_v44 }
 0x22d   :  { %1421 = vmatprep.subr.bf16.mxu0 %v3624_v45  ;;  %1462 = vmatprep.subr.bf16.mxu1 %v3627_v46 }
 0x230   :  { %1422 = vmatpush1.bf16.msra.mxu0 %v3632_v47  ;;  %1463 = vmatpush1.bf16.msra.mxu1 %v3639_v49 }
 0x2d3   :  { %v1137_v8 = vpop.f32.mrf.mxu0  ;;  %v1178_v10 = vpop.f32.mrf.mxu1 }
 0x2d4   :  { %v1185_v12 = vadd.f32 %v1137_v8, %v3710_v31  ;;  %v1187_v22 = vadd.f32 %v1178_v10, %v3713_v38  ;;  %v3866_v38 = vld [vmem:[#allocation3 + $0xe4] ss:$16 sps:$4 sm:$0xff]   ;;  %v3954_v8 = vld [vmem:[#allocation3] ss:$16 sps:$4 sm:$0xff]   ;;  %v3956_v10 = vld [vmem:[#allocation3 + $0x8] ss:$16 sps:$4 sm:$0xff]  }
 0x2d5   :  { %v1139_v13 = vpop.f32.mrf.mxu0  ;;  %v1180_v14 = vpop.f32.mrf.mxu1  ;;  %1711 = vmatprep.subr.bf16.mxu0 %v3866_v38 }
 0x2d6   :  { %v1189_v15 = vmul.f32 0.5, %v1185_v12  ;;  %v1186_v18 = vadd.f32 %v1139_v13, %v3715_v48  ;;  %v1188_v28 = vadd.f32 %v1180_v14, %v3718_v50  ;;  %v3868_v48 = vld [vmem:[#allocation3 + $0xec] ss:$16 sps:$4 sm:$0xff]   ;;  %v3870_v50 = vld [vmem:[#allocation3 + $0xe0] ss:$16 sps:$4 sm:$0xff]  }
 0x2d7   :  { %v1141_v20 = vpop.f32.mrf.mxu0  ;;  %v1182_v21 = vpop.f32.mrf.mxu1  ;;  %1752 = vmatprep.subr.bf16.mxu1 %v3868_v48 }
 0x2d8   :  { %3307 = vtanh.f32 %v1189_v15  ;;  %v1193_v23 = vmul.f32 0.5, %v1186_v18  ;;  %v1198_v29 = vmul.f32 0.5, %v1188_v28  ;;  %v4190_v21 = vld [vmem:[#allocation13_spill] sm:$0xff] }
 0x2d9   :  { %v1142_v24 = vpop.f32.mrf.mxu0  ;;  %v1183_v25 = vpop.f32.mrf.mxu1 }
 0x2da   :  { %3309 = vtanh.f32 %v1193_v23  ;;  %v4191_v25 = vld [vmem:[#allocation12_spill] sm:$0xff] }
 0x2db   :  { %3311 = vtanh.f32 %v1187_v22 }
 0x2dc   :  { %3313 = vtanh.f32 %v1198_v29 }
 0x2e5   :  { %v3308_v30 = vpop.eup %3307 }
 0x2e6   :  { %v1191_v32 = vmul.f32 0.5, %v3308_v30 }
 0x2e7   :  { %v3310_v33 = vpop.eup %3309 }
 0x2e8   :  { %v1192_v34 = vadd.f32 0.5, %v1191_v32  ;;  %v1195_v35 = vmul.f32 0.5, %v3310_v33  ;;  %v3312_v36 = vpop.eup %3311  ;;  %v4192_v33 = vld [vmem:[#allocation14_spill] sm:$0xff] }
 0x2e9   :  { %v3314_v44 = vpop.eup %3313 }
 0x2ea   :  { %v1196_v37 = vadd.f32 0.5, %v1195_v35  ;;  %v1203_v40 = vmul.f32 %v3312_v36, %v1192_v34  ;;  %v1200_v45 = vmul.f32 0.5, %v3314_v44 }
 0x2ec   :  { %v1202_v41 = vmul.f32 %v1196_v37, %v3821_v6  ;;  %v1201_v46 = vadd.f32 0.5, %v1200_v45  ;;  %v3932_v6 = vld [vmem:[#allocation3 + $0x48] ss:$16 sps:$4 sm:$0xff]  }
 0x2ee   :  { %v3861_v42 = vadd.f32 %v1203_v40, %v1202_v41 }
 0x2f0   :  { %3315 = vtanh.f32 %v3861_v42 }
 0x2fd   :  { %v3316_v47 = vpop.eup %3315 }
 0x2fe   :  { %v1206_v49 = vmul.f32 %v3316_v47, %v1201_v46 }
 0x300   :  { %1208 = vst [vmem:[#allocation7 + $0x10] sm:$0xff] %v1206_v49  ;;  %v1214_v31 = vpack.c.bf16 %v1206_v49, %v1206_v49 }
 0x302   :  { %1440 = vmatmul.mubr.bf16.vlgmr.msra.gmra.mxu0 %v1214_v31  ;;  %1481 = vmatmul.mubr.bf16.vlgmr.msra.gmra.mxu1 %v1214_v31 }
 0x303   :  { %1743 = vmatprep.mubr.bf16.mxu0 %v4189_v7  ;;  %1784 = vmatprep.mubr.bf16.mxu1 %v4189_v7 }
 0x304   :  { %1712 = vmatpush1.bf16.msra.mxu0 %v3870_v50  ;;  %1753 = vmatpush1.bf16.msra.mxu1 %v3872_v56 }
 0x305   :  { %1713 = vmatprep.subr.bf16.mxu0 %v3878_v54  ;;  %1754 = vmatprep.subr.bf16.mxu1 %v3880_v51 }
 0x308   :  { %1714 = vmatpush1.bf16.msra.mxu0 %v3882_v52  ;;  %1755 = vmatpush1.bf16.msra.mxu1 %v3884_v2 }
 0x309   :  { %1715 = vmatprep.subr.bf16.mxu0 %v3890_v58  ;;  %1756 = vmatprep.subr.bf16.mxu1 %v3892_v59 }
 0x30c   :  { %1716 = vmatpush1.bf16.msra.mxu0 %v3894_v0  ;;  %1757 = vmatpush1.bf16.msra.mxu1 %v3896_v16 }
 0x30d   :  { %1717 = vmatprep.subr.bf16.mxu0 %v3902_v9  ;;  %1758 = vmatprep.subr.bf16.mxu1 %v3904_v11 }
 0x310   :  { %1718 = vmatpush1.bf16.msra.mxu0 %v3906_v3  ;;  %1759 = vmatpush1.bf16.msra.mxu1 %v3908_v5 }
 0x311   :  { %1719 = vmatprep.subr.bf16.mxu0 %v3914_v62  ;;  %1760 = vmatprep.subr.bf16.mxu1 %v3916_v1 }
 0x314   :  { %1720 = vmatpush1.bf16.msra.mxu0 %v3918_v60  ;;  %1761 = vmatpush1.bf16.msra.mxu1 %v3920_v17 }
 0x315   :  { %1721 = vmatprep.subr.bf16.mxu0 %v3926_v27  ;;  %1762 = vmatprep.subr.bf16.mxu1 %v3928_v57 }
 0x318   :  { %1722 = vmatpush1.bf16.msra.mxu0 %v3930_v63  ;;  %1763 = vmatpush1.bf16.msra.mxu1 %v3932_v6 }
 0x319   :  { %1723 = vmatprep.subr.bf16.mxu0 %v3938_v26  ;;  %1764 = vmatprep.subr.bf16.mxu1 %v3940_v61 }
 0x31c   :  { %1724 = vmatpush1.bf16.msra.mxu0 %v3942_v4  ;;  %1765 = vmatpush1.bf16.msra.mxu1 %v3944_v19 }
 0x31d   :  { %1725 = vmatprep.subr.bf16.mxu0 %v3950_v43  ;;  %1766 = vmatprep.subr.bf16.mxu1 %v3952_v55 }
 0x320   :  { %1726 = vmatpush1.bf16.msra.mxu0 %v3954_v8  ;;  %1767 = vmatpush1.bf16.msra.mxu1 %v3956_v10 }
 0x321   :  { %2015 = vmatprep.subr.bf16.mxu0 %v3866_v38  ;;  %2056 = vmatprep.subr.bf16.mxu1 %v3868_v48 }
 0x3c2   :  { %v1441_v12 = vpop.f32.mrf.mxu0  ;;  %v1482_v13 = vpop.f32.mrf.mxu1 }
 0x3c3   :  { %v1489_v14 = vadd.f32 %v1441_v12, %v3720_v53  ;;  %v1491_v28 = vadd.f32 %v1482_v13, %v4191_v25 }
 0x3c4   :  { %v1443_v15 = vpop.f32.mrf.mxu0  ;;  %v1484_v18 = vpop.f32.mrf.mxu1 }
 0x3c5   :  { %v1493_v20 = vmul.f32 0.5, %v1489_v14  ;;  %v1490_v22 = vadd.f32 %v1443_v15, %v4190_v21  ;;  %v1492_v34 = vadd.f32 %v1484_v18, %v4192_v33  ;;  %v4193_v21 = vld [vmem:[#allocation15_spill] sm:$0xff]  ;;  %v4195_v33 = vld [vmem:[#allocation16_spill] sm:$0xff] }
 0x3c6   :  { %v1445_v23 = vpop.f32.mrf.mxu0  ;;  %v1486_v24 = vpop.f32.mrf.mxu1 }
 0x3c7   :  { %3317 = vtanh.f32 %v1493_v20  ;;  %v1497_v29 = vmul.f32 0.5, %v1490_v22  ;;  %v1502_v35 = vmul.f32 0.5, %v1492_v34 }
 0x3c8   :  { %v1446_v30 = vpop.f32.mrf.mxu0  ;;  %v1487_v32 = vpop.f32.mrf.mxu1 }
 0x3c9   :  { %3319 = vtanh.f32 %v1497_v29 }
 0x3ca   :  { %3321 = vtanh.f32 %v1491_v28  ;;  %v4194_v28 = vld [vmem:[#allocation17_spill] sm:$0xff] }
 0x3cb   :  { %3323 = vtanh.f32 %v1502_v35 }
 0x3d4   :  { %v3318_v36 = vpop.eup %3317 }
 0x3d5   :  { %v1495_v53 = vmul.f32 0.5, %v3318_v36 }
 0x3d6   :  { %v3320_v37 = vpop.eup %3319 }
 0x3d7   :  { %v1496_v40 = vadd.f32 0.5, %v1495_v53  ;;  %v1499_v41 = vmul.f32 0.5, %v3320_v37  ;;  %v3322_v44 = vpop.eup %3321  ;;  %v4196_v37 = vld [vmem:[#allocation18_spill] sm:$0xff] }
 0x3d8   :  { %v3324_v31 = vpop.eup %3323 }
 0x3d9   :  { %v1500_v45 = vadd.f32 0.5, %v1499_v41  ;;  %v1507_v46 = vmul.f32 %v3322_v44, %v1496_v40  ;;  %v1504_v12 = vmul.f32 0.5, %v3324_v31 }
 0x3db   :  { %v1506_v47 = vmul.f32 %v1500_v45, %v3861_v42  ;;  %v1505_v13 = vadd.f32 0.5, %v1504_v12 }
 0x3dd   :  { %v3969_v49 = vadd.f32 %v1507_v46, %v1506_v47 }
 0x3df   :  { %3325 = vtanh.f32 %v3969_v49 }
 0x3ec   :  { %v3326_v14 = vpop.eup %3325 }
 0x3ed   :  { %v1510_v15 = vmul.f32 %v3326_v14, %v1505_v13 }
 0x3ef   :  { %1512 = vst [vmem:[#allocation7 + $0x18] sm:$0xff] %v1510_v15  ;;  %v1518_v18 = vpack.c.bf16 %v1510_v15, %v1510_v15 }
 0x3f1   :  { %1744 = vmatmul.mubr.bf16.vlgmr.msra.gmra.mxu0 %v1518_v18  ;;  %1785 = vmatmul.mubr.bf16.vlgmr.msra.gmra.mxu1 %v1518_v18 }
 0x3f2   :  { %2016 = vmatpush1.bf16.msra.mxu0 %v3870_v50  ;;  %2057 = vmatpush1.bf16.msra.mxu1 %v3872_v56 }
 0x3f3   :  { %2017 = vmatprep.subr.bf16.mxu0 %v3878_v54  ;;  %2058 = vmatprep.subr.bf16.mxu1 %v3880_v51 }
 0x3f4   :  { %2047 = vmatprep.mubr.bf16.mxu0 %v4189_v7  ;;  %2088 = vmatprep.mubr.bf16.mxu1 %v4189_v7 }
 0x3f6   :  { %2018 = vmatpush1.bf16.msra.mxu0 %v3882_v52  ;;  %2059 = vmatpush1.bf16.msra.mxu1 %v3884_v2 }
 0x3f7   :  { %2019 = vmatprep.subr.bf16.mxu0 %v3890_v58  ;;  %2060 = vmatprep.subr.bf16.mxu1 %v3892_v59 }
 0x3fa   :  { %2020 = vmatpush1.bf16.msra.mxu0 %v3894_v0  ;;  %2061 = vmatpush1.bf16.msra.mxu1 %v3896_v16 }
 0x3fb   :  { %2021 = vmatprep.subr.bf16.mxu0 %v3902_v9  ;;  %2062 = vmatprep.subr.bf16.mxu1 %v3904_v11 }
 0x3fe   :  { %2022 = vmatpush1.bf16.msra.mxu0 %v3906_v3  ;;  %2063 = vmatpush1.bf16.msra.mxu1 %v3908_v5 }
 0x3ff   :  { %2023 = vmatprep.subr.bf16.mxu0 %v3914_v62  ;;  %2064 = vmatprep.subr.bf16.mxu1 %v3916_v1 }
 0x402   :  { %2024 = vmatpush1.bf16.msra.mxu0 %v3918_v60  ;;  %2065 = vmatpush1.bf16.msra.mxu1 %v3920_v17 }
 0x403   :  { %2025 = vmatprep.subr.bf16.mxu0 %v3926_v27  ;;  %2066 = vmatprep.subr.bf16.mxu1 %v3928_v57 }
 0x406   :  { %2026 = vmatpush1.bf16.msra.mxu0 %v3930_v63  ;;  %2067 = vmatpush1.bf16.msra.mxu1 %v3932_v6 }
 0x407   :  { %2027 = vmatprep.subr.bf16.mxu0 %v3938_v26  ;;  %2068 = vmatprep.subr.bf16.mxu1 %v3940_v61 }
 0x40a   :  { %2028 = vmatpush1.bf16.msra.mxu0 %v3942_v4  ;;  %2069 = vmatpush1.bf16.msra.mxu1 %v3944_v19 }
 0x40b   :  { %2029 = vmatprep.subr.bf16.mxu0 %v3950_v43  ;;  %2070 = vmatprep.subr.bf16.mxu1 %v3952_v55 }
 0x40e   :  { %2030 = vmatpush1.bf16.msra.mxu0 %v3954_v8  ;;  %2071 = vmatpush1.bf16.msra.mxu1 %v3956_v10 }
 0x40f   :  { %2319 = vmatprep.subr.bf16.mxu0 %v3866_v38  ;;  %2360 = vmatprep.subr.bf16.mxu1 %v3868_v48 }
 0x4b1   :  { %v1745_v42 = vpop.f32.mrf.mxu0  ;;  %v1786_v20 = vpop.f32.mrf.mxu1 }
 0x4b2   :  { %v1793_v22 = vadd.f32 %v1745_v42, %v4193_v21  ;;  %v1795_v34 = vadd.f32 %v1786_v20, %v4195_v33 }
 0x4b3   :  { %v1747_v23 = vpop.f32.mrf.mxu0  ;;  %v1788_v24 = vpop.f32.mrf.mxu1 }
 0x4b4   :  { %v1797_v25 = vmul.f32 0.5, %v1793_v22  ;;  %v1794_v29 = vadd.f32 %v1747_v23, %v4194_v28  ;;  %v1796_v40 = vadd.f32 %v1788_v24, %v4196_v37  ;;  %v4197_v28 = vld [vmem:[#allocation19_spill] sm:$0xff]  ;;  %v4199_v37 = vld [vmem:[#allocation20_spill] sm:$0xff] }
 0x4b5   :  { %v1749_v30 = vpop.f32.mrf.mxu0  ;;  %v1790_v32 = vpop.f32.mrf.mxu1 }
 0x4b6   :  { %3327 = vtanh.f32 %v1797_v25  ;;  %v1801_v35 = vmul.f32 0.5, %v1794_v29  ;;  %v1806_v41 = vmul.f32 0.5, %v1796_v40 }
 0x4b7   :  { %v1750_v36 = vpop.f32.mrf.mxu0  ;;  %v1791_v53 = vpop.f32.mrf.mxu1 }
 0x4b8   :  { %3329 = vtanh.f32 %v1801_v35 }
 0x4b9   :  { %3331 = vtanh.f32 %v1795_v34  ;;  %v4198_v34 = vld [vmem:[#allocation21_spill] sm:$0xff] }
 0x4ba   :  { %3333 = vtanh.f32 %v1806_v41 }
 0x4c3   :  { %v3328_v44 = vpop.eup %3327 }
 0x4c4   :  { %v1799_v45 = vmul.f32 0.5, %v3328_v44 }
 0x4c5   :  { %v3330_v46 = vpop.eup %3329 }
 0x4c6   :  { %v1800_v47 = vadd.f32 0.5, %v1799_v45  ;;  %v1803_v31 = vmul.f32 0.5, %v3330_v46  ;;  %v3332_v12 = vpop.eup %3331 }
 0x4c7   :  { %v3334_v42 = vpop.eup %3333 }
 0x4c8   :  { %v1804_v13 = vadd.f32 0.5, %v1803_v31  ;;  %v1811_v14 = vmul.f32 %v3332_v12, %v1800_v47  ;;  %v1808_v20 = vmul.f32 0.5, %v3334_v42 }
 0x4ca   :  { %v1810_v15 = vmul.f32 %v1804_v13, %v3969_v49  ;;  %v1809_v21 = vadd.f32 0.5, %v1808_v20 }
 0x4cc   :  { %v4011_v18 = vadd.f32 %v1811_v14, %v1810_v15 }
 0x4ce   :  { %3335 = vtanh.f32 %v4011_v18 }
 0x4db   :  { %v3336_v22 = vpop.eup %3335 }
 0x4dc   :  { %v1814_v23 = vmul.f32 %v3336_v22, %v1809_v21 }
 0x4de   :  { %1816 = vst [vmem:[#allocation7 + $0x20] sm:$0xff] %v1814_v23  ;;  %v1822_v24 = vpack.c.bf16 %v1814_v23, %v1814_v23 }
 0x4e0   :  { %2048 = vmatmul.mubr.bf16.vlgmr.msra.gmra.mxu0 %v1822_v24  ;;  %2089 = vmatmul.mubr.bf16.vlgmr.msra.gmra.mxu1 %v1822_v24 }
 0x4e1   :  { %2320 = vmatpush1.bf16.msra.mxu0 %v3870_v50  ;;  %2361 = vmatpush1.bf16.msra.mxu1 %v3872_v56 }
 0x4e2   :  { %2321 = vmatprep.subr.bf16.mxu0 %v3878_v54  ;;  %2362 = vmatprep.subr.bf16.mxu1 %v3880_v51 }
 0x4e3   :  { %2351 = vmatprep.mubr.bf16.mxu0 %v4189_v7  ;;  %2392 = vmatprep.mubr.bf16.mxu1 %v4189_v7 }
 0x4e5   :  { %2322 = vmatpush1.bf16.msra.mxu0 %v3882_v52  ;;  %2363 = vmatpush1.bf16.msra.mxu1 %v3884_v2 }
 0x4e6   :  { %2323 = vmatprep.subr.bf16.mxu0 %v3890_v58  ;;  %2364 = vmatprep.subr.bf16.mxu1 %v3892_v59 }
 0x4e9   :  { %2324 = vmatpush1.bf16.msra.mxu0 %v3894_v0  ;;  %2365 = vmatpush1.bf16.msra.mxu1 %v3896_v16 }
 0x4ea   :  { %2325 = vmatprep.subr.bf16.mxu0 %v3902_v9  ;;  %2366 = vmatprep.subr.bf16.mxu1 %v3904_v11 }
 0x4ed   :  { %2326 = vmatpush1.bf16.msra.mxu0 %v3906_v3  ;;  %2367 = vmatpush1.bf16.msra.mxu1 %v3908_v5 }
 0x4ee   :  { %2327 = vmatprep.subr.bf16.mxu0 %v3914_v62  ;;  %2368 = vmatprep.subr.bf16.mxu1 %v3916_v1 }
 0x4f1   :  { %2328 = vmatpush1.bf16.msra.mxu0 %v3918_v60  ;;  %2369 = vmatpush1.bf16.msra.mxu1 %v3920_v17 }
 0x4f2   :  { %2329 = vmatprep.subr.bf16.mxu0 %v3926_v27  ;;  %2370 = vmatprep.subr.bf16.mxu1 %v3928_v57 }
 0x4f5   :  { %2330 = vmatpush1.bf16.msra.mxu0 %v3930_v63  ;;  %2371 = vmatpush1.bf16.msra.mxu1 %v3932_v6 }
 0x4f6   :  { %2331 = vmatprep.subr.bf16.mxu0 %v3938_v26  ;;  %2372 = vmatprep.subr.bf16.mxu1 %v3940_v61 }
 0x4f9   :  { %2332 = vmatpush1.bf16.msra.mxu0 %v3942_v4  ;;  %2373 = vmatpush1.bf16.msra.mxu1 %v3944_v19 }
 0x4fa   :  { %2333 = vmatprep.subr.bf16.mxu0 %v3950_v43  ;;  %2374 = vmatprep.subr.bf16.mxu1 %v3952_v55 }
 0x4fd   :  { %2334 = vmatpush1.bf16.msra.mxu0 %v3954_v8  ;;  %2375 = vmatpush1.bf16.msra.mxu1 %v3956_v10 }
 0x4fe   :  { %2623 = vmatprep.subr.bf16.mxu0 %v3866_v38  ;;  %2664 = vmatprep.subr.bf16.mxu1 %v3868_v48  ;;  %v4200_v38 = vld [vmem:[#allocation22_spill] sm:$0xff] }
 0x5a0   :  { %v2049_v49 = vpop.f32.mrf.mxu0  ;;  %v2090_v25 = vpop.f32.mrf.mxu1 }
 0x5a1   :  { %v2097_v29 = vadd.f32 %v2049_v49, %v4197_v28  ;;  %v2099_v40 = vadd.f32 %v2090_v25, %v4199_v37  ;;  %v2741_v37 = vld [vmem:[%s4165_s6 + $0x60] sm:$0xff] }
 0x5a2   :  { %v2051_v30 = vpop.f32.mrf.mxu0  ;;  %v2092_v32 = vpop.f32.mrf.mxu1 }
 0x5a3   :  { %v2101_v33 = vmul.f32 0.5, %v2097_v29  ;;  %v2098_v35 = vadd.f32 %v2051_v30, %v4198_v34  ;;  %v2100_v48 = vadd.f32 %v2092_v32, %v4200_v38  ;;  %v3437_v34 = vmov 0.0   ;;  %v2736_v38 = vld [vmem:[%s4165_s6 + $0x38] sm:$0xff] }
 0x5a4   :  { %v2053_v36 = vpop.f32.mrf.mxu0  ;;  %v2094_v53 = vpop.f32.mrf.mxu1 }
 0x5a5   :  { %3337 = vtanh.f32 %v2101_v33  ;;  %v2105_v41 = vmul.f32 0.5, %v2098_v35  ;;  %v2110_v46 = vmul.f32 0.5, %v2100_v48  ;;  %v2744_v35 = vld [vmem:[%s4165_s6 + $0x78] sm:$0xff]  ;;  %v2743_v36 = vld [vmem:[%s4165_s6 + $0x70] sm:$0xff]  ;;  %v2742_v53 = vld [vmem:[%s4165_s6 + $0x68] sm:$0xff] }
 0x5a6   :  { %v2054_v44 = vpop.f32.mrf.mxu0  ;;  %v2095_v45 = vpop.f32.mrf.mxu1  ;;  %v2735_v48 = vld [vmem:[%s4165_s6 + $0x30] sm:$0xff] }
 0x5a7   :  { %3339 = vtanh.f32 %v2105_v41  ;;  %v2739_v41 = vld [vmem:[%s4165_s6 + $0x50] sm:$0xff]  ;;  %v2738_v44 = vld [vmem:[%s4165_s6 + $0x48] sm:$0xff]  ;;  %v2737_v45 = vld [vmem:[%s4165_s6 + $0x40] sm:$0xff] }
 0x5a8   :  { %3341 = vtanh.f32 %v2099_v40  ;;  %v2740_v40 = vld [vmem:[%s4165_s6 + $0x58] sm:$0xff] }
 0x5a9   :  { %3343 = vtanh.f32 %v2110_v46  ;;  %v2734_v46 = vld [vmem:[%s4165_s6 + $0x28] sm:$0xff] }
 0x5b2   :  { %v3338_v47 = vpop.eup %3337 }
 0x5b3   :  { %v2103_v31 = vmul.f32 0.5, %v3338_v47  ;;  %v2733_v47 = vld [vmem:[%s4165_s6 + $0x20] sm:$0xff] }
 0x5b4   :  { %v3340_v12 = vpop.eup %3339 }
 0x5b5   :  { %v2104_v13 = vadd.f32 0.5, %v2103_v31  ;;  %v2107_v14 = vmul.f32 0.5, %v3340_v12  ;;  %v3342_v15 = vpop.eup %3341  ;;  %v2732_v31 = vld [vmem:[%s4165_s6 + $0x18] sm:$0xff]  ;;  %v2731_v12 = vld [vmem:[%s4165_s6 + $0x10] sm:$0xff] }
 0x5b6   :  { %v3344_v23 = vpop.eup %3343 }
 0x5b7   :  { %v2108_v42 = vadd.f32 0.5, %v2107_v14  ;;  %v2115_v20 = vmul.f32 %v3342_v15, %v2104_v13  ;;  %v2112_v24 = vmul.f32 0.5, %v3344_v23  ;;  %v2730_v13 = vld [vmem:[%s4165_s6 + $0x8] sm:$0xff]  ;;  %v2729_v14 = vld [vmem:[%s4165_s6] sm:$0xff]  ;;  %s3439_s6 = smov [#allocation7]  }
 0x5b8   :  { %s2838_s23 = sshll.u32 %s3439_s6, 4  ;;  %s2839_s23 = int_to_ptr.vmem [resolvable:$true] %s2838_s23 }
 0x5b9   :  { %v2114_v21 = vmul.f32 %v2108_v42, %v4011_v18  ;;  %v2113_v49 = vadd.f32 0.5, %v2112_v24  ;;  %s3387_s24 = scalar_lea.vmem %s2839_s23, 1024  ;;  %p3392_p6 = scmp.lt.s32.totalorder %s2839_s23, %s2839_s23 }
 0x5ba   :  { %p3388_p5 = scmp.ne.s32.totalorder %s2839_s23, %s3387_s24  ;;  %p3393_p7 = scmp.lt.s32.totalorder %s3387_s24, %s3387_s24 }
 0x5bb   :  { %v4053_v22 = vadd.f32 %v2115_v20, %v2114_v21  ;;  %v4205_v20 = vld [vmem:[#allocation27_spill] sm:$0xff] }
 0x5bc   :  { %p3394_p8 = por %p3393_p7, %p3392_p6 }
 0x5bd   :  { %3345 = vtanh.f32 %v4053_v22 }
 0x5be   :  { %p3395_p9 = pnand %p3394_p8, %p3388_p5 }
 0x5ca   :  { %v3346_v25 = vpop.eup %3345 }
 0x5cb   :  { %v2118_v28 = vmul.f32 %v3346_v25, %v2113_v49  ;;  %v4206_v49 = vld [vmem:[#allocation29_spill] sm:$0xff] }
 0x5cd   :  { %2120 = vst [vmem:[#allocation7 + $0x28] sm:$0xff] %v2118_v28  ;;  %v2126_v29 = vpack.c.bf16 %v2118_v28, %v2118_v28 }
 0x5cf   :  { %2352 = vmatmul.mubr.bf16.vlgmr.msra.gmra.mxu0 %v2126_v29  ;;  %2393 = vmatmul.mubr.bf16.vlgmr.msra.gmra.mxu1 %v2126_v29 }
 0x5d0   :  { %2624 = vmatpush1.bf16.msra.mxu0 %v3870_v50  ;;  %2665 = vmatpush1.bf16.msra.mxu1 %v3872_v56  ;;  %v4201_v56 = vld [vmem:[#allocation23_spill] sm:$0xff] }
 0x5d1   :  { %2625 = vmatprep.subr.bf16.mxu0 %v3878_v54  ;;  %2666 = vmatprep.subr.bf16.mxu1 %v3880_v51 }
 0x5d2   :  { %2655 = vmatprep.mubr.bf16.mxu0 %v4189_v7  ;;  %2696 = vmatprep.mubr.bf16.mxu1 %v4189_v7 }
 0x5d4   :  { %2626 = vmatpush1.bf16.msra.mxu0 %v3882_v52  ;;  %2667 = vmatpush1.bf16.msra.mxu1 %v3884_v2 }
 0x5d5   :  { %2627 = vmatprep.subr.bf16.mxu0 %v3890_v58  ;;  %2668 = vmatprep.subr.bf16.mxu1 %v3892_v59  ;;  %v4202_v58 = vld [vmem:[#allocation25_spill] sm:$0xff] }
 0x5d8   :  { %2628 = vmatpush1.bf16.msra.mxu0 %v3894_v0  ;;  %2669 = vmatpush1.bf16.msra.mxu1 %v3896_v16 }
 0x5d9   :  { %2629 = vmatprep.subr.bf16.mxu0 %v3902_v9  ;;  %2670 = vmatprep.subr.bf16.mxu1 %v3904_v11  ;;  %v4203_v9 = vld [vmem:[#allocation24_spill] sm:$0xff] }
 0x5dc   :  { %2630 = vmatpush1.bf16.msra.mxu0 %v3906_v3  ;;  %2671 = vmatpush1.bf16.msra.mxu1 %v3908_v5 }
 0x5dd   :  { %2631 = vmatprep.subr.bf16.mxu0 %v3914_v62  ;;  %2672 = vmatprep.subr.bf16.mxu1 %v3916_v1  ;;  %v4204_v1 = vld [vmem:[#allocation26_spill] sm:$0xff] }
 0x5e0   :  { %2632 = vmatpush1.bf16.msra.mxu0 %v3918_v60  ;;  %2673 = vmatpush1.bf16.msra.mxu1 %v3920_v17 }
 0x5e1   :  { %2633 = vmatprep.subr.bf16.mxu0 %v3926_v27  ;;  %2674 = vmatprep.subr.bf16.mxu1 %v3928_v57 }
 0x5e4   :  { %2634 = vmatpush1.bf16.msra.mxu0 %v3930_v63  ;;  %2675 = vmatpush1.bf16.msra.mxu1 %v3932_v6 }
 0x5e5   :  { %2635 = vmatprep.subr.bf16.mxu0 %v3938_v26  ;;  %2676 = vmatprep.subr.bf16.mxu1 %v3940_v61 }
 0x5e8   :  { %2636 = vmatpush1.bf16.msra.mxu0 %v3942_v4  ;;  %2677 = vmatpush1.bf16.msra.mxu1 %v3944_v19 }
 0x5e9   :  { %2637 = vmatprep.subr.bf16.mxu0 %v3950_v43  ;;  %2678 = vmatprep.subr.bf16.mxu1 %v3952_v55 }
 0x5ec   :  { %2638 = vmatpush1.bf16.msra.mxu0 %v3954_v8  ;;  %2679 = vmatpush1.bf16.msra.mxu1 %v3956_v10 }
 0x5ed   :  { %3140 = vmatprep.subr.mxu0 %v3437_v34 }
 0x68f   :  { %v2353_v7 = vpop.f32.mrf.mxu0  ;;  %v2394_v50 = vpop.f32.mrf.mxu1 }
 0x690   :  { %v2401_v54 = vadd.f32 %v2353_v7, %v4201_v56  ;;  %v2403_v11 = vadd.f32 %v2394_v50, %v4203_v9  ;;  %v4207_v7 = vld [vmem:[#allocation28_spill] sm:$0xff] }
 0x691   :  { %v2355_v51 = vpop.f32.mrf.mxu0  ;;  %v2396_v52 = vpop.f32.mrf.mxu1 }
 0x692   :  { %v2405_v2 = vmul.f32 0.5, %v2401_v54  ;;  %v2402_v59 = vadd.f32 %v2355_v51, %v4202_v58  ;;  %v2404_v60 = vadd.f32 %v2396_v52, %v4204_v1 }
 0x693   :  { %v2357_v0 = vpop.f32.mrf.mxu0  ;;  %v2398_v16 = vpop.f32.mrf.mxu1 }
 0x694   :  { %3347 = vtanh.f32 %v2405_v2  ;;  %v2409_v3 = vmul.f32 0.5, %v2402_v59  ;;  %v2414_v17 = vmul.f32 0.5, %v2404_v60 }
 0x695   :  { %v2358_v5 = vpop.f32.mrf.mxu0  ;;  %v2399_v62 = vpop.f32.mrf.mxu1 }
 0x696   :  { %3349 = vtanh.f32 %v2409_v3 }
 0x697   :  { %3351 = vtanh.f32 %v2403_v11 }
 0x698   :  { %3353 = vtanh.f32 %v2414_v17 }
 0x6a1   :  { %v3348_v27 = vpop.eup %3347 }
 0x6a2   :  { %v2407_v57 = vmul.f32 0.5, %v3348_v27 }
 0x6a3   :  { %v3350_v63 = vpop.eup %3349 }
 0x6a4   :  { %v2408_v6 = vadd.f32 0.5, %v2407_v57  ;;  %v2411_v26 = vmul.f32 0.5, %v3350_v63  ;;  %v3352_v61 = vpop.eup %3351 }
 0x6a5   :  { %v3354_v8 = vpop.eup %3353 }
 0x6a6   :  { %v2412_v4 = vadd.f32 0.5, %v2411_v26  ;;  %v2419_v19 = vmul.f32 %v3352_v61, %v2408_v6  ;;  %v2416_v10 = vmul.f32 0.5, %v3354_v8 }
 0x6a8   :  { %v2418_v43 = vmul.f32 %v2412_v4, %v4053_v22  ;;  %v2417_v18 = vadd.f32 0.5, %v2416_v10 }
 0x6aa   :  { %v4093_v55 = vadd.f32 %v2419_v19, %v2418_v43 }
 0x6ac   :  { %3355 = vtanh.f32 %v4093_v55 }
 0x6b9   :  { %v3356_v30 = vpop.eup %3355 }
 0x6ba   :  { %v2422_v32 = vmul.f32 %v3356_v30, %v2417_v18 }
 0x6bc   :  { %2424 = vst [vmem:[#allocation7 + $0x30] sm:$0xff] %v2422_v32  ;;  %v2430_v33 = vpack.c.bf16 %v2422_v32, %v2422_v32 }
 0x6be   :  { %2656 = vmatmul.mubr.bf16.vlgmr.msra.gmra.mxu0 %v2430_v33  ;;  %2697 = vmatmul.mubr.bf16.vlgmr.msra.gmra.mxu1 %v2430_v33 }
 0x6bf   :  { %3141 = vmatpush3.msra.mxu0 %v2744_v35  ;;  %3172 = vmatprep.mubr.msk.f32.mxu0 %vm3438_vm1, %v3437_v34 }
 0x6c0   :  { %3142 = vmatprep.subr.mxu0 %v3437_v34 }
 0x6c1   :  { %3143 = vmatpush3.msra.mxu0 %v2743_v36 }
 0x6c2   :  { %3144 = vmatprep.subr.mxu0 %v3437_v34 }
 0x6c3   :  { %3145 = vmatpush3.msra.mxu0 %v2742_v53 }
 0x6c4   :  { %3146 = vmatprep.subr.mxu0 %v3437_v34 }
 0x6c5   :  { %3147 = vmatpush3.msra.mxu0 %v2741_v37 }
 0x6c6   :  { %3148 = vmatprep.subr.mxu0 %v3437_v34 }
 0x6c7   :  { %3149 = vmatpush3.msra.mxu0 %v2740_v40 }
 0x6c8   :  { %3150 = vmatprep.subr.mxu0 %v3437_v34 }
 0x6c9   :  { %3151 = vmatpush3.msra.mxu0 %v2739_v41 }
 0x6ca   :  { %3152 = vmatprep.subr.mxu0 %v3437_v34 }
 0x6cb   :  { %3153 = vmatpush3.msra.mxu0 %v2738_v44 }
 0x6cc   :  { %3154 = vmatprep.subr.mxu0 %v3437_v34 }
 0x6cd   :  { %3155 = vmatpush3.msra.mxu0 %v2737_v45 }
 0x6ce   :  { %3156 = vmatprep.subr.mxu0 %v3437_v34 }
 0x6cf   :  { %3157 = vmatpush3.msra.mxu0 %v2736_v38 }
 0x6d0   :  { %3158 = vmatprep.subr.mxu0 %v3437_v34 }
 0x6d1   :  { %3159 = vmatpush3.msra.mxu0 %v2735_v48 }
 0x6d2   :  { %3160 = vmatprep.subr.mxu0 %v3437_v34 }
 0x6d3   :  { %3161 = vmatpush3.msra.mxu0 %v2734_v46 }
 0x6d4   :  { %3162 = vmatprep.subr.mxu0 %v3437_v34 }
 0x6d5   :  { %3163 = vmatpush3.msra.mxu0 %v2733_v47 }
 0x6d6   :  { %3164 = vmatprep.subr.mxu0 %v3437_v34 }
 0x6d7   :  { %3165 = vmatpush3.msra.mxu0 %v2732_v31 }
 0x6d8   :  { %3166 = vmatprep.subr.mxu0 %v3437_v34 }
 0x6d9   :  { %3167 = vmatpush3.msra.mxu0 %v2731_v12 }
 0x6da   :  { %3168 = vmatprep.subr.mxu0 %v3437_v34 }
 0x6db   :  { %3169 = vmatpush3.msra.mxu0 %v2730_v13 }
 0x6dc   :  { %3170 = vmatprep.subr.mxu0 %v3437_v34 }
 0x6dd   :  { %3171 = vmatpush3.msra.mxu0 %v2729_v14 }
 0x77e   :  { %v2657_v15 = vpop.f32.mrf.mxu0  ;;  %v2698_v42 = vpop.f32.mrf.mxu1 }
 0x77f   :  { %v2705_v21 = vadd.f32 %v2657_v15, %v4205_v20  ;;  %v2707_v50 = vadd.f32 %v2698_v42, %v4207_v7 }
 0x780   :  { %v2659_v22 = vpop.f32.mrf.mxu0  ;;  %v2700_v23 = vpop.f32.mrf.mxu1 }
 0x781   :  { %v2709_v24 = vmul.f32 0.5, %v2705_v21  ;;  %v2706_v25 = vadd.f32 %v2659_v22, %v4206_v49  ;;  %v2708_v52 = vadd.f32 %v2700_v23, %v3769_v39 }
 0x782   :  { %v2661_v28 = vpop.f32.mrf.mxu0  ;;  %v2702_v29 = vpop.f32.mrf.mxu1 }
 0x783   :  { %3357 = vtanh.f32 %v2709_v24  ;;  %v2713_v56 = vmul.f32 0.5, %v2706_v25  ;;  %v2718_v2 = vmul.f32 0.5, %v2708_v52 }
 0x784   :  { %v2662_v54 = vpop.f32.mrf.mxu0  ;;  %v2703_v51 = vpop.f32.mrf.mxu1 }
 0x785   :  { %3359 = vtanh.f32 %v2713_v56 }
 0x786   :  { %3361 = vtanh.f32 %v2707_v50 }
 0x787   :  { %3363 = vtanh.f32 %v2718_v2 }
 0x790   :  { %v3358_v58 = vpop.eup %3357 }
 0x791   :  { %v2711_v59 = vmul.f32 0.5, %v3358_v58 }
 0x792   :  { %v3360_v0 = vpop.eup %3359 }
 0x793   :  { %v2712_v16 = vadd.f32 0.5, %v2711_v59  ;;  %v2715_v9 = vmul.f32 0.5, %v3360_v0  ;;  %v3362_v11 = vpop.eup %3361 }
 0x794   :  { %v3364_v60 = vpop.eup %3363 }
 0x795   :  { %v2716_v3 = vadd.f32 0.5, %v2715_v9  ;;  %v2723_v5 = vmul.f32 %v3362_v11, %v2712_v16  ;;  %v2720_v17 = vmul.f32 0.5, %v3364_v60 }
 0x797   :  { %v2722_v62 = vmul.f32 %v2716_v3, %v4093_v55  ;;  %v2721_v27 = vadd.f32 0.5, %v2720_v17 }
 0x799   :  { %v2724_v1 = vadd.f32 %v2723_v5, %v2722_v62 }
 0x79b   :  { %3365 = vtanh.f32 %v2724_v1 }
 0x7a8   :  { %v3366_v57 = vpop.eup %3365 }
 0x7a9   :  { %v2726_v63 = vmul.f32 %v3366_v57, %v2721_v27 }
 0x7ab   :  { %2728 = vst [vmem:[#allocation7 + $0x38] sm:$0xff] %v2726_v63  ;;  %3173 = vmatmul.mubr.f32.vlgmr.msra.gmra.mxu0 %v2726_v63 }
 0x7ac   :  { %3398 = shalt.err (!%p3395_p9)
}
 0x7ad   :  { %s3440_s25 = smov 128   ;;  %s3441_s26 = smov 8   ;;  %v3122_v39 = vld [vmem:[%s4166_s7] ss:$0 sm:$0xff] }
 0x7ae   :  { %2844 = dma.vmem_to_hbm [thread:$0]  %s2839_s23, 1024, %s4168_s9, [#allocation8], %s3440_s25, %s3440_s25, %s3441_s26  }
 0x7af   :  { %s3442_s30 = smov [#allocation6]  }
 0x7b0   :  { %s2829_s10 = sshll.u32 %s3442_s30, 4  ;;  %s2830_s10 = int_to_ptr.vmem [resolvable:$true] %s2829_s10 }
 0x7b1   :  { %s3407_s11 = scalar_lea.vmem %s2830_s10, 128  ;;  %p3412_p11 = scmp.lt.s32.totalorder %s2830_s10, %s2830_s10 }
 0x7b2   :  { %p3408_p10 = scmp.ne.s32.totalorder %s2830_s10, %s3407_s11  ;;  %p3413_p12 = scmp.lt.s32.totalorder %s3407_s11, %s3407_s11 }
 0x7b4   :  { %p3414_p13 = por %p3413_p12, %p3412_p11 }
 0x7b6   :  { %p3415_p0 = pnand %p3414_p13, %p3408_p10 }
 0x86b   :  { %v2818_v6 = vpop.f32.mrf.mxu0 }
 0x86c   :  { %v2819_v26 = vadd.f32 %v3122_v39, %v2818_v6 }
 0x86d   :  { %v3174_v61 = vpop.f32.mrf.mxu0 }
 0x86e   :  { %2822 = vst.msk [vmem:[#allocation6] sm:$0xff] %vm106_vm0, %v2819_v26 }
 0x86f   :  { %3418 = shalt.err (!%p3415_p0)
}
 0x870   :  { %2832 = dma.vmem_to_hbm [thread:$0]  %s2830_s10, 128, %s4167_s8, [#allocation5]  }
 0x871   :  { %3429 = dma.done.wait [#allocation5], 128  }
 0x872   :  { %3430 = vsyncadd [#allocation5], 4294967168 }
 0x873   :  { %3431 = dma.done.wait [#allocation8], 1024  }
 0x874   :  { %3432 = vsyncadd [#allocation8], 4294966272 }
 0x875   :  { %2851 = vsyncpa [#allocation4], 1 }
 0x876   :  { %2852 = vsyncpa [#allocation5], 1 }
 0x877   :  { %2853 = vsyncpa [#allocation8], 1 }

// kernel: tpu_custom_call.1
= control target key start
LH: loop header
LB: loop body
LE: loop exit
PB: predicated region body
PF: predicated region fallthrough
CT: control target
= control target key end

     0   :  { %15 = vsyncpa [#allocation4], 0  ;;  %s4159_s0 = inlined_call_operand.vmem [shape: f32[8,8,16], index: 0, kind: input, shape index: {}]   ;;  %s4160_s1 = inlined_call_operand.vmem [shape: f32[8,128], index: 1, kind: input, shape index: {}]   ;;  %s4161_s2 = inlined_call_operand.vmem [shape: f32[8,128], index: 2, kind: input, shape index: {}]   ;;  %s4162_s3 = inlined_call_operand.vmem [shape: bf16[16,512], index: 3, kind: input, shape index: {}]   ;;  %s4163_s4 = inlined_call_operand.hbm [shape: bf16[128,512], index: 4, kind: input, shape index: {}]   ;;  %s4164_s5 = inlined_call_operand.vmem [shape: f32[1,512], index: 5, kind: input, shape index: {}]   ;;  %s4165_s6 = inlined_call_operand.vmem [shape: f32[128,16], index: 6, kind: input, shape index: {}]   ;;  %s4166_s7 = inlined_call_operand.vmem [shape: f32[1,16], index: 7, kind: input, shape index: {}]   ;;  %s4167_s8 = inlined_call_operand.hbm [shape: f32[8,16], index: 8, kind: output, shape index: {0}]   ;;  %s4168_s9 = inlined_call_operand.hbm [shape: f32[8,8,128], index: 9, kind: output, shape index: {1}]  }
   0x1   :  { %16 = vsyncpa [#allocation5], 0 }
   0x2   :  { %17 = vsyncpa [#allocation8], 0  ;;  %s3433_s30 = smov [#allocation3]  }
   0x3   :  { %s31_s10 = sshll.u32 %s3433_s30, 4  ;;  %s32_s10 = int_to_ptr.vmem [resolvable:$true] %s31_s10 }
   0x4   :  { %s3375_s11 = scalar_lea.vmem %s32_s10, 4096  ;;  %p3380_p1 = scmp.lt.s32.totalorder %s32_s10, %s32_s10 }
   0x5   :  { %p3376_p0 = scmp.ne.s32.totalorder %s32_s10, %s3375_s11  ;;  %p3381_p2 = scmp.lt.s32.totalorder %s3375_s11, %s3375_s11 }
   0x7   :  { %p3382_p3 = por %p3381_p2, %p3380_p1 }
   0x9   :  { %p3383_p4 = pnand %p3382_p3, %p3376_p0 }
   0xb   :  { %3386 = shalt.err (!%p3383_p4)
}
   0xc   :  { %s3434_s12 = smov 256   ;;  %s3435_s13 = smov 16  }
   0xd   :  { %37 = dma.hbm_to_vmem [thread:$0]  %s4163_s4, 4096, %s32_s10, [#allocation4], %s3434_s12, %s3434_s12, %s3435_s13  }
   0xe   :  { %3427 = dma.done.wait [#allocation4], 4096  }
   0xf   :  { %3428 = vsyncadd [#allocation4], 4294963200  ;;  %v4169_v0 = vmov 0   ;;  %v3185_v1 = vld [vmem:[%s4162_s3 + $0x4] ss:$16 sps:$4 sm:$0xff]   ;;  %v49_v6 = vld [vmem:[%s4159_s0 + $0x8] sm:$0xff]  ;;  %v66_v51 = vlaneseq }
  0x10   :  { %151 = vmatprep.mubr.bf16.mxu0 %v4169_v0  ;;  %224 = vmatprep.mubr.bf16.mxu1 %v4169_v0  ;;  %v3187_v2 = vld [vmem:[%s4162_s3 + $0xc] ss:$16 sps:$4 sm:$0xff]   ;;  %v3189_v3 = vld [vmem:[%s4162_s3] ss:$16 sps:$4 sm:$0xff]   ;;  %v3190_v4 = vld [vmem:[%s4162_s3 + $0x8] ss:$16 sps:$4 sm:$0xff]  }
  0x11   :  { %133 = vmatprep.subr.bf16.mxu0 %v3185_v1  ;;  %v48_v5 = vld [vmem:[%s4159_s0] sm:$0xff]  ;;  %206 = vmatprep.subr.bf16.mxu1 %v3187_v2  ;;  %vm106_vm0 = vcmask 130048   ;;  %v3520_v10 = vld [vmem:[#allocation3 + $0xe8] ss:$16 sps:$4 sm:$0xff]   ;;  %v3522_v11 = vld [vmem:[#allocation3 + $0xec] ss:$16 sps:$4 sm:$0xff]  }
  0x12   :  { %134 = vmatpush1.bf16.msra.mxu0 %v3189_v3  ;;  %207 = vmatpush1.bf16.msra.mxu1 %v3190_v4  ;;  %v56_v7 = vpack.c.bf16 %v49_v6, %v48_v5  ;;  %v3516_v8 = vld [vmem:[#allocation3 + $0xe0] ss:$16 sps:$4 sm:$0xff]   ;;  %v3518_v9 = vld [vmem:[#allocation3 + $0xe4] ss:$16 sps:$4 sm:$0xff]   ;;  %v3533_v14 = vld [vmem:[#allocation3 + $0xc8] ss:$16 sps:$4 sm:$0xff]  }
  0x13   :  { %496 = vmatprep.subr.bf16.mxu0 %v3518_v9  ;;  %v3525_v12 = vld [vmem:[#allocation3 + $0xc0] ss:$16 sps:$4 sm:$0xff]   ;;  %v3529_v13 = vld [vmem:[#allocation3 + $0xc4] ss:$16 sps:$4 sm:$0xff]   ;;  %537 = vmatprep.subr.bf16.mxu1 %v3522_v11  ;;  %v3535_v15 = vld [vmem:[#allocation3 + $0xcc] ss:$16 sps:$4 sm:$0xff]  }
  0x14   :  { %v50_v16 = vld [vmem:[%s4159_s0 + $0x10] sm:$0xff]  ;;  %v51_v17 = vld [vmem:[%s4159_s0 + $0x18] sm:$0xff]  ;;  %v52_v26 = vld [vmem:[%s4159_s0 + $0x20] sm:$0xff]  ;;  %v67_v52 = vshrl.u32 %v66_v51, 7  ;;  %vm3438_vm1 = vmmov 0  }
  0x15   :  { %2858 = vmatmul.mubr.msk.bf16.vlgmr.msra.gmra.mxu0 %vm106_vm0, %v56_v7  ;;  %2862 = vmatmul.mubr.msk.bf16.vlgmr.msra.gmra.mxu1 %vm106_vm0, %v56_v7  ;;  %v3547_v18 = vld [vmem:[#allocation3 + $0xa4] ss:$16 sps:$4 sm:$0xff]   ;;  %v57_v19 = vpack.c.bf16 %v51_v17, %v50_v16  ;;  %v3550_v20 = vld [vmem:[#allocation3 + $0xa0] ss:$16 sps:$4 sm:$0xff]   ;;  %v3552_v21 = vld [vmem:[#allocation3 + $0xac] ss:$16 sps:$4 sm:$0xff]  }
  0x16   :  { %497 = vmatpush1.bf16.msra.mxu0 %v3516_v8  ;;  %538 = vmatpush1.bf16.msra.mxu1 %v3520_v10  ;;  %v3555_v22 = vld [vmem:[#allocation3 + $0xa8] ss:$16 sps:$4 sm:$0xff]   ;;  %v3559_v23 = vld [vmem:[#allocation3 + $0x84] ss:$16 sps:$4 sm:$0xff]   ;;  %v3562_v24 = vld [vmem:[#allocation3 + $0x8c] ss:$16 sps:$4 sm:$0xff]  }
  0x17   :  { %498 = vmatprep.subr.bf16.mxu0 %v3529_v13  ;;  %539 = vmatprep.subr.bf16.mxu1 %v3535_v15  ;;  %v3566_v25 = vld [vmem:[#allocation3 + $0x80] ss:$16 sps:$4 sm:$0xff]   ;;  %v53_v27 = vld [vmem:[%s4159_s0 + $0x28] sm:$0xff]  ;;  %v3580_v29 = vld [vmem:[#allocation3 + $0x64] ss:$16 sps:$4 sm:$0xff]   ;;  %v76_v53 = vsub.s32 2, %v67_v52 }
  0x18   :  { %161 = vmatprep.mubr.bf16.mxu0 %v4169_v0  ;;  %234 = vmatprep.mubr.bf16.mxu1 %v4169_v0  ;;  %v3578_v28 = vld [vmem:[#allocation3 + $0x88] ss:$16 sps:$4 sm:$0xff]   ;;  %v3584_v30 = vld [vmem:[#allocation3 + $0x6c] ss:$16 sps:$4 sm:$0xff]   ;;  %v58_v31 = vpack.c.bf16 %v53_v27, %v52_v26  ;;  %v3587_v32 = vld [vmem:[#allocation3 + $0x60] ss:$16 sps:$4 sm:$0xff]  }
  0x19   :  { %v3589_v33 = vld [vmem:[#allocation3 + $0x68] ss:$16 sps:$4 sm:$0xff]   ;;  %v3593_v34 = vld [vmem:[#allocation3 + $0x44] ss:$16 sps:$4 sm:$0xff]   ;;  %v3596_v35 = vld [vmem:[#allocation3 + $0x40] ss:$16 sps:$4 sm:$0xff]  }
  0x1a   :  { %499 = vmatpush1.bf16.msra.mxu0 %v3525_v12  ;;  %540 = vmatpush1.bf16.msra.mxu1 %v3533_v14  ;;  %v3598_v36 = vld [vmem:[#allocation3 + $0x4c] ss:$16 sps:$4 sm:$0xff]   ;;  %v3602_v37 = vld [vmem:[#allocation3 + $0x48] ss:$16 sps:$4 sm:$0xff]   ;;  %v54_v38 = vld [vmem:[%s4159_s0 + $0x30] sm:$0xff]  ;;  %v68_v54 = vsub.s32 0, %v67_v52 }
  0x1b   :  { %500 = vmatprep.subr.bf16.mxu0 %v3547_v18  ;;  %541 = vmatprep.subr.bf16.mxu1 %v3552_v21  ;;  %v55_v39 = vld [vmem:[%s4159_s0 + $0x38] sm:$0xff]  ;;  %v3614_v40 = vld [vmem:[#allocation3 + $0x24] ss:$16 sps:$4 sm:$0xff]   ;;  %v3618_v41 = vld [vmem:[#allocation3 + $0x20] ss:$16 sps:$4 sm:$0xff]   ;;  %v80_v55 = vsub.s32 3, %v67_v52 }
  0x1c   :  { %v3620_v42 = vld [vmem:[#allocation3 + $0x2c] ss:$16 sps:$4 sm:$0xff]   ;;  %v59_v43 = vpack.c.bf16 %v55_v39, %v54_v38  ;;  %v3622_v44 = vld [vmem:[#allocation3 + $0x28] ss:$16 sps:$4 sm:$0xff]   ;;  %v3624_v45 = vld [vmem:[#allocation3 + $0x4] ss:$16 sps:$4 sm:$0xff]  }
  0x1d   :  { %2859 = vmatmul.mubr.msk.bf16.gmra.mxu0 %vm106_vm0, %v57_v19  ;;  %2863 = vmatmul.mubr.msk.bf16.gmra.mxu1 %vm106_vm0, %v57_v19  ;;  %v3627_v46 = vld [vmem:[#allocation3 + $0xc] ss:$16 sps:$4 sm:$0xff]   ;;  %v3632_v47 = vld [vmem:[#allocation3] ss:$16 sps:$4 sm:$0xff]   ;;  %v3639_v49 = vld [vmem:[#allocation3 + $0x8] ss:$16 sps:$4 sm:$0xff]  }
  0x1e   :  { %501 = vmatpush1.bf16.msra.mxu0 %v3550_v20  ;;  %171 = vmatprep.mubr.bf16.mxu0 %v4169_v0  ;;  %v297_v48 = vld [vmem:[%s4160_s1] sm:$0xff]  ;;  %v72_v60 = vsub.s32 1, %v67_v52 }
  0x1f   :  { %542 = vmatpush1.bf16.msra.mxu1 %v3555_v22  ;;  %502 = vmatprep.subr.bf16.mxu0 %v3559_v23  ;;  %v303_v50 = vpack.c.bf16 %v297_v48, %v297_v48  ;;  %v64_v56 = vld [vmem:[%s4164_s5] sm:$0xf] }
  0x20   :  { %543 = vmatprep.subr.bf16.mxu1 %v3562_v24  ;;  %244 = vmatprep.mubr.bf16.mxu1 %v4169_v0  ;;  %v3692_v59 = vrot.slane %v64_v56, %v76_v53  ;;  %v69_v63 = vrot.slane %v64_v56, %v68_v54  ;;  %v3698_v1 = vrot.slane %v64_v56, %v80_v55 }
  0x21   :  { %v73_v4 = vrot.slane %v64_v56, %v72_v60 }
  0x22   :  { %503 = vmatpush1.bf16.msra.mxu0 %v3566_v25 }
  0x23   :  { %544 = vmatpush1.bf16.msra.mxu1 %v3578_v28  ;;  %504 = vmatprep.subr.bf16.mxu0 %v3580_v29 }
  0x24   :  { %545 = vmatprep.subr.bf16.mxu1 %v3584_v30 }
  0x25   :  { %2860 = vmatmul.mubr.msk.bf16.gmra.mxu0 %vm106_vm0, %v58_v31  ;;  %2864 = vmatmul.mubr.msk.bf16.gmra.mxu1 %vm106_vm0, %v58_v31 }
  0x26   :  { %505 = vmatpush1.bf16.msra.mxu0 %v3587_v32  ;;  %181 = vmatprep.mubr.bf16.mxu0 %v4169_v0 }
  0x27   :  { %546 = vmatpush1.bf16.msra.mxu1 %v3589_v33  ;;  %506 = vmatprep.subr.bf16.mxu0 %v3593_v34 }
  0x28   :  { %547 = vmatprep.subr.bf16.mxu1 %v3598_v36  ;;  %254 = vmatprep.mubr.bf16.mxu1 %v4169_v0 }
  0x2a   :  { %507 = vmatpush1.bf16.msra.mxu0 %v3596_v35 }
  0x2b   :  { %548 = vmatpush1.bf16.msra.mxu1 %v3602_v37  ;;  %508 = vmatprep.subr.bf16.mxu0 %v3614_v40 }
  0x2c   :  { %549 = vmatprep.subr.bf16.mxu1 %v3620_v42 }
  0x2d   :  { %2861 = vmatmul.mubr.msk.bf16.gmra.mxu0 %vm106_vm0, %v59_v43  ;;  %2865 = vmatmul.mubr.msk.bf16.gmra.mxu1 %vm106_vm0, %v59_v43 }
  0x2e   :  { %509 = vmatpush1.bf16.msra.mxu0 %v3618_v41  ;;  %528 = vmatprep.mubr.bf16.mxu0 %v4169_v0 }
  0x2f   :  { %550 = vmatpush1.bf16.msra.mxu1 %v3622_v44  ;;  %510 = vmatprep.subr.bf16.mxu0 %v3624_v45 }
  0x30   :  { %551 = vmatprep.subr.bf16.mxu1 %v3627_v46  ;;  %569 = vmatprep.mubr.bf16.mxu1 %v4169_v0 }
  0x32   :  { %511 = vmatpush1.bf16.msra.mxu0 %v3632_v47 }
  0x33   :  { %552 = vmatpush1.bf16.msra.mxu1 %v3639_v49  ;;  %799 = vmatprep.subr.bf16.mxu0 %v3518_v9 }
  0x34   :  { %840 = vmatprep.subr.bf16.mxu1 %v3522_v11 }
  0x35   :  { %529 = vmatmul.mubr.bf16.vlgmr.msra.gmra.mxu0 %v303_v50 }
  0x36   :  { %570 = vmatmul.mubr.bf16.vlgmr.msra.gmra.mxu1 %v303_v50  ;;  %800 = vmatpush1.bf16.msra.mxu0 %v3516_v8 }
  0x37   :  { %841 = vmatpush1.bf16.msra.mxu1 %v3520_v10  ;;  %801 = vmatprep.subr.bf16.mxu0 %v3529_v13 }
  0x38   :  { %842 = vmatprep.subr.bf16.mxu1 %v3535_v15  ;;  %831 = vmatprep.mubr.bf16.mxu0 %v4169_v0 }
  0x39   :  { %872 = vmatprep.mubr.bf16.mxu1 %v4169_v0 }
  0x3a   :  { %802 = vmatpush1.bf16.msra.mxu0 %v3525_v12 }
  0x3b   :  { %843 = vmatpush1.bf16.msra.mxu1 %v3533_v14  ;;  %803 = vmatprep.subr.bf16.mxu0 %v3547_v18 }
  0x3c   :  { %844 = vmatprep.subr.bf16.mxu1 %v3552_v21 }
  0x3e   :  { %804 = vmatpush1.bf16.msra.mxu0 %v3550_v20 }
  0x3f   :  { %845 = vmatpush1.bf16.msra.mxu1 %v3555_v22  ;;  %805 = vmatprep.subr.bf16.mxu0 %v3559_v23 }
  0x40   :  { %846 = vmatprep.subr.bf16.mxu1 %v3562_v24 }
  0x42   :  { %806 = vmatpush1.bf16.msra.mxu0 %v3566_v25 }
  0x43   :  { %847 = vmatpush1.bf16.msra.mxu1 %v3578_v28  ;;  %807 = vmatprep.subr.bf16.mxu0 %v3580_v29 }
  0x44   :  { %848 = vmatprep.subr.bf16.mxu1 %v3584_v30 }
  0x46   :  { %808 = vmatpush1.bf16.msra.mxu0 %v3587_v32 }
  0x47   :  { %849 = vmatpush1.bf16.msra.mxu1 %v3589_v33  ;;  %809 = vmatprep.subr.bf16.mxu0 %v3593_v34 }
  0x48   :  { %850 = vmatprep.subr.bf16.mxu1 %v3598_v36 }
  0x4a   :  { %810 = vmatpush1.bf16.msra.mxu0 %v3596_v35 }
  0x4b   :  { %851 = vmatpush1.bf16.msra.mxu1 %v3602_v37  ;;  %811 = vmatprep.subr.bf16.mxu0 %v3614_v40 }
  0x4c   :  { %852 = vmatprep.subr.bf16.mxu1 %v3620_v42 }
  0x4e   :  { %812 = vmatpush1.bf16.msra.mxu0 %v3618_v41 }
  0x4f   :  { %853 = vmatpush1.bf16.msra.mxu1 %v3622_v44  ;;  %813 = vmatprep.subr.bf16.mxu0 %v3624_v45 }
  0x50   :  { %854 = vmatprep.subr.bf16.mxu1 %v3627_v46 }
  0x52   :  { %814 = vmatpush1.bf16.msra.mxu0 %v3632_v47 }
  0x53   :  { %855 = vmatpush1.bf16.msra.mxu1 %v3639_v49  ;;  %1103 = vmatprep.subr.bf16.mxu0 %v3518_v9 }
  0x54   :  { %1144 = vmatprep.subr.bf16.mxu1 %v3522_v11 }
  0xd5   :  { %v3688_v57 = vpop.f32.mrf.mxu0  ;;  %v3690_v58 = vpop.f32.mrf.mxu1 }
  0xd7   :  { %v3694_v61 = vpop.f32.mrf.mxu0  ;;  %v3696_v62 = vpop.f32.mrf.mxu1 }
  0xd9   :  { %v157_v2 = vpop.f32.mrf.mxu0  ;;  %v230_v3 = vpop.f32.mrf.mxu1 }
  0xda   :  { %v3700_v5 = vadd.f32 %v157_v2, %v69_v63  ;;  %v3703_v6 = vadd.f32 %v230_v3, %v3692_v59 }
  0xdb   :  { %v159_v7 = vpop.f32.mrf.mxu0  ;;  %v232_v16 = vpop.f32.mrf.mxu1 }
  0xdc   :  { %v3705_v17 = vadd.f32 %v159_v7, %v73_v4  ;;  %v3708_v19 = vadd.f32 %v232_v16, %v3698_v1 }
  0xdd   :  { %v163_v26 = vpop.f32.mrf.mxu0  ;;  %v236_v27 = vpop.f32.mrf.mxu1 }
  0xde   :  { %v3710_v31 = vadd.f32 %v163_v26, %v69_v63  ;;  %v3713_v38 = vadd.f32 %v236_v27, %v3692_v59 }
  0xdf   :  { %v165_v39 = vpop.f32.mrf.mxu0  ;;  %v238_v43 = vpop.f32.mrf.mxu1 }
  0xe0   :  { %v3715_v48 = vadd.f32 %v165_v39, %v73_v4  ;;  %v3718_v50 = vadd.f32 %v238_v43, %v3698_v1 }
  0xe1   :  { %v167_v51 = vpop.f32.mrf.mxu0  ;;  %v240_v52 = vpop.f32.mrf.mxu1 }
  0xe2   :  { %v3720_v53 = vadd.f32 %v167_v51, %v69_v63  ;;  %v3723_v54 = vadd.f32 %v240_v52, %v3692_v59 }
  0xe3   :  { %v169_v55 = vpop.f32.mrf.mxu0  ;;  %v242_v56 = vpop.f32.mrf.mxu1 }
  0xe4   :  { %4171 = vst [vmem:[#allocation12_spill] sm:$0xff] %v3723_v54  ;;  %v3725_v60 = vadd.f32 %v169_v55, %v73_v4  ;;  %v3728_v2 = vadd.f32 %v242_v56, %v3698_v1 }
  0xe5   :  { %v173_v3 = vpop.f32.mrf.mxu0  ;;  %v246_v7 = vpop.f32.mrf.mxu1 }
  0xe6   :  { %4172 = vst [vmem:[#allocation13_spill] sm:$0xff] %v3725_v60  ;;  %4173 = vst [vmem:[#allocation14_spill] sm:$0xff] %v3728_v2  ;;  %v3730_v16 = vadd.f32 %v173_v3, %v69_v63  ;;  %v3733_v26 = vadd.f32 %v246_v7, %v3692_v59 }
  0xe7   :  { %v175_v27 = vpop.f32.mrf.mxu0  ;;  %v248_v39 = vpop.f32.mrf.mxu1 }
  0xe8   :  { %4174 = vst [vmem:[#allocation15_spill] sm:$0xff] %v3730_v16  ;;  %4175 = vst [vmem:[#allocation16_spill] sm:$0xff] %v3733_v26  ;;  %v3735_v43 = vadd.f32 %v175_v27, %v73_v4  ;;  %v3738_v51 = vadd.f32 %v248_v39, %v3698_v1 }
  0xe9   :  { %v177_v52 = vpop.f32.mrf.mxu0  ;;  %v250_v55 = vpop.f32.mrf.mxu1 }
  0xea   :  { %4176 = vst [vmem:[#allocation17_spill] sm:$0xff] %v3735_v43  ;;  %4177 = vst [vmem:[#allocation18_spill] sm:$0xff] %v3738_v51  ;;  %v3740_v0 = vadd.f32 %v177_v52, %v69_v63  ;;  %v3743_v56 = vadd.f32 %v250_v55, %v3692_v59 }
  0xeb   :  { %v179_v2 = vpop.f32.mrf.mxu0  ;;  %v252_v3 = vpop.f32.mrf.mxu1 }
  0xec   :  { %4178 = vst [vmem:[#allocation19_spill] sm:$0xff] %v3740_v0  ;;  %4179 = vst [vmem:[#allocation20_spill] sm:$0xff] %v3743_v56  ;;  %v3745_v16 = vadd.f32 %v179_v2, %v73_v4  ;;  %v3748_v7 = vadd.f32 %v252_v3, %v3698_v1 }
  0xed   :  { %v183_v26 = vpop.f32.mrf.mxu0  ;;  %v256_v27 = vpop.f32.mrf.mxu1 }
  0xee   :  { %4180 = vst [vmem:[#allocation21_spill] sm:$0xff] %v3745_v16  ;;  %4181 = vst [vmem:[#allocation22_spill] sm:$0xff] %v3748_v7  ;;  %v3750_v43 = vadd.f32 %v183_v26, %v69_v63  ;;  %v3753_v39 = vadd.f32 %v256_v27, %v3692_v59 }
  0xef   :  { %v185_v51 = vpop.f32.mrf.mxu0  ;;  %v258_v52 = vpop.f32.mrf.mxu1 }
  0xf0   :  { %4182 = vst [vmem:[#allocation23_spill] sm:$0xff] %v3750_v43  ;;  %4183 = vst [vmem:[#allocation24_spill] sm:$0xff] %v3753_v39  ;;  %v3755_v0 = vadd.f32 %v185_v51, %v73_v4  ;;  %v3758_v55 = vadd.f32 %v258_v52, %v3698_v1  ;;  %v154_v43 = vadd.f32 %v3688_v57, %v69_v63 }
  0xf1   :  { %v187_v56 = vpop.f32.mrf.mxu0  ;;  %v260_v2 = vpop.f32.mrf.mxu1  ;;  %v156_v52 = vadd.f32 %v3694_v61, %v73_v4  ;;  %v229_v61 = vadd.f32 %v3696_v62, %v3698_v1 }
  0xf2   :  { %4184 = vst [vmem:[#allocation25_spill] sm:$0xff] %v3755_v0  ;;  %4185 = vst [vmem:[#allocation26_spill] sm:$0xff] %v3758_v55  ;;  %v3760_v16 = vadd.f32 %v187_v56, %v69_v63  ;;  %v3763_v3 = vadd.f32 %v260_v2, %v3692_v59 }
  0xf3   :  { %v189_v7 = vpop.f32.mrf.mxu0  ;;  %v262_v26 = vpop.f32.mrf.mxu1 }
  0xf4   :  { %4186 = vst [vmem:[#allocation27_spill] sm:$0xff] %v3760_v16  ;;  %4187 = vst [vmem:[#allocation28_spill] sm:$0xff] %v3763_v3  ;;  %v3766_v27 = vadd.f32 %v189_v7, %v73_v4  ;;  %v3769_v39 = vadd.f32 %v262_v26, %v3698_v1  ;;  %v227_v3 = vadd.f32 %v3690_v58, %v3692_v59  ;;  %v298_v58 = vld [vmem:[%s4161_s2] sm:$0xff] }
  0xf5   :  { %v530_v51 = vpop.f32.mrf.mxu0 }
  0xf6   :  { %4188 = vst [vmem:[#allocation29_spill] sm:$0xff] %v3766_v27  ;;  %v578_v55 = vadd.f32 %v530_v51, %v154_v43  ;;  %v571_v0 = vpop.f32.mrf.mxu1 }
  0xf7   :  { %v532_v54 = vpop.f32.mrf.mxu0  ;;  %v580_v27 = vadd.f32 %v571_v0, %v227_v3 }
  0xf8   :  { %v582_v56 = vmul.f32 0.5, %v578_v55  ;;  %v579_v16 = vadd.f32 %v532_v54, %v156_v52  ;;  %v573_v60 = vpop.f32.mrf.mxu1 }
  0xf9   :  { %v534_v2 = vpop.f32.mrf.mxu0  ;;  %v581_v4 = vadd.f32 %v573_v60, %v229_v61 }
  0xfa   :  { %3287 = vtanh.f32 %v582_v56  ;;  %v586_v57 = vmul.f32 0.5, %v579_v16  ;;  %v575_v63 = vpop.f32.mrf.mxu1 }
  0xfb   :  { %v535_v7 = vpop.f32.mrf.mxu0  ;;  %v591_v43 = vmul.f32 0.5, %v581_v4 }
  0xfc   :  { %3289 = vtanh.f32 %v586_v57  ;;  %v576_v26 = vpop.f32.mrf.mxu1  ;;  %v4189_v7 = vmov 0  }
  0xfd   :  { %3291 = vtanh.f32 %v580_v27 }
  0xfe   :  { %3293 = vtanh.f32 %v591_v43 }
 0x107   :  { %v3288_v55 = vpop.eup %3287 }
 0x108   :  { %v584_v54 = vmul.f32 0.5, %v3288_v55 }
 0x109   :  { %v3290_v51 = vpop.eup %3289 }
 0x10a   :  { %v585_v52 = vadd.f32 0.5, %v584_v54  ;;  %v588_v2 = vmul.f32 0.5, %v3290_v51  ;;  %v3292_v0 = vpop.eup %3291 }
 0x10b   :  { %v3294_v62 = vpop.eup %3293 }
 0x10c   :  { %v589_v59 = vadd.f32 0.5, %v588_v2  ;;  %v596_v3 = vmul.f32 %v3292_v0, %v585_v52  ;;  %v593_v1 = vmul.f32 0.5, %v3294_v62 }
 0x10e   :  { %v595_v16 = vmul.f32 %v589_v59, %v298_v58  ;;  %v594_v60 = vadd.f32 0.5, %v593_v1 }
 0x110   :  { %v3779_v56 = vadd.f32 %v596_v3, %v595_v16 }
 0x112   :  { %3295 = vtanh.f32 %v3779_v56 }
 0x11f   :  { %v3296_v27 = vpop.eup %3295 }
 0x120   :  { %v599_v57 = vmul.f32 %v3296_v27, %v594_v60 }
 0x122   :  { %600 = vst [vmem:[#allocation7] sm:$0xff] %v599_v57  ;;  %v606_v63 = vpack.c.bf16 %v599_v57, %v599_v57 }
 0x124   :  { %832 = vmatmul.mubr.bf16.vlgmr.msra.gmra.mxu0 %v606_v63  ;;  %873 = vmatmul.mubr.bf16.vlgmr.msra.gmra.mxu1 %v606_v63 }
 0x125   :  { %1104 = vmatpush1.bf16.msra.mxu0 %v3516_v8  ;;  %1145 = vmatpush1.bf16.msra.mxu1 %v3520_v10 }
 0x126   :  { %1105 = vmatprep.subr.bf16.mxu0 %v3529_v13  ;;  %1146 = vmatprep.subr.bf16.mxu1 %v3535_v15 }
 0x127   :  { %1135 = vmatprep.mubr.bf16.mxu0 %v4189_v7  ;;  %1176 = vmatprep.mubr.bf16.mxu1 %v4189_v7 }
 0x129   :  { %1106 = vmatpush1.bf16.msra.mxu0 %v3525_v12  ;;  %1147 = vmatpush1.bf16.msra.mxu1 %v3533_v14 }
 0x12a   :  { %1107 = vmatprep.subr.bf16.mxu0 %v3547_v18  ;;  %1148 = vmatprep.subr.bf16.mxu1 %v3552_v21 }
 0x12d   :  { %1108 = vmatpush1.bf16.msra.mxu0 %v3550_v20  ;;  %1149 = vmatpush1.bf16.msra.mxu1 %v3555_v22 }
 0x12e   :  { %1109 = vmatprep.subr.bf16.mxu0 %v3559_v23  ;;  %1150 = vmatprep.subr.bf16.mxu1 %v3562_v24 }
 0x131   :  { %1110 = vmatpush1.bf16.msra.mxu0 %v3566_v25  ;;  %1151 = vmatpush1.bf16.msra.mxu1 %v3578_v28 }
 0x132   :  { %1111 = vmatprep.subr.bf16.mxu0 %v3580_v29  ;;  %1152 = vmatprep.subr.bf16.mxu1 %v3584_v30 }
 0x135   :  { %1112 = vmatpush1.bf16.msra.mxu0 %v3587_v32  ;;  %1153 = vmatpush1.bf16.msra.mxu1 %v3589_v33 }
 0x136   :  { %1113 = vmatprep.subr.bf16.mxu0 %v3593_v34  ;;  %1154 = vmatprep.subr.bf16.mxu1 %v3598_v36 }
 0x139   :  { %1114 = vmatpush1.bf16.msra.mxu0 %v3596_v35  ;;  %1155 = vmatpush1.bf16.msra.mxu1 %v3602_v37 }
 0x13a   :  { %1115 = vmatprep.subr.bf16.mxu0 %v3614_v40  ;;  %1156 = vmatprep.subr.bf16.mxu1 %v3620_v42 }
 0x13d   :  { %1116 = vmatpush1.bf16.msra.mxu0 %v3618_v41  ;;  %1157 = vmatpush1.bf16.msra.mxu1 %v3622_v44 }
 0x13e   :  { %1117 = vmatprep.subr.bf16.mxu0 %v3624_v45  ;;  %1158 = vmatprep.subr.bf16.mxu1 %v3627_v46 }
 0x141   :  { %1118 = vmatpush1.bf16.msra.mxu0 %v3632_v47  ;;  %1159 = vmatpush1.bf16.msra.mxu1 %v3639_v49 }
 0x142   :  { %1407 = vmatprep.subr.bf16.mxu0 %v3518_v9  ;;  %1448 = vmatprep.subr.bf16.mxu1 %v3522_v11 }
 0x1e4   :  { %v833_v26 = vpop.f32.mrf.mxu0  ;;  %v874_v61 = vpop.f32.mrf.mxu1 }
 0x1e5   :  { %v881_v4 = vadd.f32 %v833_v26, %v3700_v5  ;;  %v883_v58 = vadd.f32 %v874_v61, %v3703_v6 }
 0x1e6   :  { %v835_v43 = vpop.f32.mrf.mxu0  ;;  %v876_v55 = vpop.f32.mrf.mxu1 }
 0x1e7   :  { %v885_v54 = vmul.f32 0.5, %v881_v4  ;;  %v882_v51 = vadd.f32 %v835_v43, %v3705_v17  ;;  %v884_v9 = vadd.f32 %v876_v55, %v3708_v19 }
 0x1e8   :  { %v837_v52 = vpop.f32.mrf.mxu0  ;;  %v878_v2 = vpop.f32.mrf.mxu1 }
 0x1e9   :  { %3297 = vtanh.f32 %v885_v54  ;;  %v889_v59 = vmul.f32 0.5, %v882_v51  ;;  %v894_v11 = vmul.f32 0.5, %v884_v9  ;;  %v3878_v54 = vld [vmem:[#allocation3 + $0xc4] ss:$16 sps:$4 sm:$0xff]   ;;  %v3880_v51 = vld [vmem:[#allocation3 + $0xcc] ss:$16 sps:$4 sm:$0xff]  }
 0x1ea   :  { %v838_v0 = vpop.f32.mrf.mxu0  ;;  %v879_v16 = vpop.f32.mrf.mxu1  ;;  %v3882_v52 = vld [vmem:[#allocation3 + $0xc0] ss:$16 sps:$4 sm:$0xff]   ;;  %v3884_v2 = vld [vmem:[#allocation3 + $0xc8] ss:$16 sps:$4 sm:$0xff]   ;;  %v3902_v9 = vld [vmem:[#allocation3 + $0x84] ss:$16 sps:$4 sm:$0xff]  }
 0x1eb   :  { %3299 = vtanh.f32 %v889_v59  ;;  %v3892_v59 = vld [vmem:[#allocation3 + $0xac] ss:$16 sps:$4 sm:$0xff]   ;;  %v3894_v0 = vld [vmem:[#allocation3 + $0xa0] ss:$16 sps:$4 sm:$0xff]   ;;  %v3896_v16 = vld [vmem:[#allocation3 + $0xa8] ss:$16 sps:$4 sm:$0xff]  }
 0x1ec   :  { %3301 = vtanh.f32 %v883_v58  ;;  %v3890_v58 = vld [vmem:[#allocation3 + $0xa4] ss:$16 sps:$4 sm:$0xff]  }
 0x1ed   :  { %3303 = vtanh.f32 %v894_v11  ;;  %v3904_v11 = vld [vmem:[#allocation3 + $0x8c] ss:$16 sps:$4 sm:$0xff]  }
 0x1f6   :  { %v3298_v3 = vpop.eup %3297 }
 0x1f7   :  { %v887_v5 = vmul.f32 0.5, %v3298_v3  ;;  %v3906_v3 = vld [vmem:[#allocation3 + $0x80] ss:$16 sps:$4 sm:$0xff]  }
 0x1f8   :  { %v3300_v62 = vpop.eup %3299 }
 0x1f9   :  { %v888_v1 = vadd.f32 0.5, %v887_v5  ;;  %v891_v60 = vmul.f32 0.5, %v3300_v62  ;;  %v3302_v17 = vpop.eup %3301  ;;  %v3908_v5 = vld [vmem:[#allocation3 + $0x88] ss:$16 sps:$4 sm:$0xff]   ;;  %v3914_v62 = vld [vmem:[#allocation3 + $0x64] ss:$16 sps:$4 sm:$0xff]  }
 0x1fa   :  { %v3304_v26 = vpop.eup %3303 }
 0x1fb   :  { %v892_v27 = vadd.f32 0.5, %v891_v60  ;;  %v899_v57 = vmul.f32 %v3302_v17, %v888_v1  ;;  %v896_v61 = vmul.f32 0.5, %v3304_v26  ;;  %v3916_v1 = vld [vmem:[#allocation3 + $0x6c] ss:$16 sps:$4 sm:$0xff]   ;;  %v3918_v60 = vld [vmem:[#allocation3 + $0x60] ss:$16 sps:$4 sm:$0xff]  }
 0x1fc   :  { %v3920_v17 = vld [vmem:[#allocation3 + $0x68] ss:$16 sps:$4 sm:$0xff]   ;;  %v3938_v26 = vld [vmem:[#allocation3 + $0x24] ss:$16 sps:$4 sm:$0xff]  }
 0x1fd   :  { %v898_v63 = vmul.f32 %v892_v27, %v3779_v56  ;;  %v897_v4 = vadd.f32 0.5, %v896_v61  ;;  %v3872_v56 = vld [vmem:[#allocation3 + $0xe8] ss:$16 sps:$4 sm:$0xff]   ;;  %v3926_v27 = vld [vmem:[#allocation3 + $0x44] ss:$16 sps:$4 sm:$0xff]  }
 0x1fe   :  { %v3940_v61 = vld [vmem:[#allocation3 + $0x2c] ss:$16 sps:$4 sm:$0xff]  }
 0x1ff   :  { %v3821_v6 = vadd.f32 %v899_v57, %v898_v63  ;;  %v3928_v57 = vld [vmem:[#allocation3 + $0x4c] ss:$16 sps:$4 sm:$0xff]   ;;  %v3930_v63 = vld [vmem:[#allocation3 + $0x40] ss:$16 sps:$4 sm:$0xff]  }
 0x201   :  { %3305 = vtanh.f32 %v3821_v6 }
 0x20e   :  { %v3306_v19 = vpop.eup %3305 }
 0x20f   :  { %v902_v43 = vmul.f32 %v3306_v19, %v897_v4  ;;  %v3942_v4 = vld [vmem:[#allocation3 + $0x20] ss:$16 sps:$4 sm:$0xff]   ;;  %v3944_v19 = vld [vmem:[#allocation3 + $0x28] ss:$16 sps:$4 sm:$0xff]  }
 0x211   :  { %904 = vst [vmem:[#allocation7 + $0x8] sm:$0xff] %v902_v43  ;;  %v910_v55 = vpack.c.bf16 %v902_v43, %v902_v43  ;;  %v3950_v43 = vld [vmem:[#allocation3 + $0x4] ss:$16 sps:$4 sm:$0xff]  }
 0x213   :  { %1136 = vmatmul.mubr.bf16.vlgmr.msra.gmra.mxu0 %v910_v55  ;;  %1177 = vmatmul.mubr.bf16.vlgmr.msra.gmra.mxu1 %v910_v55  ;;  %v3952_v55 = vld [vmem:[#allocation3 + $0xc] ss:$16 sps:$4 sm:$0xff]  }
 0x214   :  { %1408 = vmatpush1.bf16.msra.mxu0 %v3516_v8  ;;  %1449 = vmatpush1.bf16.msra.mxu1 %v3520_v10 }
 0x215   :  { %1409 = vmatprep.subr.bf16.mxu0 %v3529_v13  ;;  %1450 = vmatprep.subr.bf16.mxu1 %v3535_v15 }
 0x216   :  { %1439 = vmatprep.mubr.bf16.mxu0 %v4189_v7  ;;  %1480 = vmatprep.mubr.bf16.mxu1 %v4189_v7 }
 0x218   :  { %1410 = vmatpush1.bf16.msra.mxu0 %v3525_v12  ;;  %1451 = vmatpush1.bf16.msra.mxu1 %v3533_v14 }
 0x219   :  { %1411 = vmatprep.subr.bf16.mxu0 %v3547_v18  ;;  %1452 = vmatprep.subr.bf16.mxu1 %v3552_v21 }
 0x21c   :  { %1412 = vmatpush1.bf16.msra.mxu0 %v3550_v20  ;;  %1453 = vmatpush1.bf16.msra.mxu1 %v3555_v22 }
 0x21d   :  { %1413 = vmatprep.subr.bf16.mxu0 %v3559_v23  ;;  %1454 = vmatprep.subr.bf16.mxu1 %v3562_v24 }
 0x220   :  { %1414 = vmatpush1.bf16.msra.mxu0 %v3566_v25  ;;  %1455 = vmatpush1.bf16.msra.mxu1 %v3578_v28 }
 0x221   :  { %1415 = vmatprep.subr.bf16.mxu0 %v3580_v29  ;;  %1456 = vmatprep.subr.bf16.mxu1 %v3584_v30 }
 0x224   :  { %1416 = vmatpush1.bf16.msra.mxu0 %v3587_v32  ;;  %1457 = vmatpush1.bf16.msra.mxu1 %v3589_v33 }
 0x225   :  { %1417 = vmatprep.subr.bf16.mxu0 %v3593_v34  ;;  %1458 = vmatprep.subr.bf16.mxu1 %v3598_v36 }
 0x228   :  { %1418 = vmatpush1.bf16.msra.mxu0 %v3596_v35  ;;  %1459 = vmatpush1.bf16.msra.mxu1 %v3602_v37 }
 0x229   :  { %1419 = vmatprep.subr.bf16.mxu0 %v3614_v40  ;;  %1460 = vmatprep.subr.bf16.mxu1 %v3620_v42 }
 0x22c   :  { %1420 = vmatpush1.bf16.msra.mxu0 %v3618_v41  ;;  %1461 = vmatpush1.bf16.msra.mxu1 %v3622_v44 }
 0x22d   :  { %1421 = vmatprep.subr.bf16.mxu0 %v3624_v45  ;;  %1462 = vmatprep.subr.bf16.mxu1 %v3627_v46 }
 0x230   :  { %1422 = vmatpush1.bf16.msra.mxu0 %v3632_v47  ;;  %1463 = vmatpush1.bf16.msra.mxu1 %v3639_v49 }
 0x2d3   :  { %v1137_v8 = vpop.f32.mrf.mxu0  ;;  %v1178_v10 = vpop.f32.mrf.mxu1 }
 0x2d4   :  { %v1185_v12 = vadd.f32 %v1137_v8, %v3710_v31  ;;  %v1187_v22 = vadd.f32 %v1178_v10, %v3713_v38  ;;  %v3866_v38 = vld [vmem:[#allocation3 + $0xe4] ss:$16 sps:$4 sm:$0xff]   ;;  %v3954_v8 = vld [vmem:[#allocation3] ss:$16 sps:$4 sm:$0xff]   ;;  %v3956_v10 = vld [vmem:[#allocation3 + $0x8] ss:$16 sps:$4 sm:$0xff]  }
 0x2d5   :  { %v1139_v13 = vpop.f32.mrf.mxu0  ;;  %v1180_v14 = vpop.f32.mrf.mxu1  ;;  %1711 = vmatprep.subr.bf16.mxu0 %v3866_v38 }
 0x2d6   :  { %v1189_v15 = vmul.f32 0.5, %v1185_v12  ;;  %v1186_v18 = vadd.f32 %v1139_v13, %v3715_v48  ;;  %v1188_v28 = vadd.f32 %v1180_v14, %v3718_v50  ;;  %v3868_v48 = vld [vmem:[#allocation3 + $0xec] ss:$16 sps:$4 sm:$0xff]   ;;  %v3870_v50 = vld [vmem:[#allocation3 + $0xe0] ss:$16 sps:$4 sm:$0xff]  }
 0x2d7   :  { %v1141_v20 = vpop.f32.mrf.mxu0  ;;  %v1182_v21 = vpop.f32.mrf.mxu1  ;;  %1752 = vmatprep.subr.bf16.mxu1 %v3868_v48 }
 0x2d8   :  { %3307 = vtanh.f32 %v1189_v15  ;;  %v1193_v23 = vmul.f32 0.5, %v1186_v18  ;;  %v1198_v29 = vmul.f32 0.5, %v1188_v28  ;;  %v4190_v21 = vld [vmem:[#allocation13_spill] sm:$0xff] }
 0x2d9   :  { %v1142_v24 = vpop.f32.mrf.mxu0  ;;  %v1183_v25 = vpop.f32.mrf.mxu1 }
 0x2da   :  { %3309 = vtanh.f32 %v1193_v23  ;;  %v4191_v25 = vld [vmem:[#allocation12_spill] sm:$0xff] }
 0x2db   :  { %3311 = vtanh.f32 %v1187_v22 }
 0x2dc   :  { %3313 = vtanh.f32 %v1198_v29 }
 0x2e5   :  { %v3308_v30 = vpop.eup %3307 }
 0x2e6   :  { %v1191_v32 = vmul.f32 0.5, %v3308_v30 }
 0x2e7   :  { %v3310_v33 = vpop.eup %3309 }
 0x2e8   :  { %v1192_v34 = vadd.f32 0.5, %v1191_v32  ;;  %v1195_v35 = vmul.f32 0.5, %v3310_v33  ;;  %v3312_v36 = vpop.eup %3311  ;;  %v4192_v33 = vld [vmem:[#allocation14_spill] sm:$0xff] }
 0x2e9   :  { %v3314_v44 = vpop.eup %3313 }
 0x2ea   :  { %v1196_v37 = vadd.f32 0.5, %v1195_v35  ;;  %v1203_v40 = vmul.f32 %v3312_v36, %v1192_v34  ;;  %v1200_v45 = vmul.f32 0.5, %v3314_v44 }
 0x2ec   :  { %v1202_v41 = vmul.f32 %v1196_v37, %v3821_v6  ;;  %v1201_v46 = vadd.f32 0.5, %v1200_v45  ;;  %v3932_v6 = vld [vmem:[#allocation3 + $0x48] ss:$16 sps:$4 sm:$0xff]  }
 0x2ee   :  { %v3861_v42 = vadd.f32 %v1203_v40, %v1202_v41 }
 0x2f0   :  { %3315 = vtanh.f32 %v3861_v42 }
 0x2fd   :  { %v3316_v47 = vpop.eup %3315 }
 0x2fe   :  { %v1206_v49 = vmul.f32 %v3316_v47, %v1201_v46 }
 0x300   :  { %1208 = vst [vmem:[#allocation7 + $0x10] sm:$0xff] %v1206_v49  ;;  %v1214_v31 = vpack.c.bf16 %v1206_v49, %v1206_v49 }
 0x302   :  { %1440 = vmatmul.mubr.bf16.vlgmr.msra.gmra.mxu0 %v1214_v31  ;;  %1481 = vmatmul.mubr.bf16.vlgmr.msra.gmra.mxu1 %v1214_v31 }
 0x303   :  { %1743 = vmatprep.mubr.bf16.mxu0 %v4189_v7  ;;  %1784 = vmatprep.mubr.bf16.mxu1 %v4189_v7 }
 0x304   :  { %1712 = vmatpush1.bf16.msra.mxu0 %v3870_v50  ;;  %1753 = vmatpush1.bf16.msra.mxu1 %v3872_v56 }
 0x305   :  { %1713 = vmatprep.subr.bf16.mxu0 %v3878_v54  ;;  %1754 = vmatprep.subr.bf16.mxu1 %v3880_v51 }
 0x308   :  { %1714 = vmatpush1.bf16.msra.mxu0 %v3882_v52  ;;  %1755 = vmatpush1.bf16.msra.mxu1 %v3884_v2 }
 0x309   :  { %1715 = vmatprep.subr.bf16.mxu0 %v3890_v58  ;;  %1756 = vmatprep.subr.bf16.mxu1 %v3892_v59 }
 0x30c   :  { %1716 = vmatpush1.bf16.msra.mxu0 %v3894_v0  ;;  %1757 = vmatpush1.bf16.msra.mxu1 %v3896_v16 }
 0x30d   :  { %1717 = vmatprep.subr.bf16.mxu0 %v3902_v9  ;;  %1758 = vmatprep.subr.bf16.mxu1 %v3904_v11 }
 0x310   :  { %1718 = vmatpush1.bf16.msra.mxu0 %v3906_v3  ;;  %1759 = vmatpush1.bf16.msra.mxu1 %v3908_v5 }
 0x311   :  { %1719 = vmatprep.subr.bf16.mxu0 %v3914_v62  ;;  %1760 = vmatprep.subr.bf16.mxu1 %v3916_v1 }
 0x314   :  { %1720 = vmatpush1.bf16.msra.mxu0 %v3918_v60  ;;  %1761 = vmatpush1.bf16.msra.mxu1 %v3920_v17 }
 0x315   :  { %1721 = vmatprep.subr.bf16.mxu0 %v3926_v27  ;;  %1762 = vmatprep.subr.bf16.mxu1 %v3928_v57 }
 0x318   :  { %1722 = vmatpush1.bf16.msra.mxu0 %v3930_v63  ;;  %1763 = vmatpush1.bf16.msra.mxu1 %v3932_v6 }
 0x319   :  { %1723 = vmatprep.subr.bf16.mxu0 %v3938_v26  ;;  %1764 = vmatprep.subr.bf16.mxu1 %v3940_v61 }
 0x31c   :  { %1724 = vmatpush1.bf16.msra.mxu0 %v3942_v4  ;;  %1765 = vmatpush1.bf16.msra.mxu1 %v3944_v19 }
 0x31d   :  { %1725 = vmatprep.subr.bf16.mxu0 %v3950_v43  ;;  %1766 = vmatprep.subr.bf16.mxu1 %v3952_v55 }
 0x320   :  { %1726 = vmatpush1.bf16.msra.mxu0 %v3954_v8  ;;  %1767 = vmatpush1.bf16.msra.mxu1 %v3956_v10 }
 0x321   :  { %2015 = vmatprep.subr.bf16.mxu0 %v3866_v38  ;;  %2056 = vmatprep.subr.bf16.mxu1 %v3868_v48 }
 0x3c2   :  { %v1441_v12 = vpop.f32.mrf.mxu0  ;;  %v1482_v13 = vpop.f32.mrf.mxu1 }
 0x3c3   :  { %v1489_v14 = vadd.f32 %v1441_v12, %v3720_v53  ;;  %v1491_v28 = vadd.f32 %v1482_v13, %v4191_v25 }
 0x3c4   :  { %v1443_v15 = vpop.f32.mrf.mxu0  ;;  %v1484_v18 = vpop.f32.mrf.mxu1 }
 0x3c5   :  { %v1493_v20 = vmul.f32 0.5, %v1489_v14  ;;  %v1490_v22 = vadd.f32 %v1443_v15, %v4190_v21  ;;  %v1492_v34 = vadd.f32 %v1484_v18, %v4192_v33  ;;  %v4193_v21 = vld [vmem:[#allocation15_spill] sm:$0xff]  ;;  %v4195_v33 = vld [vmem:[#allocation16_spill] sm:$0xff] }
 0x3c6   :  { %v1445_v23 = vpop.f32.mrf.mxu0  ;;  %v1486_v24 = vpop.f32.mrf.mxu1 }
 0x3c7   :  { %3317 = vtanh.f32 %v1493_v20  ;;  %v1497_v29 = vmul.f32 0.5, %v1490_v22  ;;  %v1502_v35 = vmul.f32 0.5, %v1492_v34 }
 0x3c8   :  { %v1446_v30 = vpop.f32.mrf.mxu0  ;;  %v1487_v32 = vpop.f32.mrf.mxu1 }
 0x3c9   :  { %3319 = vtanh.f32 %v1497_v29 }
 0x3ca   :  { %3321 = vtanh.f32 %v1491_v28  ;;  %v4194_v28 = vld [vmem:[#allocation17_spill] sm:$0xff] }
 0x3cb   :  { %3323 = vtanh.f32 %v1502_v35 }
 0x3d4   :  { %v3318_v36 = vpop.eup %3317 }
 0x3d5   :  { %v1495_v53 = vmul.f32 0.5, %v3318_v36 }
 0x3d6   :  { %v3320_v37 = vpop.eup %3319 }
 0x3d7   :  { %v1496_v40 = vadd.f32 0.5, %v1495_v53  ;;  %v1499_v41 = vmul.f32 0.5, %v3320_v37  ;;  %v3322_v44 = vpop.eup %3321  ;;  %v4196_v37 = vld [vmem:[#allocation18_spill] sm:$0xff] }
 0x3d8   :  { %v3324_v31 = vpop.eup %3323 }
 0x3d9   :  { %v1500_v45 = vadd.f32 0.5, %v1499_v41  ;;  %v1507_v46 = vmul.f32 %v3322_v44, %v1496_v40  ;;  %v1504_v12 = vmul.f32 0.5, %v3324_v31 }
 0x3db   :  { %v1506_v47 = vmul.f32 %v1500_v45, %v3861_v42  ;;  %v1505_v13 = vadd.f32 0.5, %v1504_v12 }
 0x3dd   :  { %v3969_v49 = vadd.f32 %v1507_v46, %v1506_v47 }
 0x3df   :  { %3325 = vtanh.f32 %v3969_v49 }
 0x3ec   :  { %v3326_v14 = vpop.eup %3325 }
 0x3ed   :  { %v1510_v15 = vmul.f32 %v3326_v14, %v1505_v13 }
 0x3ef   :  { %1512 = vst [vmem:[#allocation7 + $0x18] sm:$0xff] %v1510_v15  ;;  %v1518_v18 = vpack.c.bf16 %v1510_v15, %v1510_v15 }
 0x3f1   :  { %1744 = vmatmul.mubr.bf16.vlgmr.msra.gmra.mxu0 %v1518_v18  ;;  %1785 = vmatmul.mubr.bf16.vlgmr.msra.gmra.mxu1 %v1518_v18 }
 0x3f2   :  { %2016 = vmatpush1.bf16.msra.mxu0 %v3870_v50  ;;  %2057 = vmatpush1.bf16.msra.mxu1 %v3872_v56 }
 0x3f3   :  { %2017 = vmatprep.subr.bf16.mxu0 %v3878_v54  ;;  %2058 = vmatprep.subr.bf16.mxu1 %v3880_v51 }
 0x3f4   :  { %2047 = vmatprep.mubr.bf16.mxu0 %v4189_v7  ;;  %2088 = vmatprep.mubr.bf16.mxu1 %v4189_v7 }
 0x3f6   :  { %2018 = vmatpush1.bf16.msra.mxu0 %v3882_v52  ;;  %2059 = vmatpush1.bf16.msra.mxu1 %v3884_v2 }
 0x3f7   :  { %2019 = vmatprep.subr.bf16.mxu0 %v3890_v58  ;;  %2060 = vmatprep.subr.bf16.mxu1 %v3892_v59 }
 0x3fa   :  { %2020 = vmatpush1.bf16.msra.mxu0 %v3894_v0  ;;  %2061 = vmatpush1.bf16.msra.mxu1 %v3896_v16 }
 0x3fb   :  { %2021 = vmatprep.subr.bf16.mxu0 %v3902_v9  ;;  %2062 = vmatprep.subr.bf16.mxu1 %v3904_v11 }
 0x3fe   :  { %2022 = vmatpush1.bf16.msra.mxu0 %v3906_v3  ;;  %2063 = vmatpush1.bf16.msra.mxu1 %v3908_v5 }
 0x3ff   :  { %2023 = vmatprep.subr.bf16.mxu0 %v3914_v62  ;;  %2064 = vmatprep.subr.bf16.mxu1 %v3916_v1 }
 0x402   :  { %2024 = vmatpush1.bf16.msra.mxu0 %v3918_v60  ;;  %2065 = vmatpush1.bf16.msra.mxu1 %v3920_v17 }
 0x403   :  { %2025 = vmatprep.subr.bf16.mxu0 %v3926_v27  ;;  %2066 = vmatprep.subr.bf16.mxu1 %v3928_v57 }
 0x406   :  { %2026 = vmatpush1.bf16.msra.mxu0 %v3930_v63  ;;  %2067 = vmatpush1.bf16.msra.mxu1 %v3932_v6 }
 0x407   :  { %2027 = vmatprep.subr.bf16.mxu0 %v3938_v26  ;;  %2068 = vmatprep.subr.bf16.mxu1 %v3940_v61 }
 0x40a   :  { %2028 = vmatpush1.bf16.msra.mxu0 %v3942_v4  ;;  %2069 = vmatpush1.bf16.msra.mxu1 %v3944_v19 }
 0x40b   :  { %2029 = vmatprep.subr.bf16.mxu0 %v3950_v43  ;;  %2070 = vmatprep.subr.bf16.mxu1 %v3952_v55 }
 0x40e   :  { %2030 = vmatpush1.bf16.msra.mxu0 %v3954_v8  ;;  %2071 = vmatpush1.bf16.msra.mxu1 %v3956_v10 }
 0x40f   :  { %2319 = vmatprep.subr.bf16.mxu0 %v3866_v38  ;;  %2360 = vmatprep.subr.bf16.mxu1 %v3868_v48 }
 0x4b1   :  { %v1745_v42 = vpop.f32.mrf.mxu0  ;;  %v1786_v20 = vpop.f32.mrf.mxu1 }
 0x4b2   :  { %v1793_v22 = vadd.f32 %v1745_v42, %v4193_v21  ;;  %v1795_v34 = vadd.f32 %v1786_v20, %v4195_v33 }
 0x4b3   :  { %v1747_v23 = vpop.f32.mrf.mxu0  ;;  %v1788_v24 = vpop.f32.mrf.mxu1 }
 0x4b4   :  { %v1797_v25 = vmul.f32 0.5, %v1793_v22  ;;  %v1794_v29 = vadd.f32 %v1747_v23, %v4194_v28  ;;  %v1796_v40 = vadd.f32 %v1788_v24, %v4196_v37  ;;  %v4197_v28 = vld [vmem:[#allocation19_spill] sm:$0xff]  ;;  %v4199_v37 = vld [vmem:[#allocation20_spill] sm:$0xff] }
 0x4b5   :  { %v1749_v30 = vpop.f32.mrf.mxu0  ;;  %v1790_v32 = vpop.f32.mrf.mxu1 }
 0x4b6   :  { %3327 = vtanh.f32 %v1797_v25  ;;  %v1801_v35 = vmul.f32 0.5, %v1794_v29  ;;  %v1806_v41 = vmul.f32 0.5, %v1796_v40 }
 0x4b7   :  { %v1750_v36 = vpop.f32.mrf.mxu0  ;;  %v1791_v53 = vpop.f32.mrf.mxu1 }
 0x4b8   :  { %3329 = vtanh.f32 %v1801_v35 }
 0x4b9   :  { %3331 = vtanh.f32 %v1795_v34  ;;  %v4198_v34 = vld [vmem:[#allocation21_spill] sm:$0xff] }
 0x4ba   :  { %3333 = vtanh.f32 %v1806_v41 }
 0x4c3   :  { %v3328_v44 = vpop.eup %3327 }
 0x4c4   :  { %v1799_v45 = vmul.f32 0.5, %v3328_v44 }
 0x4c5   :  { %v3330_v46 = vpop.eup %3329 }
 0x4c6   :  { %v1800_v47 = vadd.f32 0.5, %v1799_v45  ;;  %v1803_v31 = vmul.f32 0.5, %v3330_v46  ;;  %v3332_v12 = vpop.eup %3331 }
 0x4c7   :  { %v3334_v42 = vpop.eup %3333 }
 0x4c8   :  { %v1804_v13 = vadd.f32 0.5, %v1803_v31  ;;  %v1811_v14 = vmul.f32 %v3332_v12, %v1800_v47  ;;  %v1808_v20 = vmul.f32 0.5, %v3334_v42 }
 0x4ca   :  { %v1810_v15 = vmul.f32 %v1804_v13, %v3969_v49  ;;  %v1809_v21 = vadd.f32 0.5, %v1808_v20 }
 0x4cc   :  { %v4011_v18 = vadd.f32 %v1811_v14, %v1810_v15 }
 0x4ce   :  { %3335 = vtanh.f32 %v4011_v18 }
 0x4db   :  { %v3336_v22 = vpop.eup %3335 }
 0x4dc   :  { %v1814_v23 = vmul.f32 %v3336_v22, %v1809_v21 }
 0x4de   :  { %1816 = vst [vmem:[#allocation7 + $0x20] sm:$0xff] %v1814_v23  ;;  %v1822_v24 = vpack.c.bf16 %v1814_v23, %v1814_v23 }
 0x4e0   :  { %2048 = vmatmul.mubr.bf16.vlgmr.msra.gmra.mxu0 %v1822_v24  ;;  %2089 = vmatmul.mubr.bf16.vlgmr.msra.gmra.mxu1 %v1822_v24 }
 0x4e1   :  { %2320 = vmatpush1.bf16.msra.mxu0 %v3870_v50  ;;  %2361 = vmatpush1.bf16.msra.mxu1 %v3872_v56 }
 0x4e2   :  { %2321 = vmatprep.subr.bf16.mxu0 %v3878_v54  ;;  %2362 = vmatprep.subr.bf16.mxu1 %v3880_v51 }
 0x4e3   :  { %2351 = vmatprep.mubr.bf16.mxu0 %v4189_v7  ;;  %2392 = vmatprep.mubr.bf16.mxu1 %v4189_v7 }
 0x4e5   :  { %2322 = vmatpush1.bf16.msra.mxu0 %v3882_v52  ;;  %2363 = vmatpush1.bf16.msra.mxu1 %v3884_v2 }
 0x4e6   :  { %2323 = vmatprep.subr.bf16.mxu0 %v3890_v58  ;;  %2364 = vmatprep.subr.bf16.mxu1 %v3892_v59 }
 0x4e9   :  { %2324 = vmatpush1.bf16.msra.mxu0 %v3894_v0  ;;  %2365 = vmatpush1.bf16.msra.mxu1 %v3896_v16 }
 0x4ea   :  { %2325 = vmatprep.subr.bf16.mxu0 %v3902_v9  ;;  %2366 = vmatprep.subr.bf16.mxu1 %v3904_v11 }
 0x4ed   :  { %2326 = vmatpush1.bf16.msra.mxu0 %v3906_v3  ;;  %2367 = vmatpush1.bf16.msra.mxu1 %v3908_v5 }
 0x4ee   :  { %2327 = vmatprep.subr.bf16.mxu0 %v3914_v62  ;;  %2368 = vmatprep.subr.bf16.mxu1 %v3916_v1 }
 0x4f1   :  { %2328 = vmatpush1.bf16.msra.mxu0 %v3918_v60  ;;  %2369 = vmatpush1.bf16.msra.mxu1 %v3920_v17 }
 0x4f2   :  { %2329 = vmatprep.subr.bf16.mxu0 %v3926_v27  ;;  %2370 = vmatprep.subr.bf16.mxu1 %v3928_v57 }
 0x4f5   :  { %2330 = vmatpush1.bf16.msra.mxu0 %v3930_v63  ;;  %2371 = vmatpush1.bf16.msra.mxu1 %v3932_v6 }
 0x4f6   :  { %2331 = vmatprep.subr.bf16.mxu0 %v3938_v26  ;;  %2372 = vmatprep.subr.bf16.mxu1 %v3940_v61 }
 0x4f9   :  { %2332 = vmatpush1.bf16.msra.mxu0 %v3942_v4  ;;  %2373 = vmatpush1.bf16.msra.mxu1 %v3944_v19 }
 0x4fa   :  { %2333 = vmatprep.subr.bf16.mxu0 %v3950_v43  ;;  %2374 = vmatprep.subr.bf16.mxu1 %v3952_v55 }
 0x4fd   :  { %2334 = vmatpush1.bf16.msra.mxu0 %v3954_v8  ;;  %2375 = vmatpush1.bf16.msra.mxu1 %v3956_v10 }
 0x4fe   :  { %2623 = vmatprep.subr.bf16.mxu0 %v3866_v38  ;;  %2664 = vmatprep.subr.bf16.mxu1 %v3868_v48  ;;  %v4200_v38 = vld [vmem:[#allocation22_spill] sm:$0xff] }
 0x5a0   :  { %v2049_v49 = vpop.f32.mrf.mxu0  ;;  %v2090_v25 = vpop.f32.mrf.mxu1 }
 0x5a1   :  { %v2097_v29 = vadd.f32 %v2049_v49, %v4197_v28  ;;  %v2099_v40 = vadd.f32 %v2090_v25, %v4199_v37  ;;  %v2741_v37 = vld [vmem:[%s4165_s6 + $0x60] sm:$0xff] }
 0x5a2   :  { %v2051_v30 = vpop.f32.mrf.mxu0  ;;  %v2092_v32 = vpop.f32.mrf.mxu1 }
 0x5a3   :  { %v2101_v33 = vmul.f32 0.5, %v2097_v29  ;;  %v2098_v35 = vadd.f32 %v2051_v30, %v4198_v34  ;;  %v2100_v48 = vadd.f32 %v2092_v32, %v4200_v38  ;;  %v3437_v34 = vmov 0.0   ;;  %v2736_v38 = vld [vmem:[%s4165_s6 + $0x38] sm:$0xff] }
 0x5a4   :  { %v2053_v36 = vpop.f32.mrf.mxu0  ;;  %v2094_v53 = vpop.f32.mrf.mxu1 }
 0x5a5   :  { %3337 = vtanh.f32 %v2101_v33  ;;  %v2105_v41 = vmul.f32 0.5, %v2098_v35  ;;  %v2110_v46 = vmul.f32 0.5, %v2100_v48  ;;  %v2744_v35 = vld [vmem:[%s4165_s6 + $0x78] sm:$0xff]  ;;  %v2743_v36 = vld [vmem:[%s4165_s6 + $0x70] sm:$0xff]  ;;  %v2742_v53 = vld [vmem:[%s4165_s6 + $0x68] sm:$0xff] }
 0x5a6   :  { %v2054_v44 = vpop.f32.mrf.mxu0  ;;  %v2095_v45 = vpop.f32.mrf.mxu1  ;;  %v2735_v48 = vld [vmem:[%s4165_s6 + $0x30] sm:$0xff] }
 0x5a7   :  { %3339 = vtanh.f32 %v2105_v41  ;;  %v2739_v41 = vld [vmem:[%s4165_s6 + $0x50] sm:$0xff]  ;;  %v2738_v44 = vld [vmem:[%s4165_s6 + $0x48] sm:$0xff]  ;;  %v2737_v45 = vld [vmem:[%s4165_s6 + $0x40] sm:$0xff] }
 0x5a8   :  { %3341 = vtanh.f32 %v2099_v40  ;;  %v2740_v40 = vld [vmem:[%s4165_s6 + $0x58] sm:$0xff] }
 0x5a9   :  { %3343 = vtanh.f32 %v2110_v46  ;;  %v2734_v46 = vld [vmem:[%s4165_s6 + $0x28] sm:$0xff] }
 0x5b2   :  { %v3338_v47 = vpop.eup %3337 }
 0x5b3   :  { %v2103_v31 = vmul.f32 0.5, %v3338_v47  ;;  %v2733_v47 = vld [vmem:[%s4165_s6 + $0x20] sm:$0xff] }
 0x5b4   :  { %v3340_v12 = vpop.eup %3339 }
 0x5b5   :  { %v2104_v13 = vadd.f32 0.5, %v2103_v31  ;;  %v2107_v14 = vmul.f32 0.5, %v3340_v12  ;;  %v3342_v15 = vpop.eup %3341  ;;  %v2732_v31 = vld [vmem:[%s4165_s6 + $0x18] sm:$0xff]  ;;  %v2731_v12 = vld [vmem:[%s4165_s6 + $0x10] sm:$0xff] }
 0x5b6   :  { %v3344_v23 = vpop.eup %3343 }
 0x5b7   :  { %v2108_v42 = vadd.f32 0.5, %v2107_v14  ;;  %v2115_v20 = vmul.f32 %v3342_v15, %v2104_v13  ;;  %v2112_v24 = vmul.f32 0.5, %v3344_v23  ;;  %v2730_v13 = vld [vmem:[%s4165_s6 + $0x8] sm:$0xff]  ;;  %v2729_v14 = vld [vmem:[%s4165_s6] sm:$0xff]  ;;  %s3439_s6 = smov [#allocation7]  }
 0x5b8   :  { %s2838_s23 = sshll.u32 %s3439_s6, 4  ;;  %s2839_s23 = int_to_ptr.vmem [resolvable:$true] %s2838_s23 }
 0x5b9   :  { %v2114_v21 = vmul.f32 %v2108_v42, %v4011_v18  ;;  %v2113_v49 = vadd.f32 0.5, %v2112_v24  ;;  %s3387_s24 = scalar_lea.vmem %s2839_s23, 1024  ;;  %p3392_p6 = scmp.lt.s32.totalorder %s2839_s23, %s2839_s23 }
 0x5ba   :  { %p3388_p5 = scmp.ne.s32.totalorder %s2839_s23, %s3387_s24  ;;  %p3393_p7 = scmp.lt.s32.totalorder %s3387_s24, %s3387_s24 }
 0x5bb   :  { %v4053_v22 = vadd.f32 %v2115_v20, %v2114_v21  ;;  %v4205_v20 = vld [vmem:[#allocation27_spill] sm:$0xff] }
 0x5bc   :  { %p3394_p8 = por %p3393_p7, %p3392_p6 }
 0x5bd   :  { %3345 = vtanh.f32 %v4053_v22 }
 0x5be   :  { %p3395_p9 = pnand %p3394_p8, %p3388_p5 }
 0x5ca   :  { %v3346_v25 = vpop.eup %3345 }
 0x5cb   :  { %v2118_v28 = vmul.f32 %v3346_v25, %v2113_v49  ;;  %v4206_v49 = vld [vmem:[#allocation29_spill] sm:$0xff] }
 0x5cd   :  { %2120 = vst [vmem:[#allocation7 + $0x28] sm:$0xff] %v2118_v28  ;;  %v2126_v29 = vpack.c.bf16 %v2118_v28, %v2118_v28 }
 0x5cf   :  { %2352 = vmatmul.mubr.bf16.vlgmr.msra.gmra.mxu0 %v2126_v29  ;;  %2393 = vmatmul.mubr.bf16.vlgmr.msra.gmra.mxu1 %v2126_v29 }
 0x5d0   :  { %2624 = vmatpush1.bf16.msra.mxu0 %v3870_v50  ;;  %2665 = vmatpush1.bf16.msra.mxu1 %v3872_v56  ;;  %v4201_v56 = vld [vmem:[#allocation23_spill] sm:$0xff] }
 0x5d1   :  { %2625 = vmatprep.subr.bf16.mxu0 %v3878_v54  ;;  %2666 = vmatprep.subr.bf16.mxu1 %v3880_v51 }
 0x5d2   :  { %2655 = vmatprep.mubr.bf16.mxu0 %v4189_v7  ;;  %2696 = vmatprep.mubr.bf16.mxu1 %v4189_v7 }
 0x5d4   :  { %2626 = vmatpush1.bf16.msra.mxu0 %v3882_v52  ;;  %2667 = vmatpush1.bf16.msra.mxu1 %v3884_v2 }
 0x5d5   :  { %2627 = vmatprep.subr.bf16.mxu0 %v3890_v58  ;;  %2668 = vmatprep.subr.bf16.mxu1 %v3892_v59  ;;  %v4202_v58 = vld [vmem:[#allocation25_spill] sm:$0xff] }
 0x5d8   :  { %2628 = vmatpush1.bf16.msra.mxu0 %v3894_v0  ;;  %2669 = vmatpush1.bf16.msra.mxu1 %v3896_v16 }
 0x5d9   :  { %2629 = vmatprep.subr.bf16.mxu0 %v3902_v9  ;;  %2670 = vmatprep.subr.bf16.mxu1 %v3904_v11  ;;  %v4203_v9 = vld [vmem:[#allocation24_spill] sm:$0xff] }
 0x5dc   :  { %2630 = vmatpush1.bf16.msra.mxu0 %v3906_v3  ;;  %2671 = vmatpush1.bf16.msra.mxu1 %v3908_v5 }
 0x5dd   :  { %2631 = vmatprep.subr.bf16.mxu0 %v3914_v62  ;;  %2672 = vmatprep.subr.bf16.mxu1 %v3916_v1  ;;  %v4204_v1 = vld [vmem:[#allocation26_spill] sm:$0xff] }
 0x5e0   :  { %2632 = vmatpush1.bf16.msra.mxu0 %v3918_v60  ;;  %2673 = vmatpush1.bf16.msra.mxu1 %v3920_v17 }
 0x5e1   :  { %2633 = vmatprep.subr.bf16.mxu0 %v3926_v27  ;;  %2674 = vmatprep.subr.bf16.mxu1 %v3928_v57 }
 0x5e4   :  { %2634 = vmatpush1.bf16.msra.mxu0 %v3930_v63  ;;  %2675 = vmatpush1.bf16.msra.mxu1 %v3932_v6 }
 0x5e5   :  { %2635 = vmatprep.subr.bf16.mxu0 %v3938_v26  ;;  %2676 = vmatprep.subr.bf16.mxu1 %v3940_v61 }
 0x5e8   :  { %2636 = vmatpush1.bf16.msra.mxu0 %v3942_v4  ;;  %2677 = vmatpush1.bf16.msra.mxu1 %v3944_v19 }
 0x5e9   :  { %2637 = vmatprep.subr.bf16.mxu0 %v3950_v43  ;;  %2678 = vmatprep.subr.bf16.mxu1 %v3952_v55 }
 0x5ec   :  { %2638 = vmatpush1.bf16.msra.mxu0 %v3954_v8  ;;  %2679 = vmatpush1.bf16.msra.mxu1 %v3956_v10 }
 0x5ed   :  { %3140 = vmatprep.subr.mxu0 %v3437_v34 }
 0x68f   :  { %v2353_v7 = vpop.f32.mrf.mxu0  ;;  %v2394_v50 = vpop.f32.mrf.mxu1 }
 0x690   :  { %v2401_v54 = vadd.f32 %v2353_v7, %v4201_v56  ;;  %v2403_v11 = vadd.f32 %v2394_v50, %v4203_v9  ;;  %v4207_v7 = vld [vmem:[#allocation28_spill] sm:$0xff] }
 0x691   :  { %v2355_v51 = vpop.f32.mrf.mxu0  ;;  %v2396_v52 = vpop.f32.mrf.mxu1 }
 0x692   :  { %v2405_v2 = vmul.f32 0.5, %v2401_v54  ;;  %v2402_v59 = vadd.f32 %v2355_v51, %v4202_v58  ;;  %v2404_v60 = vadd.f32 %v2396_v52, %v4204_v1 }
 0x693   :  { %v2357_v0 = vpop.f32.mrf.mxu0  ;;  %v2398_v16 = vpop.f32.mrf.mxu1 }
 0x694   :  { %3347 = vtanh.f32 %v2405_v2  ;;  %v2409_v3 = vmul.f32 0.5, %v2402_v59  ;;  %v2414_v17 = vmul.f32 0.5, %v2404_v60 }
 0x695   :  { %v2358_v5 = vpop.f32.mrf.mxu0  ;;  %v2399_v62 = vpop.f32.mrf.mxu1 }
 0x696   :  { %3349 = vtanh.f32 %v2409_v3 }
 0x697   :  { %3351 = vtanh.f32 %v2403_v11 }
 0x698   :  { %3353 = vtanh.f32 %v2414_v17 }
 0x6a1   :  { %v3348_v27 = vpop.eup %3347 }
 0x6a2   :  { %v2407_v57 = vmul.f32 0.5, %v3348_v27 }
 0x6a3   :  { %v3350_v63 = vpop.eup %3349 }
 0x6a4   :  { %v2408_v6 = vadd.f32 0.5, %v2407_v57  ;;  %v2411_v26 = vmul.f32 0.5, %v3350_v63  ;;  %v3352_v61 = vpop.eup %3351 }
 0x6a5   :  { %v3354_v8 = vpop.eup %3353 }
 0x6a6   :  { %v2412_v4 = vadd.f32 0.5, %v2411_v26  ;;  %v2419_v19 = vmul.f32 %v3352_v61, %v2408_v6  ;;  %v2416_v10 = vmul.f32 0.5, %v3354_v8 }
 0x6a8   :  { %v2418_v43 = vmul.f32 %v2412_v4, %v4053_v22  ;;  %v2417_v18 = vadd.f32 0.5, %v2416_v10 }
 0x6aa   :  { %v4093_v55 = vadd.f32 %v2419_v19, %v2418_v43 }
 0x6ac   :  { %3355 = vtanh.f32 %v4093_v55 }
 0x6b9   :  { %v3356_v30 = vpop.eup %3355 }
 0x6ba   :  { %v2422_v32 = vmul.f32 %v3356_v30, %v2417_v18 }
 0x6bc   :  { %2424 = vst [vmem:[#allocation7 + $0x30] sm:$0xff] %v2422_v32  ;;  %v2430_v33 = vpack.c.bf16 %v2422_v32, %v2422_v32 }
 0x6be   :  { %2656 = vmatmul.mubr.bf16.vlgmr.msra.gmra.mxu0 %v2430_v33  ;;  %2697 = vmatmul.mubr.bf16.vlgmr.msra.gmra.mxu1 %v2430_v33 }
 0x6bf   :  { %3141 = vmatpush3.msra.mxu0 %v2744_v35  ;;  %3172 = vmatprep.mubr.msk.f32.mxu0 %vm3438_vm1, %v3437_v34 }
 0x6c0   :  { %3142 = vmatprep.subr.mxu0 %v3437_v34 }
 0x6c1   :  { %3143 = vmatpush3.msra.mxu0 %v2743_v36 }
 0x6c2   :  { %3144 = vmatprep.subr.mxu0 %v3437_v34 }
 0x6c3   :  { %3145 = vmatpush3.msra.mxu0 %v2742_v53 }
 0x6c4   :  { %3146 = vmatprep.subr.mxu0 %v3437_v34 }
 0x6c5   :  { %3147 = vmatpush3.msra.mxu0 %v2741_v37 }
 0x6c6   :  { %3148 = vmatprep.subr.mxu0 %v3437_v34 }
 0x6c7   :  { %3149 = vmatpush3.msra.mxu0 %v2740_v40 }
 0x6c8   :  { %3150 = vmatprep.subr.mxu0 %v3437_v34 }
 0x6c9   :  { %3151 = vmatpush3.msra.mxu0 %v2739_v41 }
 0x6ca   :  { %3152 = vmatprep.subr.mxu0 %v3437_v34 }
 0x6cb   :  { %3153 = vmatpush3.msra.mxu0 %v2738_v44 }
 0x6cc   :  { %3154 = vmatprep.subr.mxu0 %v3437_v34 }
 0x6cd   :  { %3155 = vmatpush3.msra.mxu0 %v2737_v45 }
 0x6ce   :  { %3156 = vmatprep.subr.mxu0 %v3437_v34 }
 0x6cf   :  { %3157 = vmatpush3.msra.mxu0 %v2736_v38 }
 0x6d0   :  { %3158 = vmatprep.subr.mxu0 %v3437_v34 }
 0x6d1   :  { %3159 = vmatpush3.msra.mxu0 %v2735_v48 }
 0x6d2   :  { %3160 = vmatprep.subr.mxu0 %v3437_v34 }
 0x6d3   :  { %3161 = vmatpush3.msra.mxu0 %v2734_v46 }
 0x6d4   :  { %3162 = vmatprep.subr.mxu0 %v3437_v34 }
 0x6d5   :  { %3163 = vmatpush3.msra.mxu0 %v2733_v47 }
 0x6d6   :  { %3164 = vmatprep.subr.mxu0 %v3437_v34 }
 0x6d7   :  { %3165 = vmatpush3.msra.mxu0 %v2732_v31 }
 0x6d8   :  { %3166 = vmatprep.subr.mxu0 %v3437_v34 }
 0x6d9   :  { %3167 = vmatpush3.msra.mxu0 %v2731_v12 }
 0x6da   :  { %3168 = vmatprep.subr.mxu0 %v3437_v34 }
 0x6db   :  { %3169 = vmatpush3.msra.mxu0 %v2730_v13 }
 0x6dc   :  { %3170 = vmatprep.subr.mxu0 %v3437_v34 }
 0x6dd   :  { %3171 = vmatpush3.msra.mxu0 %v2729_v14 }
 0x77e   :  { %v2657_v15 = vpop.f32.mrf.mxu0  ;;  %v2698_v42 = vpop.f32.mrf.mxu1 }
 0x77f   :  { %v2705_v21 = vadd.f32 %v2657_v15, %v4205_v20  ;;  %v2707_v50 = vadd.f32 %v2698_v42, %v4207_v7 }
 0x780   :  { %v2659_v22 = vpop.f32.mrf.mxu0  ;;  %v2700_v23 = vpop.f32.mrf.mxu1 }
 0x781   :  { %v2709_v24 = vmul.f32 0.5, %v2705_v21  ;;  %v2706_v25 = vadd.f32 %v2659_v22, %v4206_v49  ;;  %v2708_v52 = vadd.f32 %v2700_v23, %v3769_v39 }
 0x782   :  { %v2661_v28 = vpop.f32.mrf.mxu0  ;;  %v2702_v29 = vpop.f32.mrf.mxu1 }
 0x783   :  { %3357 = vtanh.f32 %v2709_v24  ;;  %v2713_v56 = vmul.f32 0.5, %v2706_v25  ;;  %v2718_v2 = vmul.f32 0.5, %v2708_v52 }
 0x784   :  { %v2662_v54 = vpop.f32.mrf.mxu0  ;;  %v2703_v51 = vpop.f32.mrf.mxu1 }
 0x785   :  { %3359 = vtanh.f32 %v2713_v56 }
 0x786   :  { %3361 = vtanh.f32 %v2707_v50 }
 0x787   :  { %3363 = vtanh.f32 %v2718_v2 }
 0x790   :  { %v3358_v58 = vpop.eup %3357 }
 0x791   :  { %v2711_v59 = vmul.f32 0.5, %v3358_v58 }
 0x792   :  { %v3360_v0 = vpop.eup %3359 }
 0x793   :  { %v2712_v16 = vadd.f32 0.5, %v2711_v59  ;;  %v2715_v9 = vmul.f32 0.5, %v3360_v0  ;;  %v3362_v11 = vpop.eup %3361 }
 0x794   :  { %v3364_v60 = vpop.eup %3363 }
 0x795   :  { %v2716_v3 = vadd.f32 0.5, %v2715_v9  ;;  %v2723_v5 = vmul.f32 %v3362_v11, %v2712_v16  ;;  %v2720_v17 = vmul.f32 0.5, %v3364_v60 }
 0x797   :  { %v2722_v62 = vmul.f32 %v2716_v3, %v4093_v55  ;;  %v2721_v27 = vadd.f32 0.5, %v2720_v17 }
 0x799   :  { %v2724_v1 = vadd.f32 %v2723_v5, %v2722_v62 }
 0x79b   :  { %3365 = vtanh.f32 %v2724_v1 }
 0x7a8   :  { %v3366_v57 = vpop.eup %3365 }
 0x7a9   :  { %v2726_v63 = vmul.f32 %v3366_v57, %v2721_v27 }
 0x7ab   :  { %2728 = vst [vmem:[#allocation7 + $0x38] sm:$0xff] %v2726_v63  ;;  %3173 = vmatmul.mubr.f32.vlgmr.msra.gmra.mxu0 %v2726_v63 }
 0x7ac   :  { %3398 = shalt.err (!%p3395_p9)
}
 0x7ad   :  { %s3440_s25 = smov 128   ;;  %s3441_s26 = smov 8   ;;  %v3122_v39 = vld [vmem:[%s4166_s7] ss:$0 sm:$0xff] }
 0x7ae   :  { %2844 = dma.vmem_to_hbm [thread:$0]  %s2839_s23, 1024, %s4168_s9, [#allocation8], %s3440_s25, %s3440_s25, %s3441_s26  }
 0x7af   :  { %s3442_s30 = smov [#allocation6]  }
 0x7b0   :  { %s2829_s10 = sshll.u32 %s3442_s30, 4  ;;  %s2830_s10 = int_to_ptr.vmem [resolvable:$true] %s2829_s10 }
 0x7b1   :  { %s3407_s11 = scalar_lea.vmem %s2830_s10, 128  ;;  %p3412_p11 = scmp.lt.s32.totalorder %s2830_s10, %s2830_s10 }
 0x7b2   :  { %p3408_p10 = scmp.ne.s32.totalorder %s2830_s10, %s3407_s11  ;;  %p3413_p12 = scmp.lt.s32.totalorder %s3407_s11, %s3407_s11 }
 0x7b4   :  { %p3414_p13 = por %p3413_p12, %p3412_p11 }
 0x7b6   :  { %p3415_p0 = pnand %p3414_p13, %p3408_p10 }
 0x86b   :  { %v2818_v6 = vpop.f32.mrf.mxu0 }
 0x86c   :  { %v2819_v26 = vadd.f32 %v3122_v39, %v2818_v6 }
 0x86d   :  { %v3174_v61 = vpop.f32.mrf.mxu0 }
 0x86e   :  { %2822 = vst.msk [vmem:[#allocation6] sm:$0xff] %vm106_vm0, %v2819_v26 }
 0x86f   :  { %3418 = shalt.err (!%p3415_p0)
}
 0x870   :  { %2832 = dma.vmem_to_hbm [thread:$0]  %s2830_s10, 128, %s4167_s8, [#allocation5]  }
 0x871   :  { %3429 = dma.done.wait [#allocation5], 128  }
 0x872   :  { %3430 = vsyncadd [#allocation5], 4294967168 }
 0x873   :  { %3431 = dma.done.wait [#allocation8], 1024  }
 0x874   :  { %3432 = vsyncadd [#allocation8], 4294966272 }
 0x875   :  { %2851 = vsyncpa [#allocation4], 1 }
 0x876   :  { %2852 = vsyncpa [#allocation5], 1 }
 0x877   :  { %2853 = vsyncpa [#allocation8], 1 }

</bundles_post_ra>
